<compile_context>
chip_gen: v6e
topology: v6e:2x2x1
jax: 0.10.0
libtpu: 0.0.40
codegen_flags: <defaults>
</compile_context>

<pallas_src>
import math
import functools

import jax
import jax.numpy as jnp
import numpy as np
from jax.experimental import pallas as pl
from jax.experimental.pallas import tpu as pltpu


def reverse_distance_block_kernel(
    feat_ref,        # (TN, S)            float32
    kv_ref,          # (TN*K, 2*HA)       bfloat16 -- pre-projected, gathered [K | V]
    blk_ref,         # (HA, HA)           bfloat16 -- block-diagonal ones (per-head segments)
    wq_ref,          # (S, HA)            bfloat16
    wo_ref,          # (HA, S)            bfloat16
    w1_ref, b1_ref,  # (S, HID) bf16, (1, HID) f32
    w2_ref, b2_ref,  # (HID, HID) bf16, (1, HID) f32
    w3_ref, b3_ref,  # (HID, S) bf16, (1, S) f32
    o_ref,           # (TN, S)            float32
    *, heads, attn_size, K,
):
  feat = feat_ref[...]                                   # (TN, S) f32
  tn = feat.shape[0]
  ha = heads * attn_size

  # --- attention (bn/normalization are identities: batch_norm=False) ---
  q = jnp.dot(feat.astype(jnp.bfloat16), wq_ref[...],
              preferred_element_type=jnp.float32)        # (TN, HA) f32
  qs = q * (1.0 / math.sqrt(attn_size))                  # fold 1/sqrt(A) into Q

  # kv travels over HBM/DMA as bf16 (dominant stream); widen to f32 for the
  # softmax / reduction math (v5e-friendly, no bf16 VPU there).
  kv = kv_ref[...].astype(jnp.float32)                   # (TN*K, 2*HA)
  k3 = kv[:, :ha].reshape(tn, K, ha)                     # (TN, K, HA)  lane-aligned slice
  v3 = kv[:, ha:].reshape(tn, K, ha)                     # (TN, K, HA)

  # blk is a constant (HA, HA) block-diagonal ones matrix (one A x A block per head):
  # prod @ blk gives, per lane j, the logit of head(j) replicated across that head's
  # A lanes -> all heads in one lane-dense MXU pass, no per-head slices/concat.
  prod = (qs[:, None, :] * k3).reshape(tn * K, ha)       # (TN*K, HA) f32
  logits = jnp.dot(prod.astype(jnp.bfloat16), blk_ref[...],
                   preferred_element_type=jnp.float32).reshape(tn, K, ha)

  # stable softmax over the K neighbours; normalise AFTER the V reduction so the
  # reciprocal multiply touches (TN, HA) instead of (TN, K, HA).
  m = jnp.max(logits, axis=1, keepdims=True)             # (TN, 1, HA)
  e = jnp.exp(logits - m)                                # (TN, K, HA)
  denom = jnp.sum(e, axis=1)                             # (TN, HA)
  acc = jnp.sum(e * v3, axis=1)                          # (TN, HA)  unnormalised
  attn = acc * pl.reciprocal(denom, approx=True)         # EUP reciprocal

  attn_out = jnp.dot(attn.astype(jnp.bfloat16), wo_ref[...],
                     preferred_element_type=jnp.float32)  # (TN, S)
  out = feat + attn_out            # dropout == identity at inference

  # --- local MLP (depth=3: in->hid, hid->hid, hid->out), ReLU, local_bn identity ---
  h1 = jnp.maximum(
      jnp.dot(out.astype(jnp.bfloat16), w1_ref[...],
              preferred_element_type=jnp.float32) + b1_ref[...], 0.0)
  h2 = jnp.maximum(
      jnp.dot(h1.astype(jnp.bfloat16), w2_ref[...],
              preferred_element_type=jnp.float32) + b2_ref[...], 0.0)
  local = jnp.dot(h2.astype(jnp.bfloat16), w3_ref[...],
                  preferred_element_type=jnp.float32) + b3_ref[...]

  o_ref[...] = (out + local).astype(o_ref.dtype)


def reverse_distance_block(features, distance_features, structure, params,
                           *, heads, attn_size, tile_n=512):
  N, S = features.shape
  K = structure.shape[1]
  ha = heads * attn_size
  hid = params["w1"].shape[1]
  tile_n = min(tile_n, N)
  assert N % tile_n == 0, "N must be a multiple of tile_n"

  bf16 = jnp.bfloat16

  # --- K/V pre-projection + gather (plain-JAX glue) ---
  # Project BEFORE the gather (K x fewer FLOPs, no 8-deep MXU contraction), cast the
  # projected result to bf16 BEFORE the gather so the K-fold-duplicated HBM stream
  # (gather writeback + kernel DMA) is half-width.  f32 accumulation stays in-kernel.
  wkv = jnp.concatenate([params["wk"], params["wv"]], axis=1)        # (D, 2*HA)
  kv_all = jnp.dot(distance_features, wkv,
                   preferred_element_type=jnp.float32).astype(bf16)  # (N, 2*HA) bf16
  kv_g = kv_all[structure].reshape(N * K, 2 * ha)                    # (N*K, 2*HA) bf16

  # Hoisted block-diagonal ones matrix (one A x A ones block per head), built once.
  blk_np = (np.arange(ha)[:, None] // attn_size) == (np.arange(ha)[None, :] // attn_size)
  blk = jnp.asarray(blk_np, dtype=bf16)                              # (HA, HA)

  wq = params["wq"].astype(bf16)
  wo = params["wo"].astype(bf16)
  w1 = params["w1"].astype(bf16)
  w2 = params["w2"].astype(bf16)
  w3 = params["w3"].astype(bf16)
  b1, b2, b3 = params["b1"], params["b2"], params["b3"]

  kernel = functools.partial(
      reverse_distance_block_kernel, heads=heads, attn_size=attn_size, K=K)

  grid = (N // tile_n,)
  const2d = lambda i: (0, 0)  # noqa: E731  (weights/constants: same full block every step)

  # advisory cost estimate for the XLA scheduler around the gather/projection
  mm_flops = 2 * N * (S * ha + K * ha * ha + ha * S + S * hid + hid * hid + hid * S)
  cost = pl.CostEstimate(
      flops=mm_flops + 6 * N * K * ha,
      transcendentals=N * K * ha + N * ha,
      bytes_accessed=(4 * N * S * 2                      # features in + out
                      + 2 * N * K * 2 * ha               # gathered K|V (bf16)
                      + 2 * (S * ha + ha * S + S * hid + hid * hid + hid * S + ha * ha)
                      + 4 * (2 * hid + S)))

  return pl.pallas_call(
      kernel,
      out_shape=jax.ShapeDtypeStruct((N, S), features.dtype),
      grid_spec=pltpu.PrefetchScalarGridSpec(
          num_scalar_prefetch=0,
          grid=grid,
          in_specs=[
              pl.BlockSpec((tile_n, S), lambda i: (i, 0)),           # features tile
              pl.BlockSpec((tile_n * K, 2 * ha), lambda i: (i, 0)),  # gathered K|V (bf16)
              pl.BlockSpec((ha, ha), const2d),                       # blk (const)
              pl.BlockSpec((S, ha), const2d),                        # wq
              pl.BlockSpec((ha, S), const2d),                        # wo
              pl.BlockSpec((S, hid), const2d),                       # w1
              pl.BlockSpec((1, hid), const2d),                       # b1
              pl.BlockSpec((hid, hid), const2d),                     # w2
              pl.BlockSpec((1, hid), const2d),                       # b2
              pl.BlockSpec((hid, S), const2d),                       # w3
              pl.BlockSpec((1, S), const2d),                         # b3
          ],
          out_specs=pl.BlockSpec((tile_n, S), lambda i: (i, 0)),
      ),
      compiler_params=pltpu.CompilerParams(dimension_semantics=("parallel",)),
      cost_estimate=cost,
  )(features, kv_g, blk, wq, wo, w1, b1, w2, b2, w3, b3)


def ref_forward(features, distance_features, structure, params, *, heads, attn_size):
  """Pure-JAX f32 reference with identical semantics (for correctness check)."""
  gathered = distance_features[structure]                           # (N, K, D)
  N, K, _ = gathered.shape
  A = attn_size
  q = (features @ params["wq"]).reshape(N, heads, A)
  k = jnp.einsum("nkd,dh->nkh", gathered, params["wk"]).reshape(N, K, heads, A)
  v = jnp.einsum("nkd,dh->nkh", gathered, params["wv"]).reshape(N, K, heads, A)
  logits = jnp.einsum("nha,nkha->nkh", q, k) / math.sqrt(A)
  w = jax.nn.softmax(logits, axis=1)
  o = jnp.einsum("nkh,nkha->nha", w, v).reshape(N, heads * A)
  attn_out = o @ params["wo"]
  out = features + attn_out
  h1 = jax.nn.relu(out @ params["w1"] + params["b1"][0])
  h2 = jax.nn.relu(h1 @ params["w2"] + params["b2"][0])
  local = h2 @ params["w3"] + params["b3"][0]
  return out + local


if __name__ == "__main__":
  key = jax.random.PRNGKey(0)
  N, S, K = 256, 128, 8                 # nodes, feature size, neighbours per node
  distance_size = 6
  D = distance_size + 2                 # distance_size + 2  (module contract)
  heads, attn_size = 2, 64              # small multi-head config (H*A = 128)
  hidden = 128                          # MLP hidden size
  tile_n = 64                           # grid of 4 steps: pipeline overlap + even
                                        # split across v7x's two TensorCores

  ks = jax.random.split(key, 16)
  features = jax.random.normal(ks[0], (N, S), jnp.float32)
  distance_features = jax.random.normal(ks[1], (N, D), jnp.float32)
  structure = jax.random.randint(ks[2], (N, K), 0, N, dtype=jnp.int32)

  sc = 0.05
  params = dict(
      wq=sc * jax.random.normal(ks[3], (S, heads * attn_size), jnp.float32),
      wk=sc * jax.random.normal(ks[4], (D, heads * attn_size), jnp.float32),
      wv=sc * jax.random.normal(ks[5], (D, heads * attn_size), jnp.float32),
      wo=sc * jax.random.normal(ks[6], (heads * attn_size, S), jnp.float32),
      w1=sc * jax.random.normal(ks[7], (S, hidden), jnp.float32),
      b1=0.01 * jax.random.normal(ks[8], (1, hidden), jnp.float32),
      w2=sc * jax.random.normal(ks[9], (hidden, hidden), jnp.float32),
      b2=0.01 * jax.random.normal(ks[10], (1, hidden), jnp.float32),
      w3=sc * jax.random.normal(ks[11], (hidden, S), jnp.float32),
      b3=0.01 * jax.random.normal(ks[12], (1, S), jnp.float32),
  )

  out = reverse_distance_block(features, distance_features, structure, params,
                               heads=heads, attn_size=attn_size, tile_n=tile_n)
  out = jax.block_until_ready(out)

  ref = ref_forward(features, distance_features, structure, params,
                    heads=heads, attn_size=attn_size)
  # bf16 matmul operands / bf16 K-V stream (f32 accumulation) + approx reciprocal
  # -> widened tolerance.
  np.testing.assert_allclose(np.asarray(out), np.asarray(ref), atol=2e-2, rtol=2e-2)

  print("KERNEL_OK")
</pallas_src>

<mosaic_0001>
module attributes {stable_mosaic.version = 11 : i64} {
  func.func @reverse_distance_block_kernel(%arg0: i32, %arg1: memref<64x128xf32, #tpu.memory_space<vmem>>, %arg2: memref<512x256xbf16, #tpu.memory_space<vmem>>, %arg3: memref<128x128xbf16, #tpu.memory_space<vmem>>, %arg4: memref<128x128xbf16, #tpu.memory_space<vmem>>, %arg5: memref<128x128xbf16, #tpu.memory_space<vmem>>, %arg6: memref<128x128xbf16, #tpu.memory_space<vmem>>, %arg7: memref<1x128xf32, #tpu.memory_space<vmem>>, %arg8: memref<128x128xbf16, #tpu.memory_space<vmem>>, %arg9: memref<1x128xf32, #tpu.memory_space<vmem>>, %arg10: memref<128x128xbf16, #tpu.memory_space<vmem>>, %arg11: memref<1x128xf32, #tpu.memory_space<vmem>>, %arg12: memref<64x128xf32, #tpu.memory_space<vmem>>) attributes {dimension_semantics = [#tpu.dimension_semantics<parallel>], iteration_bounds = array<i64: 4>, scalar_prefetch = 0 : i64, scratch_operands = 0 : i64, tpu.core_type = #tpu.core_type<tc>, window_params = [{transform_indices = @transform_0, window_bounds = array<i64: 64, 128>}, {transform_indices = @transform_1, window_bounds = array<i64: 512, 256>}, {pipeline_mode = #tpu.pipeline_mode<synchronous>, transform_indices = @transform_2, window_bounds = array<i64: 128, 128>}, {pipeline_mode = #tpu.pipeline_mode<synchronous>, transform_indices = @transform_3, window_bounds = array<i64: 128, 128>}, {pipeline_mode = #tpu.pipeline_mode<synchronous>, transform_indices = @transform_4, window_bounds = array<i64: 128, 128>}, {pipeline_mode = #tpu.pipeline_mode<synchronous>, transform_indices = @transform_5, window_bounds = array<i64: 128, 128>}, {pipeline_mode = #tpu.pipeline_mode<synchronous>, transform_indices = @transform_6, window_bounds = array<i64: 1, 128>}, {pipeline_mode = #tpu.pipeline_mode<synchronous>, transform_indices = @transform_7, window_bounds = array<i64: 128, 128>}, {pipeline_mode = #tpu.pipeline_mode<synchronous>, transform_indices = @transform_8, window_bounds = array<i64: 1, 128>}, {pipeline_mode = #tpu.pipeline_mode<synchronous>, transform_indices = @transform_9, window_bounds = array<i64: 128, 128>}, {pipeline_mode = #tpu.pipeline_mode<synchronous>, transform_indices = @transform_10, window_bounds = array<i64: 1, 128>}, {transform_indices = @transform_11, window_bounds = array<i64: 64, 128>}]} {
    %c0 = arith.constant 0 : index
    %c0_0 = arith.constant 0 : index
    %0 = vector.load %arg1[%c0, %c0_0] : memref<64x128xf32, #tpu.memory_space<vmem>>, vector<64x128xf32>
    %1 = arith.truncf %0 : vector<64x128xf32> to vector<64x128xbf16>
    %c0_1 = arith.constant 0 : index
    %c0_2 = arith.constant 0 : index
    %2 = vector.load %arg4[%c0_1, %c0_2] : memref<128x128xbf16, #tpu.memory_space<vmem>>, vector<128x128xbf16>
    %cst = arith.constant dense<0.000000e+00> : vector<64x128xf32>
    %3 = tpu.matmul %1, %2, %cst {dimension_numbers = #tpu.dot_dimension_numbers<[1], [0], [0], [1], [0, 0, 1, 1], [], []>} : vector<64x128xbf16>, vector<128x128xbf16>, vector<64x128xf32> -> vector<64x128xf32>
    %cst_3 = arith.constant 1.250000e-01 : f32
    %4 = vector.broadcast %cst_3 : f32 to vector<64x128xf32>
    %5 = arith.mulf %3, %4 : vector<64x128xf32>
    %c0_4 = arith.constant 0 : index
    %c0_5 = arith.constant 0 : index
    %6 = vector.load %arg2[%c0_4, %c0_5] : memref<512x256xbf16, #tpu.memory_space<vmem>>, vector<512x256xbf16>
    %7 = arith.extf %6 : vector<512x256xbf16> to vector<512x256xf32>
    %8 = vector.extract_strided_slice %7 {offsets = [0, 0], sizes = [512, 128], strides = [1, 1]} : vector<512x256xf32> to vector<512x128xf32>
    %9 = vector.shape_cast %8 : vector<512x128xf32> to vector<64x8x128xf32>
    %10 = vector.extract_strided_slice %7 {offsets = [0, 128], sizes = [512, 128], strides = [1, 1]} : vector<512x256xf32> to vector<512x128xf32>
    %11 = vector.shape_cast %10 : vector<512x128xf32> to vector<64x8x128xf32>
    %12 = vector.shape_cast %5 : vector<64x128xf32> to vector<64x1x128xf32>
    %13 = vector.broadcast %12 : vector<64x1x128xf32> to vector<64x8x128xf32>
    %14 = arith.mulf %13, %9 : vector<64x8x128xf32>
    %15 = vector.shape_cast %14 : vector<64x8x128xf32> to vector<512x128xf32>
    %16 = arith.truncf %15 : vector<512x128xf32> to vector<512x128xbf16>
    %c0_6 = arith.constant 0 : index
    %c0_7 = arith.constant 0 : index
    %17 = vector.load %arg3[%c0_6, %c0_7] : memref<128x128xbf16, #tpu.memory_space<vmem>>, vector<128x128xbf16>
    %cst_8 = arith.constant dense<0.000000e+00> : vector<512x128xf32>
    %18 = tpu.matmul %16, %17, %cst_8 {dimension_numbers = #tpu.dot_dimension_numbers<[1], [0], [0], [1], [0, 0, 1, 1], [], []>} : vector<512x128xbf16>, vector<128x128xbf16>, vector<512x128xf32> -> vector<512x128xf32>
    %19 = vector.shape_cast %18 : vector<512x128xf32> to vector<64x8x128xf32>
    %cst_9 = arith.constant dense<0xFF800000> : vector<64x128xf32>
    %20 = vector.multi_reduction <maximumf>, %19, %cst_9 [1] : vector<64x8x128xf32> to vector<64x128xf32>
    %21 = vector.shape_cast %20 : vector<64x128xf32> to vector<64x1x128xf32>
    %22 = vector.broadcast %21 : vector<64x1x128xf32> to vector<64x8x128xf32>
    %23 = arith.subf %19, %22 : vector<64x8x128xf32>
    %24 = math.exp %23 : vector<64x8x128xf32>
    %cst_10 = arith.constant dense<0.000000e+00> : vector<64x128xf32>
    %25 = vector.multi_reduction <add>, %24, %cst_10 [1] : vector<64x8x128xf32> to vector<64x128xf32>
    %26 = arith.mulf %24, %11 : vector<64x8x128xf32>
    %cst_11 = arith.constant dense<0.000000e+00> : vector<64x128xf32>
    %27 = vector.multi_reduction <add>, %26, %cst_11 [1] : vector<64x8x128xf32> to vector<64x128xf32>
    %28 = tpu.reciprocal %25 {approx = true} : vector<64x128xf32> -> vector<64x128xf32>
    %29 = arith.mulf %27, %28 : vector<64x128xf32>
    %30 = arith.truncf %29 : vector<64x128xf32> to vector<64x128xbf16>
    %c0_12 = arith.constant 0 : index
    %c0_13 = arith.constant 0 : index
    %31 = vector.load %arg5[%c0_12, %c0_13] : memref<128x128xbf16, #tpu.memory_space<vmem>>, vector<128x128xbf16>
    %cst_14 = arith.constant dense<0.000000e+00> : vector<64x128xf32>
    %32 = tpu.matmul %30, %31, %cst_14 {dimension_numbers = #tpu.dot_dimension_numbers<[1], [0], [0], [1], [0, 0, 1, 1], [], []>} : vector<64x128xbf16>, vector<128x128xbf16>, vector<64x128xf32> -> vector<64x128xf32>
    %33 = arith.addf %0, %32 : vector<64x128xf32>
    %34 = arith.truncf %33 : vector<64x128xf32> to vector<64x128xbf16>
    %c0_15 = arith.constant 0 : index
    %c0_16 = arith.constant 0 : index
    %35 = vector.load %arg6[%c0_15, %c0_16] : memref<128x128xbf16, #tpu.memory_space<vmem>>, vector<128x128xbf16>
    %cst_17 = arith.constant dense<0.000000e+00> : vector<64x128xf32>
    %36 = tpu.matmul %34, %35, %cst_17 {dimension_numbers = #tpu.dot_dimension_numbers<[1], [0], [0], [1], [0, 0, 1, 1], [], []>} : vector<64x128xbf16>, vector<128x128xbf16>, vector<64x128xf32> -> vector<64x128xf32>
    %c0_18 = arith.constant 0 : index
    %c0_19 = arith.constant 0 : index
    %37 = vector.load %arg7[%c0_18, %c0_19] : memref<1x128xf32, #tpu.memory_space<vmem>>, vector<1x128xf32>
    %38 = vector.broadcast %37 : vector<1x128xf32> to vector<64x128xf32>
    %39 = arith.addf %36, %38 : vector<64x128xf32>
    %cst_20 = arith.constant 0.000000e+00 : f32
    %40 = vector.broadcast %cst_20 : f32 to vector<64x128xf32>
    %41 = arith.maximumf %39, %40 : vector<64x128xf32>
    %42 = arith.truncf %41 : vector<64x128xf32> to vector<64x128xbf16>
    %c0_21 = arith.constant 0 : index
    %c0_22 = arith.constant 0 : index
    %43 = vector.load %arg8[%c0_21, %c0_22] : memref<128x128xbf16, #tpu.memory_space<vmem>>, vector<128x128xbf16>
    %cst_23 = arith.constant dense<0.000000e+00> : vector<64x128xf32>
    %44 = tpu.matmul %42, %43, %cst_23 {dimension_numbers = #tpu.dot_dimension_numbers<[1], [0], [0], [1], [0, 0, 1, 1], [], []>} : vector<64x128xbf16>, vector<128x128xbf16>, vector<64x128xf32> -> vector<64x128xf32>
    %c0_24 = arith.constant 0 : index
    %c0_25 = arith.constant 0 : index
    %45 = vector.load %arg9[%c0_24, %c0_25] : memref<1x128xf32, #tpu.memory_space<vmem>>, vector<1x128xf32>
    %46 = vector.broadcast %45 : vector<1x128xf32> to vector<64x128xf32>
    %47 = arith.addf %44, %46 : vector<64x128xf32>
    %cst_26 = arith.constant 0.000000e+00 : f32
    %48 = vector.broadcast %cst_26 : f32 to vector<64x128xf32>
    %49 = arith.maximumf %47, %48 : vector<64x128xf32>
    %50 = arith.truncf %49 : vector<64x128xf32> to vector<64x128xbf16>
    %c0_27 = arith.constant 0 : index
    %c0_28 = arith.constant 0 : index
    %51 = vector.load %arg10[%c0_27, %c0_28] : memref<128x128xbf16, #tpu.memory_space<vmem>>, vector<128x128xbf16>
    %cst_29 = arith.constant dense<0.000000e+00> : vector<64x128xf32>
    %52 = tpu.matmul %50, %51, %cst_29 {dimension_numbers = #tpu.dot_dimension_numbers<[1], [0], [0], [1], [0, 0, 1, 1], [], []>} : vector<64x128xbf16>, vector<128x128xbf16>, vector<64x128xf32> -> vector<64x128xf32>
    %c0_30 = arith.constant 0 : index
    %c0_31 = arith.constant 0 : index
    %53 = vector.load %arg11[%c0_30, %c0_31] : memref<1x128xf32, #tpu.memory_space<vmem>>, vector<1x128xf32>
    %54 = vector.broadcast %53 : vector<1x128xf32> to vector<64x128xf32>
    %55 = arith.addf %52, %54 : vector<64x128xf32>
    %56 = arith.addf %33, %55 : vector<64x128xf32>
    %c0_32 = arith.constant 0 : index
    %c0_33 = arith.constant 0 : index
    %57 = vector.load %arg12[%c0_32, %c0_33] : memref<64x128xf32, #tpu.memory_space<vmem>>, vector<64x128xf32>
    tpu.vector_store %arg12[%c0_32, %c0_33], %56 {strides = array<i32>} : memref<64x128xf32, #tpu.memory_space<vmem>>, vector<64x128xf32>,
    return
  }
  func.func @transform_0(%arg0: i32) -> (i32, i32) {
    %c0_i32 = arith.constant 0 : i32
    %c0_i32_0 = arith.constant 0 : i32
    return %arg0, %c0_i32 : i32, i32
  }
  func.func @transform_1(%arg0: i32) -> (i32, i32) {
    %c0_i32 = arith.constant 0 : i32
    %c0_i32_0 = arith.constant 0 : i32
    return %arg0, %c0_i32 : i32, i32
  }
  func.func @transform_2(%arg0: i32) -> (i32, i32) {
    %c0_i32 = arith.constant 0 : i32
    %c0_i32_0 = arith.constant 0 : i32
    %c0_i32_1 = arith.constant 0 : i32
    return %c0_i32, %c0_i32_0 : i32, i32
  }
  func.func @transform_3(%arg0: i32) -> (i32, i32) {
    %c0_i32 = arith.constant 0 : i32
    %c0_i32_0 = arith.constant 0 : i32
    %c0_i32_1 = arith.constant 0 : i32
    return %c0_i32, %c0_i32_0 : i32, i32
  }
  func.func @transform_4(%arg0: i32) -> (i32, i32) {
    %c0_i32 = arith.constant 0 : i32
    %c0_i32_0 = arith.constant 0 : i32
    %c0_i32_1 = arith.constant 0 : i32
    return %c0_i32, %c0_i32_0 : i32, i32
  }
  func.func @transform_5(%arg0: i32) -> (i32, i32) {
    %c0_i32 = arith.constant 0 : i32
    %c0_i32_0 = arith.constant 0 : i32
    %c0_i32_1 = arith.constant 0 : i32
    return %c0_i32, %c0_i32_0 : i32, i32
  }
  func.func @transform_6(%arg0: i32) -> (i32, i32) {
    %c0_i32 = arith.constant 0 : i32
    %c0_i32_0 = arith.constant 0 : i32
    %c0_i32_1 = arith.constant 0 : i32
    return %c0_i32, %c0_i32_0 : i32, i32
  }
  func.func @transform_7(%arg0: i32) -> (i32, i32) {
    %c0_i32 = arith.constant 0 : i32
    %c0_i32_0 = arith.constant 0 : i32
    %c0_i32_1 = arith.constant 0 : i32
    return %c0_i32, %c0_i32_0 : i32, i32
  }
  func.func @transform_8(%arg0: i32) -> (i32, i32) {
    %c0_i32 = arith.constant 0 : i32
    %c0_i32_0 = arith.constant 0 : i32
    %c0_i32_1 = arith.constant 0 : i32
    return %c0_i32, %c0_i32_0 : i32, i32
  }
  func.func @transform_9(%arg0: i32) -> (i32, i32) {
    %c0_i32 = arith.constant 0 : i32
    %c0_i32_0 = arith.constant 0 : i32
    %c0_i32_1 = arith.constant 0 : i32
    return %c0_i32, %c0_i32_0 : i32, i32
  }
  func.func @transform_10(%arg0: i32) -> (i32, i32) {
    %c0_i32 = arith.constant 0 : i32
    %c0_i32_0 = arith.constant 0 : i32
    %c0_i32_1 = arith.constant 0 : i32
    return %c0_i32, %c0_i32_0 : i32, i32
  }
  func.func @transform_11(%arg0: i32) -> (i32, i32) {
    %c0_i32 = arith.constant 0 : i32
    %c0_i32_0 = arith.constant 0 : i32
    return %arg0, %c0_i32 : i32, i32
  }
}

</mosaic_0001>

<bundles_post_ra>
// kernel: tpu_custom_call.1
= control target key start
LH: loop header
LB: loop body
LE: loop exit
PB: predicated region body
PF: predicated region fallthrough
CT: control target
= control target key end

     0   :  { %s7997_s0 = inlined_call_operand.hbm [shape: f32[256,128], index: 0, kind: input, shape index: {}]   ;;  %s7998_s1 = inlined_call_operand.hbm [shape: bf16[2048,256], index: 1, kind: input, shape index: {}]   ;;  %s7999_s2 = inlined_call_operand.hbm [shape: bf16[128,128], index: 2, kind: input, shape index: {}]   ;;  %s8000_s3 = inlined_call_operand.hbm [shape: bf16[128,128], index: 3, kind: input, shape index: {}]   ;;  %s8001_s4 = inlined_call_operand.hbm [shape: bf16[128,128], index: 4, kind: input, shape index: {}]   ;;  %s8002_s5 = inlined_call_operand.hbm [shape: bf16[128,128], index: 5, kind: input, shape index: {}]   ;;  %s8003_s6 = inlined_call_operand.vmem [shape: f32[1,128], index: 6, kind: input, shape index: {}]   ;;  %s8004_s7 = inlined_call_operand.hbm [shape: bf16[128,128], index: 7, kind: input, shape index: {}]   ;;  %s8005_s8 = inlined_call_operand.vmem [shape: f32[1,128], index: 8, kind: input, shape index: {}]   ;;  %s8006_s9 = inlined_call_operand.hbm [shape: bf16[128,128], index: 9, kind: input, shape index: {}]   ;;  %s8007_s10 = inlined_call_operand.vmem [shape: f32[1,128], index: 10, kind: input, shape index: {}]   ;;  %s8008_s11 = inlined_call_operand.hbm [shape: f32[256,128], index: 11, kind: output, shape index: {}]  }
   0x1   :  { %8206 = sst [smem:[#allocation144_spill]] %s7997_s0 }
   0x2   :  { %8207 = sst [smem:[#allocation145_spill]] %s7999_s2 }
   0x3   :  { %8208 = sst [smem:[#allocation146_spill]] %s8000_s3 }
   0x4   :  { %8209 = sst [smem:[#allocation147_spill]] %s8001_s4 }
   0x5   :  { %8210 = sst [smem:[#allocation148_spill]] %s8002_s5 }
   0x6   :  { %8211 = sst [smem:[#allocation149_spill]] %s8004_s7 }
   0x7   :  { %8212 = sst [smem:[#allocation150_spill]] %s8006_s9 }
   0x8   :  { %16 = vsyncpa [#allocation3], 0 }
   0x9   :  { %18 = vsyncpa [#allocation3 + $0x1], 0 }
   0xa   :  { %19 = vsyncpa [#allocation6], 0 }
   0xb   :  { %21 = vsyncpa [#allocation6 + $0x1], 0 }
   0xc   :  { %22 = vsyncpa [#allocation9], 0 }
   0xd   :  { %23 = vsyncpa [#allocation12], 0 }
   0xe   :  { %24 = vsyncpa [#allocation15], 0 }
   0xf   :  { %25 = vsyncpa [#allocation4], 0 }
  0x10   :  { %27 = vsyncpa [#allocation4 + $0x1], 0  ;;  %s5809_s17 = smov 0   ;;  %s5811_s18 = smov 0  }
  0x11   :  { %s5813_s19 = smov 0   ;;  %s5815_s20 = smov 0  }
  0x12 LB: > { %8213 = sst [smem:[#allocation24_spill]] %s5727_s19  ;;  %s5733_s21 = smov [#allocation7]   ;;  %s5731_s20 = sphi %s5815_s20, %s8674_s20   ;;  %s5727_s19 = sphi %s5813_s19, %s8671_s19   ;;  %s5723_s18 = sphi %s5811_s18, %s8673_s18   ;;  %s5719_s17 = sphi %s5809_s17, %s8672_s17  }
  0x13   : > { %s317_s22 = sshll.u32 %s5733_s21, 4  ;;  %s5830_s23 = sadd.s32 4294967295, %s5731_s20   ;;  %s318_s22 = int_to_ptr.vmem [resolvable:$true] %s317_s22 }
  0x14   : > { %p4603_p0 = scmp.ge.s32.totalorder %s5731_s20, 1  ;;  %p8009_p1 = scmp.eq.s32.totalorder %s5830_s23, 0 }
  0x15   : > { %p305_p2 = scmp.lt.s32.totalorder %s5731_s20, 5  ;;  %s5734_s25 = smov [#allocation8]  }
  0x16   : > { %s330_s26 = sshll.u32 %s5734_s25, 4  ;;  %s5735_s28 = smov [#allocation11]   ;;  %s5847_s26 = int_to_ptr.vmem [resolvable:$true] %s330_s26 }
  0x17   : > { %p5835_p3 = pnand %p4603_p0, %p305_p2  ;;  %s356_s29 = sshll.u32 %s5735_s28, 4  ;;  %s5849_s29 = int_to_ptr.vmem [resolvable:$true] %s356_s29 }
  0x18   : > { %s5446_s12 = scalar_lea.vmem %s318_s22, 1024  ;;  %p5454_p10 = scmp.lt.s32.totalorder %s318_s22, %s318_s22 }
  0x19   : > { %p5034_p4 = pneg %p5835_p3  ;;  %p5447_p7 = scmp.ne.s32.totalorder %s318_s22, %s5446_s12 }
  0x1a   : > { %p5455_p11 = scmp.lt.s32.totalorder %s5446_s12, %s5446_s12 }
  0x1b   : > { %p5843_p5 = pnand %p5034_p4, %p8009_p1 }
  0x1c   : > { %p5456_p12 = por %p5455_p11, %p5454_p10 }
  0x1d   : > { %p5853_p6 = pneg %p5843_p5 }
  0x1f   : > { %p5449_p8 = pnand %p5447_p7, %p5853_p6 }
  0x21   : > { %p5450_p9 = pneg %p5449_p8 }
  0x23   : > { %p5457_p13 = pnand %p5456_p12, %p5450_p9 }
  0x25   : > { %5460 = shalt.err (!%p5457_p13)
}
  0x26   : > { %s5736_s13 = smov 64   ;;  %s5737_s14 = smov 4  }
  0x27   : > { %s8217_s2 = sld [smem:[#allocation145_spill]]  ;;  %s5472_s21 = scalar_lea.vmem %s5847_s26, 1024 }
  0x28   : > { %p5473_p0 = scmp.ne.s32.totalorder %s5847_s26, %s5472_s21  ;;  %p5480_p7 = scmp.lt.s32.totalorder %s5847_s26, %s5847_s26 }
  0x29   : > { %p5481_p8 = scmp.lt.s32.totalorder %s5472_s21, %s5472_s21 }
  0x2a   : > { %p5475_p2 = pnand %p5473_p0, %p5853_p6 }
  0x2b   : > { %p5482_p9 = por %p5481_p8, %p5480_p7 }
  0x2c   : > { %p5476_p4 = pneg %p5475_p2 }
  0x2d   : > { %5037 = dma.hbm_to_vmem [thread:$0]  (!%p5843_p5), %s8217_s2, 1024, %s318_s22, [#allocation6], %s5736_s13, %s5736_s13, %s5737_s14  }
  0x2e   : > { %p5483_p10 = pnand %p5482_p9, %p5476_p4 }
  0x30   : > { %5486 = shalt.err (!%p5483_p10)
}
  0x31   : > { %s8218_s3 = sld [smem:[#allocation146_spill]]  ;;  %s5498_s22 = scalar_lea.vmem %s5849_s29, 1024 }
  0x32   : > { %p5499_p11 = scmp.ne.s32.totalorder %s5849_s29, %s5498_s22  ;;  %p5506_p0 = scmp.lt.s32.totalorder %s5849_s29, %s5849_s29 }
  0x33   : > { %p5507_p2 = scmp.lt.s32.totalorder %s5498_s22, %s5498_s22 }
  0x34   : > { %p5501_p12 = pnand %p5499_p11, %p5853_p6 }
  0x35   : > { %p5508_p4 = por %p5507_p2, %p5506_p0 }
  0x36   : > { %p5502_p13 = pneg %p5501_p12 }
  0x37   : > { %5040 = dma.hbm_to_vmem [thread:$0]  (!%p5843_p5), %s8218_s3, 1024, %s5847_s26, [#allocation9], %s5736_s13, %s5736_s13, %s5737_s14  }
  0x38   : > { %p5509_p7 = pnand %p5508_p4, %p5502_p13 }
  0x3a   : > { %5512 = shalt.err (!%p5509_p7)
}
  0x3b   : > { %s8219_s5 = sld [smem:[#allocation148_spill]]  ;;  %s5738_s26 = smov [#allocation10]  }
  0x3c   : > { %s343_s16 = sshll.u32 %s5738_s26, 4  ;;  %s5739_s21 = smov [#allocation13]   ;;  %s344_s16 = int_to_ptr.vmem [resolvable:$true] %s343_s16 }
  0x3d   : > { %s372_s25 = sshll.u32 %s5739_s21, 4  ;;  %s5524_s28 = scalar_lea.vmem %s344_s16, 1024  ;;  %s373_s25 = int_to_ptr.vmem [resolvable:$true] %s372_s25 }
  0x3e   : > { %p5525_p8 = scmp.ne.s32.totalorder %s344_s16, %s5524_s28  ;;  %p5532_p11 = scmp.lt.s32.totalorder %s344_s16, %s344_s16 }
  0x3f   : > { %p5533_p12 = scmp.lt.s32.totalorder %s5524_s28, %s5524_s28 }
  0x40   : > { %p5527_p9 = pnand %p5525_p8, %p5853_p6 }
  0x41   : > { %5046 = dma.hbm_to_vmem [thread:$0]  (!%p5843_p5), %s8219_s5, 1024, %s5849_s29, [#allocation12], %s5736_s13, %s5736_s13, %s5737_s14  }
  0x42   : > { %p5528_p10 = pneg %p5527_p9  ;;  %p5534_p13 = por %p5533_p12, %p5532_p11 }
  0x44   : > { %p5535_p0 = pnand %p5534_p13, %p5528_p10 }
  0x46   : > { %5538 = shalt.err (!%p5535_p0)
}
  0x47   : > { %s8220_s4 = sld [smem:[#allocation147_spill]]  ;;  %s5550_s12 = scalar_lea.vmem %s373_s25, 1024 }
  0x48   : > { %p5551_p2 = scmp.ne.s32.totalorder %s373_s25, %s5550_s12  ;;  %p5558_p8 = scmp.lt.s32.totalorder %s373_s25, %s373_s25 }
  0x49   : > { %p5559_p9 = scmp.lt.s32.totalorder %s5550_s12, %s5550_s12 }
  0x4a   : > { %p5553_p4 = pnand %p5551_p2, %p5853_p6 }
  0x4b   : > { %p5560_p10 = por %p5559_p9, %p5558_p8 }
  0x4c   : > { %p5554_p7 = pneg %p5553_p4 }
  0x4d   : > { %5043 = dma.hbm_to_vmem [thread:$0]  (!%p5843_p5), %s8220_s4, 1024, %s344_s16, [#allocation9], %s5736_s13, %s5736_s13, %s5737_s14  }
  0x4e   : > { %p5561_p11 = pnand %p5560_p10, %p5554_p7 }
  0x50   : > { %5564 = shalt.err (!%p5561_p11)
}
  0x51   : > { %s8221_s7 = sld [smem:[#allocation149_spill]]  ;;  %s5740_s16 = smov [#allocation14]  }
  0x52   : > { %s388_s21 = sshll.u32 %s5740_s16, 4  ;;  %s389_s21 = int_to_ptr.vmem [resolvable:$true] %s388_s21 }
  0x53   : > { %s5576_s28 = scalar_lea.vmem %s389_s21, 1024  ;;  %p5584_p2 = scmp.lt.s32.totalorder %s389_s21, %s389_s21 }
  0x54   : > { %p5577_p12 = scmp.ne.s32.totalorder %s389_s21, %s5576_s28  ;;  %p5585_p4 = scmp.lt.s32.totalorder %s5576_s28, %s5576_s28 }
  0x56   : > { %p5579_p13 = pnand %p5577_p12, %p5853_p6  ;;  %p5586_p7 = por %p5585_p4, %p5584_p2 }
  0x57   : > { %5049 = dma.hbm_to_vmem [thread:$0]  (!%p5843_p5), %s8221_s7, 1024, %s373_s25, [#allocation12], %s5736_s13, %s5736_s13, %s5737_s14  }
  0x58   : > { %p5580_p0 = pneg %p5579_p13 }
  0x5a   : > { %p5587_p8 = pnand %p5586_p7, %p5580_p0 }
  0x5c   : > { %5590 = shalt.err (!%p5587_p8)
}
  0x5d   : > { %s8222_s9 = sld [smem:[#allocation150_spill]]  ;;  %s4602_s27 = sadd.s32 4294967294, %s5731_s20  }
  0x5e   : > { %s5929_s30 = sadd.s32 1, %s5731_s20   ;;  %s40_s12 = sadd.s32 1, %s5727_s19 }
  0x5f   : > { %s37_s22 = ssub.s32 %s5731_s20, %s5929_s30  ;;  %p47_p9 = scmp.ne.s32.totalorder %s5727_s19, %s5723_s18 }
  0x60   : > { %p38_p6 = scmp.eq.s32.totalorder %s37_s22, 0  ;;  %p48_p10 = scmp.eq.s32.totalorder %s5731_s20, 0 }
  0x61   : > { %p53_p11 = scmp.ne.s32.totalorder %s5723_s18, %s5719_s17  ;;  %p292_p13 = scmp.eq.s32.totalorder %s5830_s23, 3 }
  0x62   : > { %s5940_s15 = scalar_select %p38_p6, %s5727_s19, %s40_s12  }
  0x63   : > { %5052 = dma.hbm_to_vmem [thread:$0]  (!%p5843_p5), %s8222_s9, 1024, %s389_s21, [#allocation15], %s5736_s13, %s5736_s13, %s5737_s14  }
  0x64   : > { %8223 = sst [smem:[#allocation25_spill]] %s5940_s15  ;;  %p5942_p12 = por %p48_p10, %p47_p9 }
  0x65   : > { %p5948_p5 = por %p8009_p1, %p53_p11  ;;  %p298_p0 = scmp.eq.s32.totalorder %s4602_s27, 3 }
  0x66   : > { %p5070_p2 = scmp.lt.s32.totalorder %s5731_s20, 4  ;;  %s5955_s14 = sand.u32 1, %s5727_s19  }
  0x67   : > { %s8225_s13 = scalar_select %p5948_p5, 1, 0 }
  0x68   : > { %p5957_p4 = por %p292_p13, %p47_p9  ;;  %p5961_p7 = por %p298_p0, %p53_p11 }
  0x69   : > { %s4611_s28 = sshll.u32 %s5955_s14, 6  ;;  %s4684_s29 = sshll.u32 %s5731_s20, 10 }
  0x6a   : > { %s8226_s16 = scalar_select %p5957_p4, 1, 0 }
  0x6b   : > { %s8227_s21 = scalar_select %p5961_p7, 1, 0 }
  0x6c   : > { %s8228_s0 = sld [smem:[#allocation144_spill]]  ;;  %s409_s27 = scalar_lea.vmem [#allocation2], %s4611_s28 }
  0x6d   : > { %s416_s2 = sshll.u32 %s409_s27, 4  ;;  %p5976_p8 = pnand %p5070_p2, %p5942_p12  ;;  %s5972_s2 = int_to_ptr.vmem [resolvable:$true] %s416_s2 }
  0x6e   : > { %s406_s5 = scalar_lea.sflag [#allocation3], %s5955_s14 }
  0x6f   : > { %p5593_p9 = pneg %p5976_p8 }
  0x72   : > { %s5970_s12 = scalar_lea.hbm %s8228_s0, %s4684_s29  ;;  %s5596_s26 = scalar_lea.hbm %s8228_s0, 4096 }
  0x73   : > { %s5591_s7 = scalar_lea.hbm %s5970_s12, 1024  ;;  %p5597_p12 = scmp.lt.s32.totalorder %s5970_s12, %s8228_s0 }
  0x74   : > { %p5592_p6 = scmp.ne.s32.totalorder %s5970_s12, %s5591_s7  ;;  %p5598_p13 = scmp.lt.s32.totalorder %s5596_s26, %s5591_s7 }
  0x76   : > { %p5594_p10 = pnand %p5593_p9, %p5592_p6  ;;  %p5599_p0 = por %p5598_p13, %p5597_p12 }
  0x78   : > { %p5595_p11 = pneg %p5594_p10 }
  0x7a   : > { %p5600_p2 = pnand %p5599_p0, %p5595_p11 }
  0x7c   : > { %5603 = shalt.err (!%p5600_p2)
}
  0x7d   : > { %s5604_s27 = scalar_lea.vmem %s5972_s2, 1024  ;;  %s5741_s28 = smov [#allocation2]  }
  0x7e   : > { %p5605_p1 = scmp.ne.s32.totalorder %s5972_s2, %s5604_s27  ;;  %s5609_s29 = sshll.u32 %s5741_s28, 4  ;;  %s5610_s29 = int_to_ptr.vmem [resolvable:$false] %s5609_s29 }
  0x7f   : > { %s5611_s4 = scalar_lea.vmem %s5610_s29, 2048  ;;  %p5612_p7 = scmp.lt.s32.totalorder %s5972_s2, %s5610_s29 }
  0x80   : > { %p5607_p6 = pnand %p5605_p1, %p5593_p9  ;;  %p5613_p4 = scmp.lt.s32.totalorder %s5611_s4, %s5604_s27 }
  0x82   : > { %p5608_p10 = pneg %p5607_p6  ;;  %p5614_p5 = por %p5613_p4, %p5612_p7 }
  0x84   : > { %p5615_p12 = pnand %p5614_p5, %p5608_p10 }
  0x86   : > { %5618 = shalt.err (!%p5615_p12)
}
  0x87   : > { %s5742_s7 = smov 128   ;;  %s5743_s26 = smov 8  }
  0x88   : > { %5056 = dma.hbm_to_vmem [thread:$0]  (!%p5976_p8), %s5970_s12, 1024, %s5972_s2, %s406_s5, %s5742_s7, %s5742_s7, %s5743_s26  }
  0x89   : > { %s4614_s4 = sshll.u32 %s5955_s14, 9  ;;  %s4686_s25 = sshll.u32 %s5731_s20, 13 }
  0x8a   : > { %s6016_s28 = scalar_lea.hbm %s7998_s1, %s4686_s25  ;;  %s430_s29 = scalar_lea.vmem [#allocation5], %s4614_s4 }
  0x8b   : > { %s438_s0 = sshll.u32 %s430_s29, 4  ;;  %s8230_s9 = sand.u32 1, %s5731_s20   ;;  %s6018_s0 = int_to_ptr.vmem [resolvable:$true] %s438_s0 }
  0x8c   : > { %s427_s15 = scalar_lea.sflag [#allocation6], %s8230_s9  ;;  %s5619_s19 = scalar_lea.hbm %s6016_s28, 8192 }
  0x8d   : > { %p5620_p1 = scmp.ne.s32.totalorder %s6016_s28, %s5619_s19  ;;  %s5624_s14 = scalar_lea.hbm %s7998_s1, 32768 }
  0x8e   : > { %p5625_p7 = scmp.lt.s32.totalorder %s6016_s28, %s7998_s1  ;;  %p5626_p11 = scmp.lt.s32.totalorder %s5624_s14, %s5619_s19 }
  0x8f   : > { %p5622_p5 = pnand %p5620_p1, %p5593_p9 }
  0x90   : > { %p5627_p13 = por %p5626_p11, %p5625_p7 }
  0x91   : > { %p5623_p4 = pneg %p5622_p5 }
  0x93   : > { %p5628_p0 = pnand %p5627_p13, %p5623_p4 }
  0x95   : > { %5631 = shalt.err (!%p5628_p0)
}
  0x96   : > { %s5632_s9 = scalar_lea.vmem %s6018_s0, 8192  ;;  %s5744_s4 = smov [#allocation5]  }
  0x97   : > { %p5633_p2 = scmp.ne.s32.totalorder %s6018_s0, %s5632_s9  ;;  %s5637_s22 = sshll.u32 %s5744_s4, 4  ;;  %s5638_s22 = int_to_ptr.vmem [resolvable:$false] %s5637_s22 }
  0x98   : > { %s5639_s27 = scalar_lea.vmem %s5638_s22, 16384  ;;  %p5640_p12 = scmp.lt.s32.totalorder %s6018_s0, %s5638_s22 }
  0x99   : > { %p5635_p6 = pnand %p5633_p2, %p5593_p9  ;;  %p5641_p1 = scmp.lt.s32.totalorder %s5639_s27, %s5632_s9 }
  0x9b   : > { %p5636_p10 = pneg %p5635_p6  ;;  %p5642_p5 = por %p5641_p1, %p5640_p12 }
  0x9d   : > { %p5643_p7 = pnand %p5642_p5, %p5636_p10 }
  0x9f   : > { %5646 = shalt.err (!%p5643_p7)
}
  0xa0   : > { %5059 = dma.hbm_to_vmem [thread:$0]  (!%p5976_p8), %s6016_s28, 8192, %s6018_s0, %s427_s15, %s5742_s7, %s5742_s7, %s5743_s26  }
  0xa1   : > { %450 = sbr.rel (%p5835_p3) target bundleno = 1918 (0x77e), region = 64 }
  0xa6   : > { %s6050_s19 = sand.u32 1, %s5723_s18   ;;  %p8231_p9 = scmp.ne.s32.totalorder %s8225_s13, 0 }
  0xa7   : > { %s4619_s29 = sshll.u32 %s6050_s19, 6  ;;  %s453_s2 = scalar_lea.sflag [#allocation3], %s6050_s19 }
  0xa8   : > { %s6056_s3 = scalar_lea.vmem [#allocation2], %s4619_s29 }
  0xa9   : > { %5690 = dma.done.wait (%p8231_p9), %s453_s2, 1024  }
  0xaa   : > { %5692 = vsyncadd (%p8231_p9), %s453_s2, 4294966272  ;;  %s461_s0 = sand.u32 1, %s5830_s23   ;;  %s4620_s24 = sshll.u32 %s6050_s19, 9 }
  0xab   : > { %s462_s15 = scalar_lea.sflag [#allocation6], %s461_s0  ;;  %s6064_s7 = scalar_lea.vmem [#allocation5], %s4620_s24 }
  0xac   : > { %5694 = dma.done.wait (%p8231_p9), %s462_s15, 8192  }
  0xad   : > { %5696 = vsyncadd (%p8231_p9), %s462_s15, 4294959104  ;;  %p8232_p3 = scmp.eq.s32.totalorder %s5830_s23, 0 }
  0xaf   : > { %5698 = dma.done.wait (%p8232_p3), [#allocation6], 1024   ;;  %p8233_p8 = pmov %p8232_p3 }
  0xb0   : > { %p8234_p4 = pmov %p8232_p3 }
  0xb1   : > { %5700 = vsyncadd (%p8233_p8), [#allocation6], 4294966272 }
  0xb2   : > { %5702 = dma.done.wait (%p8234_p4), [#allocation9], 2048   ;;  %p8235_p11 = pmov %p8232_p3 }
  0xb3   : > { %p8236_p13 = pmov %p8232_p3 }
  0xb4   : > { %5704 = vsyncadd (%p8235_p11), [#allocation9], 4294965248 }
  0xb5   : > { %5706 = dma.done.wait (%p8236_p13), [#allocation12], 2048   ;;  %p8237_p0 = pmov %p8232_p3 }
  0xb7   : > { %5708 = vsyncadd (%p8237_p0), [#allocation12], 4294965248  ;;  %p8238_p2 = pmov %p8237_p0 }
  0xb8   : > { %p8239_p6 = pmov %p8237_p0 }
  0xb9   : > { %5710 = dma.done.wait (%p8238_p2), [#allocation15], 1024  }
  0xba   : > { %5712 = vsyncadd (%p8239_p6), [#allocation15], 4294966272  ;;  %v5123_v0 = vld [vmem:[#allocation8 + $0x38] sm:$0xff]   ;;  %v5124_v1 = vld [vmem:[#allocation8 + $0x30] sm:$0xff]   ;;  %v5745_v28 = vmov 1966171168   ;;  %v890_v30 = vlaneseq }
  0xbb   : > { %4788 = vmatprep.subr.bf16.mxu0 %v5123_v0  ;;  %v5125_v2 = vld [vmem:[#allocation8 + $0x28] sm:$0xff]   ;;  %v5126_v3 = vld [vmem:[#allocation8 + $0x20] sm:$0xff]   ;;  %v5127_v7 = vld [vmem:[#allocation8 + $0x18] sm:$0xff]   ;;  %v888_v29 = vunpack.c.l.s4 %v5745_v28  ;;  %vm3791_vm0 = vcmask 1041409   ;;  %vm3793_vm1 = vcmask 1042434   ;;  %vm3795_vm2 = vcmask 1043459  }
  0xbc   : > { %4789 = vmatpush3.bf16.msra.mxu0 %v5123_v0  ;;  %v537_v4 = vld [vmem:[%s6056_s3] sm:$0xff]  ;;  %v538_v5 = vld [vmem:[%s6056_s3 + $0x8] sm:$0xff]  ;;  %v5131_v8 = vld [vmem:[#allocation7 + $0x38] sm:$0xff]   ;;  %v891_v33 = vshrl.u32 %v890_v30, 7  ;;  %vm3797_vm3 = vcmask 1044484   ;;  %vm3799_vm4 = vcmask 1045509  }
  0xbd   : > { %4790 = vmatprep.subr.bf16.mxu0 %v5124_v1  ;;  %v545_v6 = vpack.c.bf16 %v538_v5, %v537_v4  ;;  %v5132_v9 = vld [vmem:[#allocation7 + $0x30] sm:$0xff]   ;;  %4812 = vmatprep.subr.bf16.mxu1 %v5131_v8  ;;  %v5133_v11 = vld [vmem:[#allocation7 + $0x28] sm:$0xff]   ;;  %v5134_v12 = vld [vmem:[#allocation7 + $0x20] sm:$0xff]   ;;  %v889_v32 = vunpack.c.0.s8 %v888_v29  ;;  %vm3801_vm5 = vcmask 1046534   ;;  %vm3803_vm6 = vcmask 1047559   ;;  %s532_s25 = scalar_lea.vmem [#allocation16], %s4619_s29 }
  0xbe   : > { %v5128_v10 = vld [vmem:[#allocation8 + $0x10] sm:$0xff]   ;;  %4813 = vmatpush3.bf16.msra.mxu1 %v5131_v8  ;;  %v5129_v13 = vld [vmem:[#allocation8 + $0x8] sm:$0xff]   ;;  %v5130_v14 = vld [vmem:[#allocation8] sm:$0xff]   ;;  %v6108_v48 = vsub.s32 0, %v891_v33  ;;  %s4449_s9 = sshll.u32 %s532_s25, 4  ;;  %s4687_s4 = sshll.u32 %s5830_s23, 10  ;;  %s7948_s9 = int_to_ptr.vmem [resolvable:$true] %s4449_s9 }
  0xbf   : > { %4804 = vmatprep.mubr.bf16.mxu0 %v545_v6  ;;  %4814 = vmatprep.subr.bf16.mxu1 %v5132_v9  ;;  %v539_v15 = vld [vmem:[%s6056_s3 + $0x10] sm:$0xff]  ;;  %v540_v16 = vld [vmem:[%s6056_s3 + $0x18] sm:$0xff]  ;;  %v541_v17 = vld [vmem:[%s6056_s3 + $0x20] sm:$0xff]  ;;  %v6094_v36 = vsub.s32 %v889_v32, %v891_v33  ;;  %s7954_s29 = scalar_lea.hbm %s8008_s11, %s4687_s4  ;;  %s4436_s23 = scalar_lea.sflag [#allocation4], %s6050_s19 }
  0xc0   : > { %4791 = vmatpush3.bf16.msra.mxu0 %v5124_v1  ;;  %v542_v18 = vld [vmem:[%s6056_s3 + $0x28] sm:$0xff]  ;;  %v546_v19 = vpack.c.bf16 %v540_v16, %v539_v15  ;;  %v543_v21 = vld [vmem:[%s6056_s3 + $0x30] sm:$0xff]  ;;  %v544_v22 = vld [vmem:[%s6056_s3 + $0x38] sm:$0xff]  ;;  %s5647_s2 = scalar_lea.vmem %s7948_s9, 1024  ;;  %p8668_p12 = scmp.ne.s32.totalorder %s8226_s16, 0 }
  0xc1   : > { %4792 = vmatprep.subr.bf16.mxu0 %v5125_v2  ;;  %v547_v20 = vpack.c.bf16 %v542_v18, %v541_v17  ;;  %v548_v23 = vpack.c.bf16 %v544_v22, %v543_v21  ;;  %v5135_v24 = vld [vmem:[#allocation7 + $0x18] sm:$0xff]   ;;  %v5136_v25 = vld [vmem:[#allocation7 + $0x10] sm:$0xff]   ;;  %v5137_v26 = vld [vmem:[#allocation7 + $0x8] sm:$0xff]   ;;  %p5648_p10 = scmp.ne.s32.totalorder %s7948_s9, %s5647_s2 }
  0xc2   : > { %4815 = vmatpush3.bf16.msra.mxu1 %v5132_v9  ;;  %v5138_v27 = vld [vmem:[#allocation7] sm:$0xff]   ;;  %v6105_v46 = vld [vmem:[%s6064_s7 + $0x8] sm:$0xff]  ;;  %v6111_v50 = vld [vmem:[%s6064_s7 + $0x10] sm:$0xff] }
  0xc3   : > { %4816 = vmatprep.subr.bf16.mxu1 %v5133_v11  ;;  %v6102_v45 = vld [vmem:[%s6064_s7] sm:$0xff]  ;;  %8241 = vst [vmem:[#allocation27_spill] sm:$0xff] %v6105_v46  ;;  %8242 = vst [vmem:[#allocation28_spill] sm:$0xff] %v6111_v50  ;;  %v6115_v53 = vld [vmem:[%s6064_s7 + $0x18] sm:$0xff]  ;;  %v752_v55 = vunpack.c.l.bf16 %v6105_v46  ;;  %v754_v62 = vunpack.c.l.bf16 %v6111_v50  ;;  %p5649_p1 = pnand %p5648_p10, %p8668_p12 }
  0xc4   : > { %4793 = vmatpush3.bf16.msra.mxu0 %v5125_v2  ;;  %8240 = vst [vmem:[#allocation26_spill] sm:$0xff] %v6102_v45  ;;  %8243 = vst [vmem:[#allocation29_spill] sm:$0xff] %v6115_v53  ;;  %v750_v54 = vunpack.c.l.bf16 %v6102_v45  ;;  %v6121_v58 = vld [vmem:[%s6064_s7 + $0x20] sm:$0xff]  ;;  %v6126_v63 = vld [vmem:[%s6064_s7 + $0x28] sm:$0xff]  ;;  %v756_v2 = vunpack.c.l.bf16 %v6115_v53 }
  0xc5   : > { %4794 = vmatprep.subr.bf16.mxu0 %v5126_v3  ;;  %8244 = vst [vmem:[#allocation30_spill] sm:$0xff] %v6121_v58  ;;  %8245 = vst [vmem:[#allocation31_spill] sm:$0xff] %v6126_v63  ;;  %v758_v4 = vunpack.c.l.bf16 %v6121_v58  ;;  %v760_v8 = vunpack.c.l.bf16 %v6126_v63  ;;  %v6136_v9 = vld [vmem:[%s6064_s7 + $0x38] sm:$0xff]  ;;  %p5650_p5 = pneg %p5649_p1 }
  0xc6   : > { %4817 = vmatpush3.bf16.msra.mxu1 %v5133_v11  ;;  %8246 = vst [vmem:[#allocation32_spill] sm:$0xff] %v6136_v9  ;;  %v764_v21 = vunpack.c.l.bf16 %v6136_v9 }
  0xc7   : > { %4818 = vmatprep.subr.bf16.mxu1 %v5134_v12 }
  0xc8   : > { %4795 = vmatpush3.bf16.msra.mxu0 %v5126_v3 }
  0xc9   : > { %4796 = vmatprep.subr.bf16.mxu0 %v5127_v7 }
  0xca   : > { %4819 = vmatpush3.bf16.msra.mxu1 %v5134_v12 }
  0xcb   : > { %4820 = vmatprep.subr.bf16.mxu1 %v5135_v24 }
  0xcc   : > { %4797 = vmatpush3.bf16.msra.mxu0 %v5127_v7 }
  0xcd   : > { %4798 = vmatprep.subr.bf16.mxu0 %v5128_v10 }
  0xce   : > { %4821 = vmatpush3.bf16.msra.mxu1 %v5135_v24 }
  0xcf   : > { %4822 = vmatprep.subr.bf16.mxu1 %v5136_v25 }
  0xd0   : > { %4799 = vmatpush3.bf16.msra.mxu0 %v5128_v10 }
  0xd1   : > { %4800 = vmatprep.subr.bf16.mxu0 %v5129_v13 }
  0xd2   : > { %4823 = vmatpush3.bf16.msra.mxu1 %v5136_v25 }
  0xd3   : > { %4824 = vmatprep.subr.bf16.mxu1 %v5137_v26 }
  0xd4   : > { %4801 = vmatpush3.bf16.msra.mxu0 %v5129_v13 }
  0xd5   : > { %4802 = vmatprep.subr.bf16.mxu0 %v5130_v14 }
  0xd6   : > { %4825 = vmatpush3.bf16.msra.mxu1 %v5137_v26  ;;  %v6151_v26 = vld [vmem:[%s6064_s7 + $0x40] sm:$0xff] }
  0xd7   : > { %4826 = vmatprep.subr.bf16.mxu1 %v5138_v27  ;;  %8249 = vst [vmem:[#allocation35_spill] sm:$0xff] %v6151_v26 }
  0xd8   : > { %4803 = vmatpush3.bf16.msra.mxu0 %v5130_v14  ;;  %v6141_v14 = vld [vmem:[%s6064_s7 + $0x48] sm:$0xff] }
  0xd9   : > { %8247 = vst [vmem:[#allocation33_spill] sm:$0xff] %v6141_v14 }
  0xda   : > { %4827 = vmatpush3.bf16.msra.mxu1 %v5138_v27  ;;  %v768_v27 = vunpack.c.l.bf16 %v6141_v14 }
  0xdb   : > { %4805 = vmatmul.mubr.bf16.vlgmr.msra.gmra.mxu0 %v546_v19 }
  0xdc   : > { %4808 = vmatprep.mubr.bf16.mxu0 %v547_v20  ;;  %v6147_v20 = vld [vmem:[%s6064_s7 + $0x30] sm:$0xff] }
  0xdd   : > { %8248 = vst [vmem:[#allocation34_spill] sm:$0xff] %v6147_v20 }
  0xe3   : > { %4809 = vmatmul.mubr.bf16.gmra.mxu0 %v548_v23 }
 0x19b   : > { %v4806_v31 = vpop.f32.mrf.mxu0 }
 0x19c   : > { %v680_v28 = vmul.f32 0.125, %v4806_v31 }
 0x19d   : > { %v647_v34 = vpop.f32.mrf.mxu0 }
 0x19e   : > { %v678_v35 = vmul.f32 0.125, %v647_v34  ;;  %v762_v34 = vunpack.c.l.bf16 %v6147_v20 }
 0x19f   : > { %v6096_v37 = vpop.f32.mrf.mxu0 }
 0x1a0   : > { %v886_v38 = vcombine.high %v678_v35, %v678_v35  ;;  %v893_v39 = vrot.slane %v678_v35, %v6094_v36 }
 0x1a1   : > { %v650_v42 = vpop.f32.mrf.mxu0 }
 0x1a2   : > { %v900_v40 = vrot.slane %v886_v38, %v6094_v36  ;;  %v901_v41 = vcombine.high %v893_v39, %v893_v39  ;;  %v909_v43 = vrot.slane %v893_v39, %v6094_v36  ;;  %v679_v44 = vmul.f32 0.125, %v650_v42 }
 0x1a3   : > { %v766_v39 = vunpack.c.l.bf16 %v6151_v26 }
 0x1a4   : > { %v923_v47 = vrot.slane %v901_v41, %v6094_v36  ;;  %v902_v49 = vcombine.high %v900_v40, %v900_v40  ;;  %v931_v51 = vcombine.high %v909_v43, %v909_v43  ;;  %v942_v52 = vrot.slane %v679_v44, %v6094_v36 }
 0x1a5   : > { %v1281_v57 = vrot.slane %v909_v43, %v6108_v48  ;;  %v916_v59 = vrot.slane %v900_v40, %v6094_v36  ;;  %v935_v60 = vcombine.high %v679_v44, %v679_v44  ;;  %v991_v41 = vrot.slane %v680_v28, %v6094_v36  ;;  %v6163_v44 = vld [vmem:[%s6064_s7 + $0x58] sm:$0xff] }
 0x1a6   : > { %v933_v56 = vcombine.high %v923_v47, %v923_v47  ;;  %v950_v61 = vcombine.high %v942_v52, %v942_v52  ;;  %v930_v0 = vrot.slane %v902_v49, %v6094_v36  ;;  %v1285_v1 = vrot.slane %v923_v47, %v6108_v48  ;;  %8250 = vst [vmem:[#allocation36_spill] sm:$0xff] %v6163_v44  ;;  %v6166_v47 = vld [vmem:[%s6064_s7 + $0x68] sm:$0xff] }
 0x1a7   : > { %v1289_v3 = vrot.slane %v931_v51, %v6108_v48  ;;  %v1598_v5 = vmul.f32 %v1281_v57, %v750_v54  ;;  %v932_v10 = vcombine.high %v916_v59, %v916_v59  ;;  %v949_v11 = vrot.slane %v935_v60, %v6094_v36  ;;  %8251 = vst [vmem:[#allocation37_spill] sm:$0xff] %v6166_v47  ;;  %v6175_v60 = vld [vmem:[%s6064_s7 + $0x60] sm:$0xff] }
 0x1a8   : > { %v1599_v6 = vmul.f32 %v1285_v1, %v752_v55  ;;  %v1293_v7 = vrot.slane %v933_v56, %v6108_v48  ;;  %v972_v12 = vrot.slane %v950_v61, %v6094_v36  ;;  %v1297_v17 = vrot.slane %v916_v59, %v6108_v48  ;;  %v6170_v55 = vld [vmem:[%s6064_s7 + $0x50] sm:$0xff]  ;;  %8253 = vst [vmem:[#allocation39_spill] sm:$0xff] %v6175_v60 }
 0x1a9   : > { %v1600_v13 = vmul.f32 %v1289_v3, %v754_v62  ;;  %v1301_v18 = vrot.slane %v930_v0, %v6108_v48  ;;  %v958_v19 = vrot.slane %v942_v52, %v6094_v36  ;;  %v934_v22 = vcombine.high %v930_v0, %v930_v0  ;;  %8252 = vst [vmem:[#allocation38_spill] sm:$0xff] %v6170_v55 }
 0x1aa   : > { %v1662_v15 = vpack.c.bf16 %v1599_v6, %v1598_v5  ;;  %v1601_v16 = vmul.f32 %v1293_v7, %v756_v2  ;;  %v1602_v24 = vmul.f32 %v1297_v17, %v758_v4  ;;  %v951_v29 = vcombine.high %v949_v11, %v949_v11 }
 0x1ab   : > { %v1603_v25 = vmul.f32 %v1301_v18, %v760_v8  ;;  %v1309_v30 = vrot.slane %v934_v22, %v6108_v48  ;;  %v1317_v32 = vrot.slane %v972_v12, %v6108_v48  ;;  %v1305_v35 = vrot.slane %v932_v10, %v6108_v48 }
 0x1ac   : > { %4828 = vmatprep.mubr.bf16.mxu1 %v1662_v15  ;;  %v1663_v23 = vpack.c.bf16 %v1601_v16, %v1600_v13  ;;  %v1313_v38 = vrot.slane %v958_v19, %v6108_v48  ;;  %v982_v40 = vcombine.high %v972_v12, %v972_v12  ;;  %v979_v42 = vrot.slane %v951_v29, %v6094_v36  ;;  %v6186_v13 = vld [vmem:[%s6064_s7 + $0x78] sm:$0xff]  ;;  %v6189_v15 = vld [vmem:[%s6064_s7 + $0x88] sm:$0xff] }
 0x1ad   : > { %v1664_v33 = vpack.c.bf16 %v1603_v25, %v1602_v24  ;;  %v1605_v31 = vmul.f32 %v1309_v30, %v764_v21  ;;  %v1607_v43 = vmul.f32 %v1317_v32, %v768_v27  ;;  %v980_v49 = vcombine.high %v958_v19, %v958_v19  ;;  %8254 = vst [vmem:[#allocation40_spill] sm:$0xff] %v6186_v13  ;;  %v6193_v21 = vld [vmem:[%s6064_s7 + $0x70] sm:$0xff]  ;;  %v6198_v25 = vld [vmem:[%s6064_s7 + $0x80] sm:$0xff] }
 0x1ae   : > { %4829 = vmatmul.mubr.bf16.vlgmr.msra.gmra.mxu1 %v1663_v23  ;;  %v1604_v51 = vmul.f32 %v1305_v35, %v762_v34  ;;  %v965_v52 = vrot.slane %v949_v11, %v6094_v36  ;;  %v1606_v54 = vmul.f32 %v1313_v38, %v766_v39  ;;  %v772_v57 = vunpack.c.l.bf16 %v6163_v44  ;;  %8255 = vst [vmem:[#allocation41_spill] sm:$0xff] %v6193_v21 }
 0x1af   : > { %4832 = vmatprep.mubr.bf16.mxu1 %v1664_v33  ;;  %v1325_v59 = vrot.slane %v982_v40, %v6108_v48  ;;  %v776_v61 = vunpack.c.l.bf16 %v6166_v47  ;;  %v984_v62 = vcombine.high %v680_v28, %v680_v28  ;;  %v999_v0 = vcombine.high %v991_v41, %v991_v41 }
 0x1b0   : > { %v1665_v56 = vpack.c.bf16 %v1605_v31, %v1604_v51  ;;  %v1666_v1 = vpack.c.bf16 %v1607_v43, %v1606_v54  ;;  %v1333_v2 = vrot.slane %v979_v42, %v6108_v48  ;;  %v770_v3 = vunpack.c.l.bf16 %v6170_v55  ;;  %v6213_v43 = vld [vmem:[%s6064_s7 + $0xa8] sm:$0xff] }
 0x1b1   : > { %v1321_v4 = vrot.slane %v980_v49, %v6108_v48  ;;  %v774_v5 = vunpack.c.l.bf16 %v6175_v60  ;;  %v1329_v6 = vrot.slane %v965_v52, %v6108_v48  ;;  %v1609_v7 = vmul.f32 %v1325_v59, %v772_v57  ;;  %8257 = vst [vmem:[#allocation43_spill] sm:$0xff] %v6213_v43 }
 0x1b2   : > { %v983_v8 = vcombine.high %v979_v42, %v979_v42  ;;  %v998_v10 = vrot.slane %v984_v62, %v6094_v36  ;;  %v1021_v11 = vrot.slane %v999_v0, %v6094_v36  ;;  %v1611_v12 = vmul.f32 %v1333_v2, %v776_v61  ;;  %v6210_v42 = vld [vmem:[%s6064_s7 + $0x98] sm:$0xff]  ;;  %v6222_v62 = vld [vmem:[%s6064_s7 + $0xa0] sm:$0xff] }
 0x1b3   : > { %v981_v16 = vcombine.high %v965_v52, %v965_v52  ;;  %v1608_v17 = vmul.f32 %v1321_v4, %v770_v3  ;;  %v1007_v18 = vrot.slane %v991_v41, %v6094_v36  ;;  %v1610_v19 = vmul.f32 %v1329_v6, %v774_v5  ;;  %8256 = vst [vmem:[#allocation42_spill] sm:$0xff] %v6210_v42 }
 0x1b4   : > { %v780_v23 = vunpack.c.l.bf16 %v6186_v13  ;;  %v1341_v24 = vrot.slane %v983_v8, %v6108_v48  ;;  %v784_v27 = vunpack.c.l.bf16 %v6189_v15  ;;  %v1000_v28 = vcombine.high %v998_v10, %v998_v10  ;;  %8258 = vst [vmem:[#allocation44_spill] sm:$0xff] %v6222_v62 }
 0x1b5   : > { %v1667_v22 = vpack.c.bf16 %v1609_v7, %v1608_v17  ;;  %v681_v29 = vmul.f32 0.125, %v6096_v37  ;;  %v1668_v30 = vpack.c.bf16 %v1611_v12, %v1610_v19  ;;  %v1349_v32 = vrot.slane %v1021_v11, %v6108_v48  ;;  %v6228_v7 = vpop.f32.mrf.mxu0  ;;  %v6235_v19 = vld [vmem:[%s6064_s7 + $0xb8] sm:$0xff] }
 0x1b6   : > { %4833 = vmatmul.mubr.bf16.gmra.mxu1 %v1665_v56  ;;  %v778_v33 = vunpack.c.l.bf16 %v6193_v21  ;;  %v1337_v34 = vrot.slane %v981_v16, %v6108_v48  ;;  %v1345_v35 = vrot.slane %v1007_v18, %v6108_v48  ;;  %v782_v38 = vunpack.c.l.bf16 %v6198_v25  ;;  %v6217_v56 = vld [vmem:[%s6064_s7 + $0x90] sm:$0xff]  ;;  %8259 = vst [vmem:[#allocation45_spill] sm:$0xff] %v6235_v19 }
 0x1b7   : > { %4836 = vmatprep.mubr.bf16.mxu1 %v1666_v1  ;;  %v1031_v39 = vcombine.high %v1021_v11, %v1021_v11  ;;  %v1613_v40 = vmul.f32 %v1341_v24, %v780_v23  ;;  %v1028_v31 = vrot.slane %v1000_v28, %v6094_v36  ;;  %v1040_v37 = vrot.slane %v681_v29, %v6094_v36  ;;  %v663_v24 = vpop.f32.mrf.mxu0 }
 0x1b8   : > { %v1615_v41 = vmul.f32 %v1349_v32, %v784_v27  ;;  %v1029_v49 = vcombine.high %v1007_v18, %v1007_v18  ;;  %v1612_v51 = vmul.f32 %v1337_v34, %v778_v33  ;;  %v1014_v52 = vrot.slane %v998_v10, %v6094_v36  ;;  %v6238_v27 = vld [vmem:[%s6064_s7 + $0xc8] sm:$0xff]  ;;  %v6242_v32 = vld [vmem:[%s6064_s7 + $0xb0] sm:$0xff] }
 0x1b9   : > { %v1614_v54 = vmul.f32 %v1345_v35, %v782_v38  ;;  %v788_v59 = vunpack.c.l.bf16 %v6210_v42  ;;  %v1357_v61 = vrot.slane %v1031_v39, %v6108_v48  ;;  %v792_v0 = vunpack.c.l.bf16 %v6213_v43  ;;  %8260 = vst [vmem:[#allocation46_spill] sm:$0xff] %v6242_v32  ;;  %v6247_v38 = vld [vmem:[%s6064_s7 + $0xc0] sm:$0xff] }
 0x1ba   : > { %v1669_v57 = vpack.c.bf16 %v1613_v40, %v1612_v51  ;;  %v1033_v1 = vcombine.high %v681_v29, %v681_v29  ;;  %v1048_v2 = vcombine.high %v1040_v37, %v1040_v37  ;;  %v1365_v4 = vrot.slane %v1028_v31, %v6108_v48 }
 0x1bb   : > { %v1670_v3 = vpack.c.bf16 %v1615_v41, %v1614_v54  ;;  %v786_v5 = vunpack.c.l.bf16 %v6217_v56  ;;  %v1353_v6 = vrot.slane %v1029_v49, %v6108_v48  ;;  %v790_v8 = vunpack.c.l.bf16 %v6222_v62 }
 0x1bc   : > { %v1361_v10 = vrot.slane %v1014_v52, %v6108_v48  ;;  %v1617_v11 = vmul.f32 %v1357_v61, %v788_v59  ;;  %v1032_v12 = vcombine.high %v1028_v31, %v1028_v31  ;;  %v1047_v16 = vrot.slane %v1033_v1, %v6094_v36  ;;  %v6258_v1 = vld [vmem:[%s6064_s7 + $0xd8] sm:$0xff] }
 0x1bd   : > { %v1070_v17 = vrot.slane %v1048_v2, %v6094_v36  ;;  %v1619_v18 = vmul.f32 %v1365_v4, %v792_v0  ;;  %v1616_v23 = vmul.f32 %v1353_v6, %v786_v5  ;;  %v1056_v28 = vrot.slane %v1040_v37, %v6094_v36  ;;  %8261 = vst [vmem:[#allocation47_spill] sm:$0xff] %v6258_v1  ;;  %v6261_v4 = vld [vmem:[%s6064_s7 + $0xe8] sm:$0xff] }
 0x1be   : > { %4837 = vmatmul.mubr.bf16.gmra.mxu1 %v1667_v22  ;;  %v1030_v22 = vcombine.high %v1014_v52, %v1014_v52  ;;  %v1618_v29 = vmul.f32 %v1361_v10, %v790_v8  ;;  %v796_v34 = vunpack.c.l.bf16 %v6235_v19  ;;  %v1373_v35 = vrot.slane %v1032_v12, %v6108_v48  ;;  %8262 = vst [vmem:[#allocation48_spill] sm:$0xff] %v6261_v4  ;;  %v6265_v10 = vld [vmem:[%s6064_s7 + $0xd0] sm:$0xff] }
 0x1bf   : > { %4840 = vmatprep.mubr.bf16.mxu1 %v1668_v30  ;;  %v682_v30 = vmul.f32 0.125, %v663_v24  ;;  %v1671_v33 = vpack.c.bf16 %v1617_v11, %v1616_v23  ;;  %v1049_v39 = vcombine.high %v1047_v16, %v1047_v16  ;;  %v800_v31 = vunpack.c.l.bf16 %v6238_v27 }
 0x1c0   : > { %v1672_v40 = vpack.c.bf16 %v1619_v18, %v1618_v29  ;;  %v1381_v41 = vrot.slane %v1070_v17, %v6108_v48  ;;  %v794_v37 = vunpack.c.l.bf16 %v6242_v32  ;;  %v1369_v49 = vrot.slane %v1030_v22, %v6108_v48  ;;  %v6270_v18 = vld [vmem:[%s6064_s7 + $0xe0] sm:$0xff] }
 0x1c1   : > { %v1377_v51 = vrot.slane %v1056_v28, %v6108_v48  ;;  %v1089_v52 = vrot.slane %v682_v30, %v6094_v36  ;;  %v798_v54 = vunpack.c.l.bf16 %v6247_v38  ;;  %v1621_v59 = vmul.f32 %v1373_v35, %v796_v34  ;;  %8263 = vst [vmem:[#allocation49_spill] sm:$0xff] %v6270_v18 }
 0x1c2   : > { %v1077_v61 = vrot.slane %v1049_v39, %v6094_v36  ;;  %v1623_v0 = vmul.f32 %v1381_v41, %v800_v31  ;;  %v1078_v2 = vcombine.high %v1056_v28, %v1056_v28  ;;  %v1063_v5 = vrot.slane %v1047_v16, %v6094_v36  ;;  %v6274_v16 = vpop.f32.mrf.mxu0 }
 0x1c3   : > { %v1097_v6 = vcombine.high %v1089_v52, %v1089_v52  ;;  %v1622_v8 = vmul.f32 %v1377_v51, %v798_v54  ;;  %v804_v12 = vunpack.c.l.bf16 %v6258_v1  ;;  %v1082_v22 = vcombine.high %v682_v30, %v682_v30  ;;  %v6290_v54 = vld [vmem:[%s6064_s7 + $0xf8] sm:$0xff] }
 0x1c4   : > { %v808_v24 = vunpack.c.l.bf16 %v6261_v4  ;;  %v1397_v28 = vrot.slane %v1077_v61, %v6108_v48  ;;  %v802_v29 = vunpack.c.l.bf16 %v6265_v10  ;;  %v1105_v34 = vrot.slane %v1089_v52, %v6094_v36  ;;  %8266 = vst [vmem:[#allocation52_spill] sm:$0xff] %v6290_v54 }
 0x1c5   : > { %v1674_v23 = vpack.c.bf16 %v1623_v0, %v1622_v8  ;;  %v1119_v35 = vrot.slane %v1097_v6, %v6094_v36  ;;  %v806_v30 = vunpack.c.l.bf16 %v6270_v18  ;;  %v1393_v39 = vrot.slane %v1063_v5, %v6108_v48  ;;  %v6295_v6 = vld [vmem:[%s6064_s7 + $0xf0] sm:$0xff] }
 0x1c6   : > { %4841 = vmatmul.mubr.bf16.gmra.mxu1 %v1669_v57  ;;  %v1080_v57 = vcombine.high %v1070_v17, %v1070_v17  ;;  %v1081_v41 = vcombine.high %v1077_v61, %v1077_v61  ;;  %v1627_v51 = vmul.f32 %v1397_v28, %v808_v24  ;;  %v1079_v52 = vcombine.high %v1063_v5, %v1063_v5 }
 0x1c7   : > { %4844 = vmatprep.mubr.bf16.mxu1 %v1670_v3  ;;  %v1620_v3 = vmul.f32 %v1369_v49, %v794_v37  ;;  %v6286_v37 = vld [vmem:[%s6064_s7 + $0x108] sm:$0xff]  ;;  %v1096_v49 = vrot.slane %v1082_v22, %v6094_v36  ;;  %8267 = vst [vmem:[#allocation53_spill] sm:$0xff] %v6295_v6  ;;  %v1413_v61 = vrot.slane %v1119_v35, %v6108_v48  ;;  %v810_v24 = vunpack.c.l.bf16 %v6295_v6 }
 0x1c8   : > { %v1389_v17 = vrot.slane %v1080_v57, %v6108_v48  ;;  %8265 = vst [vmem:[#allocation51_spill] sm:$0xff] %v6286_v37  ;;  %v666_v57 = vpop.f32.mrf.mxu0  ;;  %v816_v8 = vunpack.c.l.bf16 %v6286_v37  ;;  %v1405_v5 = vrot.slane %v1081_v41, %v6108_v48  ;;  %v1401_v28 = vrot.slane %v1079_v52, %v6108_v48  ;;  %v6307_v37 = vld [vmem:[%s6064_s7 + $0x118] sm:$0xff]  ;;  %v6310_v41 = vld [vmem:[%s6064_s7 + $0x120] sm:$0xff]  ;;  %v6316_v52 = vld [vmem:[%s6064_s7 + $0x128] sm:$0xff] }
 0x1c9   : > { %v1673_v11 = vpack.c.bf16 %v1621_v59, %v1620_v3  ;;  %v1626_v3 = vmul.f32 %v1393_v39, %v806_v30  ;;  %v683_v22 = vmul.f32 0.125, %v666_v57  ;;  %v1127_v30 = vcombine.high %v1105_v34, %v1105_v34  ;;  %8269 = vst [vmem:[#allocation55_spill] sm:$0xff] %v6307_v37  ;;  %8270 = vst [vmem:[#allocation56_spill] sm:$0xff] %v6310_v41 }
 0x1ca   : > { %v1625_v31 = vmul.f32 %v1389_v17, %v804_v12  ;;  %v812_v12 = vunpack.c.l.bf16 %v6290_v54  ;;  %v1098_v17 = vcombine.high %v1096_v49, %v1096_v49  ;;  %v1129_v39 = vcombine.high %v1119_v35, %v1119_v35  ;;  %8271 = vst [vmem:[#allocation57_spill] sm:$0xff] %v6316_v52 }
 0x1cb   : > { %v820_v35 = vunpack.c.l.bf16 %v6307_v37 }
 0x1cc   : > { %v1126_v57 = vrot.slane %v1098_v17, %v6094_v36  ;;  %v824_v17 = vunpack.c.l.bf16 %v6316_v52 }
 0x1ce   : > { %4845 = vmatmul.mubr.bf16.gmra.mxu1 %v1671_v33  ;;  %v1385_v33 = vrot.slane %v1078_v2, %v6108_v48  ;;  %v1409_v2 = vrot.slane %v1105_v34, %v6108_v48 }
 0x1cf   : > { %4848 = vmatprep.mubr.bf16.mxu1 %v1672_v40  ;;  %v6283_v40 = vld [vmem:[%s6064_s7 + $0x100] sm:$0xff] }
 0x1d0   : > { %8264 = vst [vmem:[#allocation50_spill] sm:$0xff] %v6283_v40  ;;  %v1624_v59 = vmul.f32 %v1385_v33, %v802_v29  ;;  %v814_v0 = vunpack.c.l.bf16 %v6283_v40  ;;  %v1631_v33 = vmul.f32 %v1413_v61, %v816_v8  ;;  %v1131_v8 = vcombine.high %v683_v22, %v683_v22 }
 0x1d2   : > { %v1630_v29 = vmul.f32 %v1409_v2, %v814_v0  ;;  %v822_v2 = vunpack.c.l.bf16 %v6310_v41 }
 0x1d4   : > { %v1678_v0 = vpack.c.bf16 %v1631_v33, %v1630_v29  ;;  %v1145_v29 = vrot.slane %v1131_v8, %v6094_v36 }
 0x1d6   : > { %4849 = vmatmul.mubr.bf16.gmra.mxu1 %v1673_v11  ;;  %v1675_v11 = vpack.c.bf16 %v1625_v31, %v1624_v59  ;;  %v1629_v31 = vmul.f32 %v1405_v5, %v812_v12  ;;  %v6304_v59 = vld [vmem:[%s6064_s7 + $0x110] sm:$0xff]  ;;  %v1421_v12 = vrot.slane %v1129_v39, %v6108_v48  ;;  %v1130_v39 = vcombine.high %v1126_v57, %v1126_v57 }
 0x1d7   : > { %4852 = vmatprep.mubr.bf16.mxu1 %v1674_v23  ;;  %v1676_v23 = vpack.c.bf16 %v1627_v51, %v1626_v3  ;;  %8268 = vst [vmem:[#allocation54_spill] sm:$0xff] %v6304_v59  ;;  %v1112_v51 = vrot.slane %v1096_v49, %v6094_v36  ;;  %v1138_v3 = vrot.slane %v683_v22, %v6094_v36  ;;  %v818_v34 = vunpack.c.l.bf16 %v6304_v59 }
 0x1d8   : > { %v1417_v49 = vrot.slane %v1127_v30, %v6108_v48  ;;  %v1633_v33 = vmul.f32 %v1421_v12, %v820_v35  ;;  %v6331_v30 = vld [vmem:[%s6064_s7 + $0x138] sm:$0xff] }
 0x1d9   : > { %v1146_v5 = vcombine.high %v1138_v3, %v1138_v3  ;;  %8273 = vst [vmem:[#allocation59_spill] sm:$0xff] %v6331_v30  ;;  %v1154_v52 = vrot.slane %v1138_v3, %v6094_v36  ;;  %v1437_v3 = vrot.slane %v1130_v39, %v6108_v48  ;;  %v6355_v39 = vld [vmem:[%s6064_s7 + $0x158] sm:$0xff] }
 0x1da   : > { %v1632_v22 = vmul.f32 %v1417_v49, %v818_v34  ;;  %v828_v34 = vunpack.c.l.bf16 %v6331_v30  ;;  %v1147_v49 = vcombine.high %v1145_v29, %v1145_v29  ;;  %8277 = vst [vmem:[#allocation63_spill] sm:$0xff] %v6355_v39 }
 0x1db   : > { %v1168_v41 = vrot.slane %v1146_v5, %v6094_v36  ;;  %v1441_v12 = vrot.slane %v1154_v52, %v6108_v48 }
 0x1dd   : > { %v1445_v5 = vrot.slane %v1168_v41, %v6108_v48 }
 0x1de   : > { %4853 = vmatmul.mubr.bf16.gmra.mxu1 %v1675_v11  ;;  %v1628_v11 = vmul.f32 %v1401_v28, %v810_v24  ;;  %v1429_v24 = vrot.slane %v1126_v57, %v6108_v48  ;;  %v1128_v28 = vcombine.high %v1112_v51, %v1112_v51  ;;  %v1679_v57 = vpack.c.bf16 %v1633_v33, %v1632_v22  ;;  %v6352_v33 = vld [vmem:[%s6064_s7 + $0x150] sm:$0xff] }
 0x1df   : > { %4856 = vmatprep.mubr.bf16.mxu1 %v1676_v23  ;;  %v1425_v23 = vrot.slane %v1112_v51, %v6108_v48  ;;  %v684_v51 = vmul.f32 0.125, %v6228_v7  ;;  %8276 = vst [vmem:[#allocation62_spill] sm:$0xff] %v6352_v33 }
 0x1e0   : > { %v1677_v61 = vpack.c.bf16 %v1629_v31, %v1628_v11  ;;  %v6328_v31 = vld [vmem:[%s6064_s7 + $0x130] sm:$0xff]  ;;  %v6334_v11 = vld [vmem:[%s6064_s7 + $0x140] sm:$0xff]  ;;  %v1635_v59 = vmul.f32 %v1429_v24, %v824_v17  ;;  %v1433_v8 = vrot.slane %v1128_v28, %v6108_v48  ;;  %v1178_v24 = vcombine.high %v1168_v41, %v1168_v41 }
 0x1e1   : > { %8272 = vst [vmem:[#allocation58_spill] sm:$0xff] %v6328_v31  ;;  %8274 = vst [vmem:[#allocation60_spill] sm:$0xff] %v6334_v11  ;;  %v1634_v37 = vmul.f32 %v1425_v23, %v822_v2  ;;  %v830_v35 = vunpack.c.l.bf16 %v6334_v11  ;;  %v1187_v17 = vrot.slane %v684_v51, %v6094_v36  ;;  %v1176_v23 = vcombine.high %v1154_v52, %v1154_v52 }
 0x1e2   : > { %v1637_v28 = vmul.f32 %v1437_v3, %v828_v34  ;;  %v1161_v11 = vrot.slane %v1145_v29, %v6094_v36  ;;  %v834_v41 = vunpack.c.l.bf16 %v6352_v33  ;;  %v836_v52 = vunpack.c.l.bf16 %v6355_v39  ;;  %v6381_v39 = vld [vmem:[%s6064_s7 + $0x180] sm:$0xff] }
 0x1e3   : > { %v1680_v7 = vpack.c.bf16 %v1635_v59, %v1634_v37  ;;  %v1175_v37 = vrot.slane %v1147_v49, %v6094_v36  ;;  %v1638_v59 = vmul.f32 %v1441_v12, %v830_v35  ;;  %v1453_v29 = vrot.slane %v1178_v24, %v6108_v48  ;;  %8282 = vst [vmem:[#allocation68_spill] sm:$0xff] %v6381_v39 }
 0x1e4   : > { %v1195_v3 = vcombine.high %v1187_v17, %v1187_v17 }
 0x1e5   : > { %v1461_v49 = vrot.slane %v1175_v37, %v6108_v48  ;;  %v1179_v24 = vcombine.high %v1175_v37, %v1175_v37 }
 0x1e6   : > { %4857 = vmatmul.mubr.bf16.gmra.mxu1 %v1677_v61  ;;  %v6339_v61 = vld [vmem:[%s6064_s7 + $0x148] sm:$0xff] }
 0x1e7   : > { %4860 = vmatprep.mubr.bf16.mxu1 %v1678_v0  ;;  %8275 = vst [vmem:[#allocation61_spill] sm:$0xff] %v6339_v61  ;;  %v826_v0 = vunpack.c.l.bf16 %v6328_v31  ;;  %v832_v2 = vunpack.c.l.bf16 %v6339_v61  ;;  %v6358_v61 = vld [vmem:[%s6064_s7 + $0x160] sm:$0xff] }
 0x1e8   : > { %8278 = vst [vmem:[#allocation64_spill] sm:$0xff] %v6358_v61 }
 0x1e9   : > { %v1636_v22 = vmul.f32 %v1433_v8, %v826_v0  ;;  %v1639_v30 = vmul.f32 %v1445_v5, %v832_v2  ;;  %v838_v0 = vunpack.c.l.bf16 %v6358_v61  ;;  %v1449_v8 = vrot.slane %v1176_v23, %v6108_v48  ;;  %v6375_v5 = vld [vmem:[%s6064_s7 + $0x170] sm:$0xff]  ;;  %v6378_v61 = vld [vmem:[%s6064_s7 + $0x178] sm:$0xff] }
 0x1ea   : > { %8280 = vst [vmem:[#allocation66_spill] sm:$0xff] %v6375_v5  ;;  %8281 = vst [vmem:[#allocation67_spill] sm:$0xff] %v6378_v61 }
 0x1eb   : > { %v1681_v34 = vpack.c.bf16 %v1637_v28, %v1636_v22  ;;  %v1682_v2 = vpack.c.bf16 %v1639_v30, %v1638_v59  ;;  %v1177_v22 = vcombine.high %v1161_v11, %v1161_v11  ;;  %v1640_v23 = vmul.f32 %v1449_v8, %v834_v41 }
 0x1ec   : > { %v1641_v28 = vmul.f32 %v1453_v29, %v836_v52  ;;  %v1203_v30 = vrot.slane %v1187_v17, %v6094_v36  ;;  %v1217_v59 = vrot.slane %v1195_v3, %v6094_v36  ;;  %v846_v41 = vunpack.c.l.bf16 %v6381_v39  ;;  %v6402_v39 = vld [vmem:[%s6064_s7 + $0x198] sm:$0xff] }
 0x1ed   : > { %v1465_v29 = vrot.slane %v1177_v22, %v6108_v48  ;;  %v1469_v17 = vrot.slane %v1179_v24, %v6108_v48  ;;  %8285 = vst [vmem:[#allocation71_spill] sm:$0xff] %v6402_v39  ;;  %v6405_v24 = vld [vmem:[%s6064_s7 + $0x1a0] sm:$0xff] }
 0x1ee   : > { %4861 = vmatmul.mubr.bf16.gmra.mxu1 %v1679_v57  ;;  %v6363_v57 = vld [vmem:[%s6064_s7 + $0x168] sm:$0xff]  ;;  %v1683_v8 = vpack.c.bf16 %v1641_v28, %v1640_v23  ;;  %v1225_v23 = vcombine.high %v1203_v30, %v1203_v30  ;;  %v1227_v28 = vcombine.high %v1217_v59, %v1217_v59  ;;  %8286 = vst [vmem:[#allocation72_spill] sm:$0xff] %v6405_v24 }
 0x1ef   : > { %4864 = vmatprep.mubr.bf16.mxu1 %v1680_v7  ;;  %8279 = vst [vmem:[#allocation65_spill] sm:$0xff] %v6363_v57  ;;  %v1180_v7 = vcombine.high %v684_v51, %v684_v51  ;;  %v840_v35 = vunpack.c.l.bf16 %v6363_v57  ;;  %v1457_v51 = vrot.slane %v1161_v11, %v6108_v48  ;;  %v6384_v57 = vld [vmem:[%s6064_s7 + $0x188] sm:$0xff]  ;;  %v844_v11 = vunpack.c.l.bf16 %v6378_v61 }
 0x1f0   : > { %8283 = vst [vmem:[#allocation69_spill] sm:$0xff] %v6384_v57  ;;  %v848_v52 = vunpack.c.l.bf16 %v6384_v57  ;;  %v6408_v61 = vld [vmem:[%s6064_s7 + $0x1a8] sm:$0xff] }
 0x1f1   : > { %v1194_v12 = vrot.slane %v1180_v7, %v6094_v36  ;;  %v1643_v33 = vmul.f32 %v1461_v49, %v840_v35  ;;  %v842_v7 = vunpack.c.l.bf16 %v6375_v5  ;;  %v685_v35 = vmul.f32 0.125, %v6274_v16  ;;  %v6399_v49 = vld [vmem:[%s6064_s7 + $0x190] sm:$0xff]  ;;  %8287 = vst [vmem:[#allocation73_spill] sm:$0xff] %v6408_v61 }
 0x1f2   : > { %8284 = vst [vmem:[#allocation70_spill] sm:$0xff] %v6399_v49  ;;  %v1645_v22 = vmul.f32 %v1469_v17, %v844_v11 }
 0x1f3   : > { %v1196_v37 = vcombine.high %v1194_v12, %v1194_v12  ;;  %v1644_v57 = vmul.f32 %v1465_v29, %v842_v7  ;;  %v1229_v7 = vcombine.high %v685_v35, %v685_v35  ;;  %v1481_v29 = vrot.slane %v1225_v23, %v6108_v48  ;;  %v6425_v23 = vld [vmem:[%s6064_s7 + $0x1c0] sm:$0xff] }
 0x1f4   : > { %8289 = vst [vmem:[#allocation75_spill] sm:$0xff] %v6425_v23 }
 0x1f5   : > { %v1224_v16 = vrot.slane %v1196_v37, %v6094_v36  ;;  %v1685_v11 = vpack.c.bf16 %v1645_v22, %v1644_v57  ;;  %v1485_v37 = vrot.slane %v1227_v28, %v6108_v48  ;;  %v6422_v57 = vld [vmem:[%s6064_s7 + $0x1b0] sm:$0xff]  ;;  %v6428_v28 = vld [vmem:[%s6064_s7 + $0x1c8] sm:$0xff] }
 0x1f6   : > { %4865 = vmatmul.mubr.bf16.gmra.mxu1 %v1681_v34  ;;  %v1642_v34 = vmul.f32 %v1457_v51, %v838_v0  ;;  %v1473_v0 = vrot.slane %v1203_v30, %v6108_v48  ;;  %v1210_v51 = vrot.slane %v1194_v12, %v6094_v36  ;;  %v850_v12 = vunpack.c.l.bf16 %v6399_v49  ;;  %8288 = vst [vmem:[#allocation74_spill] sm:$0xff] %v6422_v57 }
 0x1f7   : > { %4868 = vmatprep.mubr.bf16.mxu1 %v1682_v2  ;;  %v1477_v2 = vrot.slane %v1217_v59, %v6108_v48  ;;  %v854_v30 = vunpack.c.l.bf16 %v6405_v24  ;;  %v856_v59 = vunpack.c.l.bf16 %v6408_v61  ;;  %v1243_v61 = vrot.slane %v1229_v7, %v6094_v36  ;;  %8290 = vst [vmem:[#allocation76_spill] sm:$0xff] %v6428_v28 }
 0x1f8   : > { %v1684_v3 = vpack.c.bf16 %v1643_v33, %v1642_v34  ;;  %v1236_v33 = vrot.slane %v685_v35, %v6094_v36  ;;  %v1646_v34 = vmul.f32 %v1473_v0, %v846_v41  ;;  %v1493_v0 = vrot.slane %v1224_v16, %v6108_v48 }
 0x1f9   : > { %v1648_v35 = vmul.f32 %v1481_v29, %v850_v12  ;;  %v1228_v22 = vcombine.high %v1224_v16, %v1224_v16  ;;  %v862_v12 = vunpack.c.l.bf16 %v6425_v23 }
 0x1fa   : > { %v1244_v17 = vcombine.high %v1236_v33, %v1236_v33  ;;  %v1651_v49 = vmul.f32 %v1493_v0, %v856_v59 }
 0x1fe   : > { %4869 = vmatmul.mubr.bf16.gmra.mxu1 %v1683_v8  ;;  %v1647_v8 = vmul.f32 %v1477_v2, %v848_v52  ;;  %v1489_v52 = vrot.slane %v1210_v51, %v6108_v48  ;;  %v1226_v2 = vcombine.high %v1210_v51, %v1210_v51  ;;  %v858_v51 = vunpack.c.l.bf16 %v6422_v57  ;;  %v6452_v57 = vld [vmem:[%s6064_s7 + $0x1e0] sm:$0xff] }
 0x1ff   : > { %4872 = vmatprep.mubr.bf16.mxu1 %v1684_v3  ;;  %v852_v3 = vunpack.c.l.bf16 %v6402_v39  ;;  %8294 = vst [vmem:[#allocation80_spill] sm:$0xff] %v6452_v57 }
 0x200   : > { %v1686_v41 = vpack.c.bf16 %v1647_v8, %v1646_v34  ;;  %v1252_v34 = vrot.slane %v1236_v33, %v6094_v36  ;;  %v1266_v8 = vrot.slane %v1244_v17, %v6094_v36  ;;  %v1650_v39 = vmul.f32 %v1489_v52, %v854_v30 }
 0x201   : > { %v1649_v24 = vmul.f32 %v1485_v37, %v852_v3  ;;  %v864_v3 = vunpack.c.l.bf16 %v6428_v28  ;;  %v1497_v29 = vrot.slane %v1226_v2, %v6108_v48  ;;  %v1501_v33 = vrot.slane %v1228_v22, %v6108_v48  ;;  %v6447_v28 = vld [vmem:[%s6064_s7 + $0x1d8] sm:$0xff] }
 0x202   : > { %v1245_v37 = vcombine.high %v1243_v61, %v1243_v61  ;;  %v1505_v30 = vrot.slane %v1252_v34, %v6108_v48  ;;  %v1688_v59 = vpack.c.bf16 %v1651_v49, %v1650_v39  ;;  %v1509_v17 = vrot.slane %v1266_v8, %v6108_v48  ;;  %8293 = vst [vmem:[#allocation79_spill] sm:$0xff] %v6447_v28  ;;  %v6455_v39 = vld [vmem:[%s6064_s7 + $0x1e8] sm:$0xff] }
 0x203   : > { %v1687_v16 = vpack.c.bf16 %v1649_v24, %v1648_v35  ;;  %v1276_v52 = vcombine.high %v1266_v8, %v1266_v8  ;;  %v1652_v0 = vmul.f32 %v1497_v29, %v858_v51  ;;  %v6444_v35 = vld [vmem:[%s6064_s7 + $0x1d0] sm:$0xff]  ;;  %v1259_v2 = vrot.slane %v1243_v61, %v6094_v36  ;;  %8295 = vst [vmem:[#allocation81_spill] sm:$0xff] %v6455_v39 }
 0x204   : > { %8292 = vst [vmem:[#allocation78_spill] sm:$0xff] %v6444_v35  ;;  %v1273_v22 = vrot.slane %v1245_v37, %v6094_v36  ;;  %v1654_v23 = vmul.f32 %v1505_v30, %v862_v12  ;;  %v866_v49 = vunpack.c.l.bf16 %v6444_v35  ;;  %v870_v61 = vunpack.c.l.bf16 %v6452_v57  ;;  %v6466_v30 = vld [vmem:[%s6064_s7 + $0x1f0] sm:$0xff] }
 0x205   : > { %v872_v12 = vunpack.c.l.bf16 %v6455_v39  ;;  %v1275_v29 = vcombine.high %v1259_v2, %v1259_v2  ;;  %8296 = vst [vmem:[#allocation82_spill] sm:$0xff] %v6466_v30 }
 0x206   : > { %4873 = vmatmul.mubr.bf16.gmra.mxu1 %v1685_v11  ;;  %v6433_v11 = vld [vmem:[%s6064_s7 + $0x1b8] sm:$0xff] }
 0x207   : > { %4876 = vmatprep.mubr.bf16.mxu1 %v1686_v41  ;;  %8291 = vst [vmem:[#allocation77_spill] sm:$0xff] %v6433_v11  ;;  %v860_v7 = vunpack.c.l.bf16 %v6433_v11  ;;  %v1274_v41 = vcombine.high %v1252_v34, %v1252_v34  ;;  %v1655_v11 = vmul.f32 %v1509_v17, %v864_v3  ;;  %v868_v34 = vunpack.c.l.bf16 %v6447_v28 }
 0x208   : > { %v1521_v3 = vrot.slane %v1259_v2, %v6108_v48 }
 0x209   : > { %v1653_v24 = vmul.f32 %v1501_v33, %v860_v7  ;;  %v1513_v51 = vrot.slane %v1274_v41, %v6108_v48  ;;  %v1690_v36 = vpack.c.bf16 %v1655_v11, %v1654_v23  ;;  %v1525_v7 = vrot.slane %v1273_v22, %v6108_v48 }
 0x20a   : > { %v1658_v17 = vmul.f32 %v1521_v3, %v870_v61  ;;  %v874_v23 = vunpack.c.l.bf16 %v6466_v30 }
 0x20b   : > { %v1689_v8 = vpack.c.bf16 %v1653_v24, %v1652_v0  ;;  %v1656_v33 = vmul.f32 %v1513_v51, %v866_v49  ;;  %v1659_v41 = vmul.f32 %v1525_v7, %v872_v12  ;;  %v1529_v24 = vrot.slane %v1275_v29, %v6108_v48 }
 0x20d   : > { %v1660_v2 = vmul.f32 %v1529_v24, %v874_v23 }
 0x20e   : > { %4877 = vmatmul.mubr.bf16.gmra.mxu1 %v1687_v16  ;;  %v1517_v16 = vrot.slane %v1276_v52, %v6108_v48  ;;  %v6469_v52 = vld [vmem:[%s6064_s7 + $0x1f8] sm:$0xff] }
 0x20f   : > { %4880 = vmatprep.mubr.bf16.mxu1 %v1688_v59  ;;  %v1277_v59 = vcombine.high %v1273_v22, %v1273_v22  ;;  %8297 = vst [vmem:[#allocation83_spill] sm:$0xff] %v6469_v52  ;;  %v876_v0 = vunpack.c.l.bf16 %v6469_v52 }
 0x210   : > { %v1657_v37 = vmul.f32 %v1517_v16, %v868_v34 }
 0x212   : > { %v1691_v11 = vpack.c.bf16 %v1657_v37, %v1656_v33 }
 0x216   : > { %4881 = vmatmul.mubr.bf16.gmra.mxu1 %v1689_v8  ;;  %v1533_v8 = vrot.slane %v1277_v59, %v6108_v48 }
 0x217   : > { %4884 = vmatprep.mubr.bf16.mxu1 %v1690_v36  ;;  %v1692_v36 = vpack.c.bf16 %v1659_v41, %v1658_v17 }
 0x218   : > { %v1661_v49 = vmul.f32 %v1533_v8, %v876_v0 }
 0x21a   : > { %v1693_v34 = vpack.c.bf16 %v1661_v49, %v1660_v2 }
 0x21e   : > { %4885 = vmatmul.mubr.bf16.gmra.mxu1 %v1691_v11 }
 0x21f   : > { %4888 = vmatprep.mubr.bf16.mxu1 %v1692_v36 }
 0x226   : > { %4889 = vmatmul.mubr.bf16.gmra.mxu1 %v1693_v34 }
 0x26e   : > { %v6475_v22 = vpop.f32.mrf.mxu1 }
 0x26f   : > { %v2059_v51 = vrot.slane %v6475_v22, 4 }
 0x270   : > { %v6478_v16 = vpop.f32.mrf.mxu1 }
 0x271   : > { %v2060_v61 = vmax.f32 %v6475_v22, %v2059_v51  ;;  %v2047_v12 = vrot.slane %v6478_v16, 4 }
 0x272   : > { %v6482_v3 = vpop.f32.mrf.mxu1 }
 0x273   : > { %v2061_v7 = vrot.slane %v2060_v61, 2  ;;  %v2048_v29 = vmax.f32 %v6478_v16, %v2047_v12  ;;  %v2065_v33 = vrot.slane %v6482_v3, 4 }
 0x274   : > { %v6491_v23 = vpop.f32.mrf.mxu1 }
 0x275   : > { %v2062_v0 = vmax.f32 %v2060_v61, %v2061_v7  ;;  %v2049_v24 = vrot.slane %v2048_v29, 2  ;;  %v2053_v8 = vrot.slane %v6491_v23, 4  ;;  %v2066_v34 = vmax.f32 %v6482_v3, %v2065_v33 }
 0x276   : > { %v6499_v51 = vpop.f32.mrf.mxu1 }
 0x277   : > { %v2050_v17 = vmax.f32 %v2048_v29, %v2049_v24  ;;  %v2083_v2 = vrot.slane %v6499_v51, 4  ;;  %v2063_v12 = vrot.slane %v2062_v0, 1  ;;  %v2054_v41 = vmax.f32 %v6491_v23, %v2053_v8 }
 0x278   : > { %v6508_v49 = vpop.f32.mrf.mxu1  ;;  %v2067_v37 = vrot.slane %v2066_v34, 2 }
 0x279   : > { %v2084_v61 = vmax.f32 %v6499_v51, %v2083_v2  ;;  %v2071_v7 = vrot.slane %v6508_v49, 4  ;;  %v2051_v8 = vrot.slane %v2050_v17, 1  ;;  %v2064_v29 = vmax.f32 %v2062_v0, %v2063_v12 }
 0x27a   : > { %v6516_v36 = vpop.f32.mrf.mxu1  ;;  %v2055_v60 = vrot.slane %v2054_v41, 2  ;;  %v2068_v24 = vmax.f32 %v2066_v34, %v2067_v37 }
 0x27b   : > { %v2072_v11 = vmax.f32 %v6508_v49, %v2071_v7  ;;  %v2089_v13 = vrot.slane %v6516_v36, 4  ;;  %v2085_v42 = vrot.slane %v2084_v61, 2  ;;  %v2052_v47 = vmax.f32 %v2050_v17, %v2051_v8 }
 0x27c   : > { %v6525_v2 = vpop.f32.mrf.mxu1  ;;  %v2433_v7 = vsub.f32 %v6475_v22, %v2064_v29  ;;  %v2056_v44 = vmax.f32 %v2054_v41, %v2055_v60  ;;  %v2069_v43 = vrot.slane %v2068_v24, 1 }
 0x27d   : > { %v2090_v33 = vmax.f32 %v6516_v36, %v2089_v13  ;;  %v2077_v48 = vrot.slane %v6525_v2, 4  ;;  %v2073_v62 = vrot.slane %v2072_v11, 2  ;;  %v5139_v13 = vld [vmem:[#allocation10 + $0x38] sm:$0xff]   ;;  %v2086_v1 = vmax.f32 %v2084_v61, %v2085_v42 }
 0x27e   : > { %v6531_v59 = vpop.f32.mrf.mxu1  ;;  %4892 = vmatprep.subr.bf16.mxu0 %v5139_v13  ;;  %v2431_v41 = vsub.f32 %v6478_v16, %v2052_v47  ;;  %v2499_v14 = vmul.f32 1.442695, %v2433_v7  ;;  %v2070_v40 = vmax.f32 %v2068_v24, %v2069_v43 }
 0x27f   : > { %v2091_v0 = vrot.slane %v2090_v33, 2  ;;  %v2078_v37 = vmax.f32 %v6525_v2, %v2077_v48  ;;  %v2107_v21 = vrot.slane %v6531_v59, 4  ;;  %v2074_v55 = vmax.f32 %v2072_v11, %v2073_v62  ;;  %4893 = vmatpush3.bf16.msra.mxu0 %v5139_v13 }
 0x280   : > { %v6538_v34 = vpop.f32.mrf.mxu1  ;;  %v2057_v48 = vrot.slane %v2056_v44, 1  ;;  %v2087_v18 = vrot.slane %v2086_v1, 1  ;;  %v2495_v7 = vmul.f32 1.442695, %v2431_v41  ;;  %5171 = vpow2.f32 %v2499_v14 }
 0x281   : > { %v2079_v12 = vrot.slane %v2078_v37, 2  ;;  %v2092_v29 = vmax.f32 %v2090_v33, %v2091_v0  ;;  %v2108_v62 = vmax.f32 %v6531_v59, %v2107_v21  ;;  %v2095_v11 = vrot.slane %v6538_v34, 4 }
 0x282   : > { %v6545_v17 = vpop.f32.mrf.mxu1  ;;  %v2075_v33 = vrot.slane %v2074_v55, 1  ;;  %v2058_v8 = vmax.f32 %v2056_v44, %v2057_v48  ;;  %v2434_v60 = vsub.f32 %v6482_v3, %v2070_v40  ;;  %v2088_v31 = vmax.f32 %v2086_v1, %v2087_v18 }
 0x283   : > { %v2080_v0 = vmax.f32 %v2078_v37, %v2079_v12  ;;  %v2093_v54 = vrot.slane %v2092_v29, 1  ;;  %v2109_v16 = vrot.slane %v2108_v62, 2  ;;  %v2096_v37 = vmax.f32 %v6538_v34, %v2095_v11 }
 0x284   : > { %v6552_v42 = vpop.f32.mrf.mxu1  ;;  %v2076_v41 = vmax.f32 %v2074_v55, %v2075_v33  ;;  %v2113_v6 = vrot.slane %v6545_v17, 4  ;;  %5173 = vpow2.f32 %v2495_v7  ;;  %v2432_v48 = vsub.f32 %v6491_v23, %v2058_v8 }
 0x285   : > { %v2081_v61 = vrot.slane %v2080_v0, 1  ;;  %v2094_v14 = vmax.f32 %v2092_v29, %v2093_v54  ;;  %v2101_v11 = vrot.slane %v6552_v42, 4  ;;  %v2501_v55 = vmul.f32 1.442695, %v2434_v60 }
 0x286   : > { %v6558_v13 = vpop.f32.mrf.mxu1  ;;  %v2437_v33 = vsub.f32 %v6499_v51, %v2088_v31  ;;  %v2110_v4 = vmax.f32 %v2108_v62, %v2109_v16  ;;  %v2097_v32 = vrot.slane %v2096_v37, 2  ;;  %v2435_v54 = vsub.f32 %v6508_v49, %v2076_v41 }
 0x287   : > { %v2082_v29 = vmax.f32 %v2080_v0, %v2081_v61  ;;  %v2114_v18 = vmax.f32 %v6545_v17, %v2113_v6  ;;  %v2438_v60 = vsub.f32 %v6516_v36, %v2094_v14  ;;  %v2497_v7 = vmul.f32 1.442695, %v2432_v48 }
 0x288   : > { %v6564_v43 = vpop.f32.mrf.mxu1  ;;  %v2102_v49 = vmax.f32 %v6552_v42, %v2101_v11  ;;  %5175 = vpow2.f32 %v2501_v55  ;;  %v2507_v61 = vmul.f32 1.442695, %v2437_v33  ;;  %v2111_v6 = vrot.slane %v2110_v4, 1 }
 0x289   : > { %v2098_v0 = vmax.f32 %v2096_v37, %v2097_v32  ;;  %v2503_v23 = vmul.f32 1.442695, %v2435_v54  ;;  %v2436_v5 = vsub.f32 %v6525_v2, %v2082_v29  ;;  %v2115_v3 = vrot.slane %v2114_v18, 2 }
 0x28a   : > { %v6570_v12 = vpop.f32.mrf.mxu1  ;;  %v2131_v36 = vrot.slane %v6558_v13, 4  ;;  %v2509_v16 = vmul.f32 1.442695, %v2438_v60  ;;  %5177 = vpow2.f32 %v2497_v7  ;;  %v2103_v37 = vrot.slane %v2102_v49, 2 }
 0x28b   : > { %5179 = vpow2.f32 %v2507_v61  ;;  %v2112_v54 = vmax.f32 %v2110_v4, %v2111_v6  ;;  %v2099_v29 = vrot.slane %v2098_v0, 1  ;;  %v2505_v48 = vmul.f32 1.442695, %v2436_v5 }
 0x28c   : > { %v6576_v44 = vpop.f32.mrf.mxu1  ;;  %5181 = vpow2.f32 %v2503_v23  ;;  %v2116_v60 = vmax.f32 %v2114_v18, %v2115_v3  ;;  %v2132_v51 = vmax.f32 %v6558_v13, %v2131_v36  ;;  %v2104_v61 = vmax.f32 %v2102_v49, %v2103_v37 }
 0x28d   : > { %v6608_v33 = vpop.eup %5171  ;;  %5183 = vpow2.f32 %v2509_v16  ;;  %v2119_v23 = vrot.slane %v6564_v43, 4  ;;  %v2441_v18 = vsub.f32 %v6531_v59, %v2112_v54  ;;  %v2100_v3 = vmax.f32 %v2098_v0, %v2099_v29 }
 0x28e   : > { %v6583_v21 = vpop.f32.mrf.mxu1  ;;  %8321 = vst [vmem:[#allocation84_spill] sm:$0xff] %v6608_v33  ;;  %v2635_v4 = vrot.slane %v6608_v33, 4  ;;  %5185 = vpow2.f32 %v2505_v48  ;;  %v2117_v16 = vrot.slane %v2116_v60, 1  ;;  %v2133_v32 = vrot.slane %v2132_v51, 2 }
 0x28f   : > { %v2155_v5 = vrot.slane %v6583_v21, 4  ;;  %v2105_v29 = vrot.slane %v2104_v61, 1  ;;  %v2120_v30 = vmax.f32 %v6564_v43, %v2119_v23  ;;  %v2515_v39 = vmul.f32 1.442695, %v2441_v18 }
 0x290   : > { %v6592_v31 = vpop.f32.mrf.mxu1  ;;  %v2636_v54 = vadd.f32 %v6608_v33, %v2635_v4  ;;  %v2118_v62 = vmax.f32 %v2116_v60, %v2117_v16  ;;  %v2134_v14 = vmax.f32 %v2132_v51, %v2133_v32 }
 0x291   : > { %v6619_v2 = vpop.eup %5173  ;;  %v2143_v6 = vrot.slane %v6592_v31, 4  ;;  %v2156_v55 = vmax.f32 %v6583_v21, %v2155_v5  ;;  %v2106_v24 = vmax.f32 %v2104_v61, %v2105_v29  ;;  %5187 = vpow2.f32 %v2515_v39 }
 0x292   : > { %v6597_v41 = vpop.f32.mrf.mxu1  ;;  %8322 = vst [vmem:[#allocation85_spill] sm:$0xff] %v6619_v2  ;;  %v2623_v49 = vrot.slane %v6619_v2, 4  ;;  %v2637_v18 = vrot.slane %v2636_v54, 2  ;;  %v2442_v16 = vsub.f32 %v6545_v17, %v2118_v62 }
 0x293   : > { %v2161_v36 = vrot.slane %v6597_v41, 4  ;;  %v2144_v37 = vmax.f32 %v6592_v31, %v2143_v6  ;;  %v2157_v48 = vrot.slane %v2156_v55, 2  ;;  %v2440_v20 = vsub.f32 %v6552_v42, %v2106_v24 }
 0x294   : > { %v6604_v11 = vpop.f32.mrf.mxu1  ;;  %v2624_v4 = vadd.f32 %v6619_v2, %v2623_v49  ;;  %v2135_v49 = vrot.slane %v2134_v14, 1  ;;  %v2517_v42 = vmul.f32 1.442695, %v2442_v16 }
 0x295   : > { %v2162_v52 = vmax.f32 %v6597_v41, %v2161_v36  ;;  %v2149_v59 = vrot.slane %v6604_v11, 4  ;;  %v2145_v57 = vrot.slane %v2144_v37, 2  ;;  %v6641_v6 = vpop.eup %5175  ;;  %v2439_v36 = vsub.f32 %v6538_v34, %v2100_v3 }
 0x296   : > { %v6611_v8 = vpop.f32.mrf.mxu1  ;;  %8323 = vst [vmem:[#allocation86_spill] sm:$0xff] %v6641_v6  ;;  %v2158_v40 = vmax.f32 %v2156_v55, %v2157_v48  ;;  %v2121_v34 = vrot.slane %v2120_v30, 2  ;;  %v2625_v61 = vrot.slane %v2624_v4, 2  ;;  %v6661_v48 = vadd.f32 %v2637_v18, %v2636_v54 }
 0x297   : > { %v2163_v35 = vrot.slane %v2162_v52, 2  ;;  %v2150_v5 = vmax.f32 %v6604_v11, %v2149_v59  ;;  %v2146_v1 = vmax.f32 %v2144_v37, %v2145_v57  ;;  %v2179_v59 = vrot.slane %v6611_v8, 4  ;;  %v6648_v9 = vpop.eup %5177 }
 0x298   : > { %v6617_v28 = vpop.f32.mrf.mxu1  ;;  %v2159_v26 = vrot.slane %v2158_v40, 1  ;;  %8324 = vst [vmem:[#allocation87_spill] sm:$0xff] %v6648_v9  ;;  %v6651_v55 = vpop.eup %5179  ;;  %v2511_v32 = vmul.f32 1.442695, %v2439_v36  ;;  %v2137_v57 = vrot.slane %v6570_v12, 4  ;;  %v6671_v54 = vadd.f32 %v2625_v61, %v2624_v4 }
 0x299   : > { %v2164_v19 = vmax.f32 %v2162_v52, %v2163_v35  ;;  %v2151_v23 = vrot.slane %v2150_v5, 2  ;;  %v2147_v60 = vrot.slane %v2146_v1, 1  ;;  %v6654_v3 = vpop.eup %5181  ;;  %v2180_v63 = vmax.f32 %v6611_v8, %v2179_v59 }
 0x29a   : > { %v6627_v7 = vpop.f32.mrf.mxu1  ;;  %v2160_v35 = vmax.f32 %v2158_v40, %v2159_v26  ;;  %v6659_v29 = vpop.eup %5183  ;;  %v2629_v26 = vrot.slane %v6648_v9, 4  ;;  %v2122_v40 = vmax.f32 %v2120_v30, %v2121_v34  ;;  %5189 = vpow2.f32 %v2511_v32 }
 0x29b   : > { %v2165_v51 = vrot.slane %v2164_v19, 1  ;;  %v2152_v52 = vmax.f32 %v2150_v5, %v2151_v23  ;;  %v2148_v36 = vmax.f32 %v2146_v1, %v2147_v60  ;;  %v2125_v5 = vrot.slane %v6576_v44, 4  ;;  %v6669_v58 = vpop.eup %5185 }
 0x29c   : > { %v6634_v0 = vpop.f32.mrf.mxu1  ;;  %v2138_v17 = vmax.f32 %v6570_v12, %v2137_v57  ;;  %v2449_v62 = vsub.f32 %v6583_v21, %v2160_v35  ;;  %v6673_v24 = vmax.f32 %v2134_v14, %v2135_v49  ;;  %v2167_v1 = vrot.slane %v6617_v28, 4 }
 0x29d   : > { %v2166_v39 = vmax.f32 %v2164_v19, %v2165_v51  ;;  %v2153_v23 = vrot.slane %v2152_v52, 1  ;;  %v2513_v30 = vmul.f32 1.442695, %v2440_v20  ;;  %v2447_v19 = vsub.f32 %v6592_v31, %v2148_v36 }
 0x29e   : > { %v6639_v47 = vpop.f32.mrf.mxu1  ;;  %v2181_v34 = vrot.slane %v2180_v63, 2  ;;  %v2123_v60 = vrot.slane %v2122_v40, 1  ;;  %v2126_v21 = vmax.f32 %v6576_v44, %v2125_v5  ;;  %v2168_v4 = vmax.f32 %v6617_v28, %v2167_v1 }
 0x29f   : > { %v2154_v59 = vmax.f32 %v2152_v52, %v2153_v23  ;;  %v2450_v51 = vsub.f32 %v6597_v41, %v2166_v39  ;;  %v6683_v32 = vadd.f32 %v6648_v9, %v2629_v26  ;;  %v2139_v14 = vrot.slane %v2138_v17, 2 }
 0x2a0   : > { %v6645_v22 = vpop.f32.mrf.mxu1  ;;  %v2531_v57 = vmul.f32 1.442695, %v2449_v62  ;;  %v2185_v35 = vrot.slane %v6627_v7, 4  ;;  %5191 = vpow2.f32 %v2517_v42  ;;  %v2445_v20 = vsub.f32 %v6558_v13, %v6673_v24 }
 0x2a1   : > { %v2448_v31 = vsub.f32 %v6604_v11, %v2154_v59  ;;  %v2173_v52 = vrot.slane %v6634_v0, 4  ;;  %5193 = vpow2.f32 %v2513_v30  ;;  %v2527_v41 = vmul.f32 1.442695, %v2447_v19 }
 0x2a2   : > { %v6657_v37 = vpop.f32.mrf.mxu1  ;;  %v2182_v16 = vmax.f32 %v2180_v63, %v2181_v34  ;;  %v2169_v49 = vrot.slane %v2168_v4, 2  ;;  %v2124_v36 = vmax.f32 %v2122_v40, %v2123_v60  ;;  %v2127_v26 = vrot.slane %v2126_v21, 2  ;;  %v6700_v40 = vpop.eup %5187 }
 0x2a3   : > { %v2533_v5 = vmul.f32 1.442695, %v2450_v51  ;;  %v2203_v39 = vrot.slane %v6639_v47, 4  ;;  %v2140_v62 = vmax.f32 %v2138_v17, %v2139_v14  ;;  %5195 = vpow2.f32 %v2531_v57  ;;  %8325 = vst [vmem:[#allocation88_spill] sm:$0xff] %v6700_v40 }
 0x2a4   : > { %v6676_v18 = vpop.f32.mrf.mxu1  ;;  %v2186_v23 = vmax.f32 %v6627_v7, %v2185_v35  ;;  %v2191_v13 = vrot.slane %v6645_v22, 4  ;;  %v2529_v11 = vmul.f32 1.442695, %v2448_v31  ;;  %v2174_v42 = vmax.f32 %v6634_v0, %v2173_v52 }
 0x2a5   : > { %v2204_v24 = vmax.f32 %v6639_v47, %v2203_v39  ;;  %v2209_v1 = vrot.slane %v6657_v37, 4  ;;  %5197 = vpow2.f32 %v2527_v41  ;;  %v2183_v30 = vrot.slane %v2182_v16, 1 }
 0x2a6   : > { %v6690_v61 = vpop.f32.mrf.mxu1  ;;  %v2170_v19 = vmax.f32 %v2168_v4, %v2169_v49  ;;  %v2192_v17 = vmax.f32 %v6645_v22, %v2191_v13  ;;  %v2128_v59 = vmax.f32 %v2126_v21, %v2127_v26  ;;  %5199 = vpow2.f32 %v2533_v5 }
 0x2a7   : > { %v2205_v34 = vrot.slane %v2204_v24, 2  ;;  %v2210_v60 = vmax.f32 %v6657_v37, %v2209_v1  ;;  %v2631_v51 = vrot.slane %v6683_v32, 2  ;;  %v2141_v14 = vrot.slane %v2140_v62, 1  ;;  %v6705_v31 = vpop.eup %5189 }
 0x2a8   : > { %v6698_v63 = vpop.f32.mrf.mxu1  ;;  %v2187_v57 = vrot.slane %v2186_v23, 2  ;;  %v2193_v35 = vrot.slane %v2192_v17, 2  ;;  %8326 = vst [vmem:[#allocation89_spill] sm:$0xff] %v6705_v31  ;;  %5201 = vpow2.f32 %v2529_v11  ;;  %v2175_v52 = vrot.slane %v2174_v42, 2 }
 0x2a9   : > { %v2206_v39 = vmax.f32 %v2204_v24, %v2205_v34  ;;  %v2197_v41 = vrot.slane %v6676_v18, 4  ;;  %v2443_v21 = vsub.f32 %v6564_v43, %v2124_v36  ;;  %v2184_v49 = vmax.f32 %v2182_v16, %v2183_v30 }
 0x2aa   : > { %v6708_v4 = vpop.f32.mrf.mxu1  ;;  %v2171_v26 = vrot.slane %v2170_v19, 1  ;;  %v2194_v5 = vmax.f32 %v2192_v17, %v2193_v35  ;;  %v2683_v13 = vrot.slane %v6700_v40, 4  ;;  %v2129_v1 = vrot.slane %v2128_v59, 1 }
 0x2ab   : > { %v2207_v53 = vrot.slane %v2206_v39, 1  ;;  %v2211_v33 = vrot.slane %v2210_v60, 2  ;;  %v8327_v50 = vrot.slane %v6641_v6, 4  ;;  %v2523_v24 = vmul.f32 1.442695, %v2445_v20 }
 0x2ac   : > { %v2142_v34 = vmax.f32 %v2140_v62, %v2141_v14  ;;  %v2188_v9 = vmax.f32 %v2186_v23, %v2187_v57  ;;  %v2176_v46 = vmax.f32 %v2174_v42, %v2175_v52  ;;  %v2195_v45 = vrot.slane %v2194_v5, 1  ;;  %v6718_v16 = vpop.f32.mrf.mxu1 }
 0x2ad   : > { %v6715_v11 = vadd.f32 %v6641_v6, %v8327_v50  ;;  %v2208_v2 = vmax.f32 %v2206_v39, %v2207_v53  ;;  %v2198_v43 = vmax.f32 %v6676_v18, %v2197_v41  ;;  %v6720_v36 = vpop.eup %5191  ;;  %v6724_v17 = vadd.f32 %v2631_v51, %v6683_v32 }
 0x2ae   : > { %8328 = vst [vmem:[#allocation90_spill] sm:$0xff] %v6720_v36  ;;  %v2453_v50 = vsub.f32 %v6611_v8, %v2184_v49  ;;  %v2172_v35 = vmax.f32 %v2170_v19, %v2171_v26  ;;  %v6727_v20 = vpop.eup %5193  ;;  %v6730_v62 = vadd.f32 %v6700_v40, %v2683_v13  ;;  %v2519_v53 = vmul.f32 1.442695, %v2443_v21  ;;  %v6737_v41 = vpop.f32.mrf.mxu1 }
 0x2af   : > { %8329 = vst [vmem:[#allocation91_spill] sm:$0xff] %v6727_v20  ;;  %v2130_v23 = vmax.f32 %v2128_v59, %v2129_v1  ;;  %v2212_v42 = vmax.f32 %v2210_v60, %v2211_v33  ;;  %v2446_v57 = vsub.f32 %v6570_v12, %v2142_v34  ;;  %v2189_v52 = vrot.slane %v2188_v9, 1 }
 0x2b0   : > { %v2457_v39 = vsub.f32 %v6639_v47, %v2208_v2  ;;  %v6735_v32 = vpop.eup %5195  ;;  %5203 = vpow2.f32 %v2523_v24  ;;  %v2177_v8 = vrot.slane %v2176_v46, 1  ;;  %v2196_v19 = vmax.f32 %v2194_v5, %v2195_v45 }
 0x2b1   : > { %v2199_v51 = vrot.slane %v2198_v43, 2  ;;  %v2671_v59 = vrot.slane %v6705_v31, 4  ;;  %v2539_v33 = vmul.f32 1.442695, %v2453_v50  ;;  %v2451_v60 = vsub.f32 %v6617_v28, %v2172_v35  ;;  %v6751_v35 = vpop.f32.mrf.mxu1 }
 0x2b2   : > { %v6742_v21 = vpop.eup %5197  ;;  %v2685_v12 = vrot.slane %v6730_v62, 2  ;;  %5205 = vpow2.f32 %v2519_v53  ;;  %v2444_v47 = vsub.f32 %v6576_v44, %v2130_v23  ;;  %v2213_v2 = vrot.slane %v2212_v42, 1 }
 0x2b3   : > { %v6746_v26 = vpop.eup %5199  ;;  %v2677_v45 = vrot.slane %v6727_v20, 4  ;;  %v2525_v5 = vmul.f32 1.442695, %v2446_v57  ;;  %v2190_v13 = vmax.f32 %v2188_v9, %v2189_v52  ;;  %v2547_v1 = vmul.f32 1.442695, %v2457_v39 }
 0x2b4   : > { %8330 = vst [vmem:[#allocation92_spill] sm:$0xff] %v6746_v26  ;;  %v2731_v24 = vrot.slane %v6735_v32, 4  ;;  %v2178_v34 = vmax.f32 %v2176_v46, %v2177_v8  ;;  %v2455_v28 = vsub.f32 %v6645_v22, %v2196_v19  ;;  %v2200_v50 = vmax.f32 %v2198_v43, %v2199_v51 }
 0x2b5   : > { %v6753_v49 = vpop.eup %5201  ;;  %v2672_v44 = vadd.f32 %v6705_v31, %v2671_v59  ;;  %v2719_v53 = vrot.slane %v6742_v21, 4  ;;  %5207 = vpow2.f32 %v2539_v33  ;;  %v2535_v23 = vmul.f32 1.442695, %v2451_v60  ;;  %v6765_v33 = vpop.f32.mrf.mxu1 }
 0x2b6   : > { %v2737_v57 = vrot.slane %v6746_v26, 4  ;;  %v2214_v9 = vmax.f32 %v2212_v42, %v2213_v2  ;;  %v2201_v52 = vrot.slane %v2200_v50, 1  ;;  %v2227_v39 = vrot.slane %v6690_v61, 4 }
 0x2b7   : > { %v2689_v46 = vrot.slane %v6720_v36, 4  ;;  %v2678_v22 = vadd.f32 %v6727_v20, %v2677_v45  ;;  %v2454_v43 = vsub.f32 %v6627_v7, %v2190_v13  ;;  %5209 = vpow2.f32 %v2547_v1 }
 0x2b8   : > { %v2732_v8 = vadd.f32 %v6735_v32, %v2731_v24  ;;  %v2725_v19 = vrot.slane %v6753_v49, 4  ;;  %v2452_v51 = vsub.f32 %v6634_v0, %v2178_v34  ;;  %v2543_v59 = vmul.f32 1.442695, %v2455_v28 }
 0x2b9   : > { %v2521_v42 = vmul.f32 1.442695, %v2444_v47  ;;  %v2720_v60 = vadd.f32 %v6742_v21, %v2719_v53  ;;  %v2202_v2 = vmax.f32 %v2200_v50, %v2201_v52  ;;  %v2215_v30 = vrot.slane %v6698_v63, 4  ;;  %v6774_v50 = vpop.f32.mrf.mxu1 }
 0x2ba   : > { %v2738_v45 = vadd.f32 %v6746_v26, %v2737_v57  ;;  %5211 = vpow2.f32 %v2535_v23  ;;  %v2458_v7 = vsub.f32 %v6657_v37, %v2214_v9  ;;  %v2228_v13 = vmax.f32 %v6690_v61, %v2227_v39 }
 0x2bb   : > { %v2673_v1 = vrot.slane %v2672_v44, 2  ;;  %v2679_v24 = vrot.slane %v2678_v22, 2  ;;  %v2541_v14 = vmul.f32 1.442695, %v2454_v43  ;;  %v2216_v0 = vmax.f32 %v6698_v63, %v2215_v30  ;;  %v6790_v20 = vpop.f32.mrf.mxu1 }
 0x2bc   : > { %v2733_v34 = vrot.slane %v2732_v8, 2  ;;  %v2726_v47 = vadd.f32 %v6753_v49, %v2725_v19  ;;  %v2537_v28 = vmul.f32 1.442695, %v2452_v51  ;;  %5213 = vpow2.f32 %v2543_v59 }
 0x2bd   : > { %v6776_v53 = vpop.eup %5203  ;;  %v2721_v57 = vrot.slane %v2720_v60, 2  ;;  %v2456_v23 = vsub.f32 %v6676_v18, %v2202_v2  ;;  %v2217_v37 = vrot.slane %v2216_v0, 2  ;;  %v2233_v9 = vrot.slane %v6708_v4, 4 }
 0x2be   : > { %v6781_v52 = vadd.f32 %v2685_v12, %v6730_v62  ;;  %v2739_v39 = vrot.slane %v2738_v45, 2  ;;  %v2549_v30 = vmul.f32 1.442695, %v2458_v7  ;;  %v2229_v43 = vrot.slane %v2228_v13, 2 }
 0x2bf   : > { %v6783_v26 = vpop.eup %5205  ;;  %v6785_v19 = vadd.f32 %v2673_v1, %v2672_v44  ;;  %5215 = vpow2.f32 %v2525_v5  ;;  %v2218_v51 = vmax.f32 %v2216_v0, %v2217_v37  ;;  %v2221_v59 = vrot.slane %v6718_v16, 4 }
 0x2c0   : > { %8331 = vst [vmem:[#allocation93_spill] sm:$0xff] %v6781_v52  ;;  %v6788_v40 = vadd.f32 %v2679_v24, %v2678_v22  ;;  %v2734_v18 = vadd.f32 %v2733_v34, %v2732_v8  ;;  %v2727_v2 = vrot.slane %v2726_v47, 2  ;;  %5217 = vpow2.f32 %v2541_v14 }
 0x2c1   : > { %8332 = vst [vmem:[#allocation94_spill] sm:$0xff] %v6785_v19  ;;  %v2722_v62 = vadd.f32 %v2721_v57, %v2720_v60  ;;  %5219 = vpow2.f32 %v2537_v28  ;;  %v2545_v12 = vmul.f32 1.442695, %v2456_v23  ;;  %v2234_v7 = vmax.f32 %v6708_v4, %v2233_v9 }
 0x2c2   : > { %8333 = vst [vmem:[#allocation95_spill] sm:$0xff] %v6788_v40  ;;  %v6793_v31 = vpop.eup %5207  ;;  %v2740_v44 = vadd.f32 %v2739_v39, %v2738_v45  ;;  %5221 = vpow2.f32 %v2549_v30  ;;  %v2230_v5 = vmax.f32 %v2228_v13, %v2229_v43  ;;  %v2219_v1 = vrot.slane %v2218_v51, 1  ;;  %v6804_v45 = vpop.f32.mrf.mxu1 }
 0x2c3   : > { %8334 = vst [vmem:[#allocation96_spill] sm:$0xff] %v6793_v31  ;;  %v6796_v0 = vadd.f32 %v6720_v36, %v2689_v46  ;;  %5223 = vpow2.f32 %v2521_v42  ;;  %v2222_v22 = vmax.f32 %v6718_v16, %v2221_v59  ;;  %v2251_v14 = vrot.slane %v6737_v41, 4 }
 0x2c4   : > { %v6800_v8 = vpop.eup %5209  ;;  %v2735_v34 = vrot.slane %v2734_v18, 1  ;;  %v2728_v28 = vadd.f32 %v2727_v2, %v2726_v47  ;;  %v2723_v57 = vrot.slane %v2722_v62, 1  ;;  %5225 = vpow2.f32 %v2545_v12 }
 0x2c5   : > { %8335 = vst [vmem:[#allocation97_spill] sm:$0xff] %v6796_v0  ;;  %v2235_v46 = vrot.slane %v2234_v7, 2  ;;  %v2741_v42 = vrot.slane %v2740_v44, 1  ;;  %v2755_v23 = vrot.slane %v6793_v31, 4  ;;  %v2231_v37 = vrot.slane %v2230_v5, 1 }
 0x2c6   : > { %v2220_v9 = vmax.f32 %v2218_v51, %v2219_v1  ;;  %v2779_v30 = vrot.slane %v6800_v8, 4  ;;  %v2223_v43 = vrot.slane %v2222_v22, 2  ;;  %v2252_v59 = vmax.f32 %v6737_v41, %v2251_v14  ;;  %v6823_v1 = vpop.f32.mrf.mxu1 }
 0x2c7   : > { %v6808_v39 = vpop.eup %5211  ;;  %v2239_v47 = vrot.slane %v6751_v35, 4  ;;  %v2736_v2 = vadd.f32 %v2735_v34, %v2734_v18  ;;  %v8337_v13 = vunpack.c.h.bf16 %v6217_v56  ;;  %v8339_v60 = vunpack.c.h.bf16 %v6198_v25 }
 0x2c8   : > { %8336 = vst [vmem:[#allocation98_spill] sm:$0xff] %v6808_v39  ;;  %v2729_v51 = vrot.slane %v2728_v28, 1  ;;  %v2724_v52 = vadd.f32 %v2723_v57, %v2722_v62  ;;  %v8341_v14 = vunpack.c.h.bf16 %v6189_v15  ;;  %v2236_v56 = vmax.f32 %v2234_v7, %v2235_v46  ;;  %v6843_v46 = vpop.f32.mrf.mxu1 }
 0x2c9   : > { %v6816_v12 = vmul.f32 %v6735_v32, %v8337_v13  ;;  %v6821_v24 = vmul.f32 %v6742_v21, %v8339_v60  ;;  %v6825_v36 = vpop.eup %5213  ;;  %v2240_v32 = vmax.f32 %v6751_v35, %v2239_v47  ;;  %v2742_v34 = vadd.f32 %v2741_v42, %v2740_v44 }
 0x2ca   : > { %v6830_v18 = vmul.f32 %v6753_v49, %v8341_v14  ;;  %v6834_v25 = vadd.f32 %v6793_v31, %v2755_v23  ;;  %v2743_v21 = vrot.slane %v6808_v39, 4  ;;  %v2459_v60 = vsub.f32 %v6698_v63, %v2220_v9  ;;  %v6860_v49 = vpop.f32.mrf.mxu1 }
 0x2cb   : > { %8338 = vst [vmem:[#allocation99_spill] sm:$0xff] %v6816_v12  ;;  %8340 = vst [vmem:[#allocation100_spill] sm:$0xff] %v6821_v24  ;;  %v2780_v13 = vadd.f32 %v6800_v8, %v2779_v30  ;;  %v2232_v12 = vmax.f32 %v2230_v5, %v2231_v37  ;;  %v2224_v62 = vmax.f32 %v2222_v22, %v2223_v43  ;;  %v2253_v57 = vrot.slane %v2252_v59, 2 }
 0x2cc   : > { %8342 = vst [vmem:[#allocation101_spill] sm:$0xff] %v6830_v18  ;;  %8343 = vst [vmem:[#allocation102_spill] sm:$0xff] %v6834_v25  ;;  %v6839_v15 = vpop.eup %5215  ;;  %5227 = vrcp.f32 %v2736_v2  ;;  %v2730_v7 = vadd.f32 %v2729_v51, %v2728_v28  ;;  %v2767_v44 = vrot.slane %v6825_v36, 4  ;;  %v2237_v23 = vrot.slane %v2236_v56, 1 }
 0x2cd   : > { %v6845_v42 = vpop.eup %5217  ;;  %5229 = vrcp.f32 %v2724_v52  ;;  %v2241_v9 = vrot.slane %v2240_v32, 2  ;;  %v2744_v37 = vadd.f32 %v6808_v39, %v2743_v21  ;;  %v2551_v30 = vmul.f32 1.442695, %v2459_v60 }
 0x2ce   : > { %8344 = vst [vmem:[#allocation103_spill] sm:$0xff] %v6845_v42  ;;  %v6848_v5 = vpop.eup %5219  ;;  %5231 = vrcp.f32 %v2742_v34  ;;  %v2781_v43 = vrot.slane %v2780_v13, 2  ;;  %v2461_v47 = vsub.f32 %v6690_v61, %v2232_v12  ;;  %v2225_v2 = vrot.slane %v2224_v62, 1 }
 0x2cf   : > { %8345 = vst [vmem:[#allocation104_spill] sm:$0xff] %v6848_v5  ;;  %v6852_v28 = vpop.eup %5221  ;;  %v2254_v51 = vmax.f32 %v2252_v59, %v2253_v57  ;;  %5233 = vrcp.f32 %v2730_v7  ;;  %v2768_v14 = vadd.f32 %v6825_v36, %v2767_v44  ;;  %v2257_v63 = vrot.slane %v6765_v33, 4 }
 0x2d0   : > { %8346 = vst [vmem:[#allocation105_spill] sm:$0xff] %v6852_v28  ;;  %v6855_v52 = vpop.eup %5223  ;;  %v2245_v34 = vrot.slane %v6774_v50, 4  ;;  %v2761_v21 = vrot.slane %v6845_v42, 4  ;;  %v2749_v60 = vrot.slane %v6848_v5, 4  ;;  %v2238_v22 = vmax.f32 %v2236_v56, %v2237_v23  ;;  %v6870_v56 = vpop.f32.mrf.mxu1 }
 0x2d1   : > { %v2242_v31 = vmax.f32 %v2240_v32, %v2241_v9  ;;  %v6864_v61 = vpop.eup %5225  ;;  %v2745_v59 = vrot.slane %v2744_v37, 2  ;;  %v2785_v12 = vrot.slane %v6852_v28, 4  ;;  %5235 = vpow2.f32 %v2551_v30 }
 0x2d2   : > { %v2246_v57 = vmax.f32 %v6774_v50, %v2245_v34  ;;  %v2782_v7 = vadd.f32 %v2781_v43, %v2780_v13  ;;  %v2555_v44 = vmul.f32 1.442695, %v2461_v47  ;;  %v2226_v18 = vmax.f32 %v2224_v62, %v2225_v2 }
 0x2d3   : > { %v2255_v24 = vrot.slane %v2254_v51, 1  ;;  %v2769_v39 = vrot.slane %v2768_v14, 2  ;;  %v2258_v25 = vmax.f32 %v6765_v33, %v2257_v63  ;;  %v2263_v40 = vrot.slane %v6804_v45, 4 }
 0x2d4   : > { %v2247_v6 = vrot.slane %v2246_v57, 2  ;;  %v2750_v32 = vadd.f32 %v6848_v5, %v2749_v60  ;;  %v2773_v23 = vrot.slane %v6864_v61, 4  ;;  %v2462_v9 = vsub.f32 %v6708_v4, %v2238_v22  ;;  %v6883_v4 = vpop.f32.mrf.mxu1 }
 0x2d5   : > { %v2243_v30 = vrot.slane %v2242_v31, 1  ;;  %v6875_v34 = vadd.f32 %v2745_v59, %v2744_v37  ;;  %v6878_v13 = vadd.f32 %v6845_v42, %v2761_v21  ;;  %v2786_v62 = vadd.f32 %v6852_v28, %v2785_v12 }
 0x2d6   : > { %v2248_v63 = vmax.f32 %v2246_v57, %v2247_v6  ;;  %v2783_v43 = vrot.slane %v2782_v7, 1  ;;  %5237 = vpow2.f32 %v2555_v44  ;;  %v2460_v47 = vsub.f32 %v6718_v16, %v2226_v18 }
 0x2d7   : > { %8347 = vst [vmem:[#allocation106_spill] sm:$0xff] %v6875_v34  ;;  %8348 = vst [vmem:[#allocation107_spill] sm:$0xff] %v6878_v13  ;;  %v2256_v2 = vmax.f32 %v2254_v51, %v2255_v24  ;;  %v2770_v19 = vadd.f32 %v2769_v39, %v2768_v14  ;;  %v2259_v60 = vrot.slane %v2258_v25, 2  ;;  %v2264_v0 = vmax.f32 %v6804_v45, %v2263_v40  ;;  %v8443_v13 = vld [vmem:[#allocation40_spill] sm:$0xff] }
 0x2d8   : > { %v2249_v5 = vrot.slane %v2248_v63, 1  ;;  %v2751_v37 = vrot.slane %v2750_v32, 2  ;;  %v2774_v21 = vadd.f32 %v6864_v61, %v2773_v23  ;;  %v2557_v59 = vmul.f32 1.442695, %v2462_v9 }
 0x2d9   : > { %v6885_v22 = vpop.eup %5227  ;;  %v2244_v12 = vmax.f32 %v2242_v31, %v2243_v30  ;;  %v8351_v57 = vunpack.c.h.bf16 %v6247_v38  ;;  %v2787_v24 = vrot.slane %v2786_v62, 2  ;;  %v2275_v40 = vrot.slane %v6790_v20, 4 }
 0x2da   : > { %8349 = vst [vmem:[#allocation108_spill] sm:$0xff] %v6885_v22  ;;  %v6888_v6 = vpop.eup %5229  ;;  %v2250_v39 = vmax.f32 %v2248_v63, %v2249_v5  ;;  %v8354_v14 = vunpack.c.h.bf16 %v6265_v10  ;;  %v2553_v31 = vmul.f32 1.442695, %v2460_v47  ;;  %v2465_v23 = vsub.f32 %v6737_v41, %v2256_v2 }
 0x2db   : > { %8350 = vst [vmem:[#allocation109_spill] sm:$0xff] %v6888_v6  ;;  %v6893_v16 = vmul.f32 %v6825_v36, %v8351_v57  ;;  %v6896_v18 = vpop.eup %5231  ;;  %v2784_v38 = vadd.f32 %v2783_v43, %v2782_v7  ;;  %v2771_v9 = vrot.slane %v2770_v19, 1  ;;  %v2260_v36 = vmax.f32 %v2258_v25, %v2259_v60  ;;  %v6905_v57 = vpop.f32.mrf.mxu1 }
 0x2dc   : > { %8353 = vst [vmem:[#allocation111_spill] sm:$0xff] %v6896_v18  ;;  %v6902_v44 = vmul.f32 %v6800_v8, %v8354_v14  ;;  %v2265_v30 = vrot.slane %v2264_v0, 2  ;;  %v6907_v5 = vpop.eup %5233  ;;  %v6909_v63 = vadd.f32 %v2751_v37, %v2750_v32  ;;  %v2775_v18 = vrot.slane %v2774_v21, 2 }
 0x2dd   : > { %8352 = vst [vmem:[#allocation110_spill] sm:$0xff] %v6893_v16  ;;  %8356 = vst [vmem:[#allocation113_spill] sm:$0xff] %v6907_v5  ;;  %5239 = vpow2.f32 %v2557_v59  ;;  %v2463_v10 = vsub.f32 %v6751_v35, %v2244_v12  ;;  %v2788_v14 = vadd.f32 %v2787_v24, %v2786_v62  ;;  %v2464_v47 = vsub.f32 %v6774_v50, %v2250_v39  ;;  %v6919_v35 = vpop.f32.mrf.mxu1  ;;  %v5140_v39 = vld [vmem:[#allocation10 + $0x30] sm:$0xff]  }
 0x2de   : > { %8355 = vst [vmem:[#allocation112_spill] sm:$0xff] %v6902_v44  ;;  %8357 = vst [vmem:[#allocation114_spill] sm:$0xff] %v6909_v63  ;;  %v2276_v41 = vmax.f32 %v6790_v20, %v2275_v40  ;;  %v6915_v7 = vpop.eup %5235  ;;  %5241 = vpow2.f32 %v2553_v31  ;;  %v2563_v25 = vmul.f32 1.442695, %v2465_v23  ;;  %v2281_v43 = vrot.slane %v6823_v1, 4  ;;  %v5141_v40 = vld [vmem:[#allocation10 + $0x28] sm:$0xff]   ;;  %4894 = vmatprep.subr.bf16.mxu0 %v5140_v39 }
 0x2df   : > { %8358 = vst [vmem:[#allocation115_spill] sm:$0xff] %v6915_v7  ;;  %v2299_v32 = vrot.slane %v6860_v49, 4  ;;  %5243 = vrcp.f32 %v2784_v38  ;;  %v2772_v2 = vadd.f32 %v2771_v9, %v2770_v19  ;;  %v2261_v60 = vrot.slane %v2260_v36, 1  ;;  %4895 = vmatpush3.bf16.msra.mxu0 %v5140_v39 }
 0x2e0   : > { %v2266_v37 = vmax.f32 %v2264_v0, %v2265_v30  ;;  %v2776_v59 = vadd.f32 %v2775_v18, %v2774_v21  ;;  %v8359_v62 = vunpack.c.h.bf16 %v6238_v27  ;;  %v2559_v12 = vmul.f32 1.442695, %v2463_v10  ;;  %4896 = vmatprep.subr.bf16.mxu0 %v5141_v40 }
 0x2e1   : > { %v2300_v24 = vmax.f32 %v6860_v49, %v2299_v32  ;;  %v2791_v31 = vrot.slane %v6915_v7, 4  ;;  %v2561_v23 = vmul.f32 1.442695, %v2464_v47  ;;  %v2277_v38 = vrot.slane %v2276_v41, 2  ;;  %v6934_v32 = vpop.f32.mrf.mxu1 }
 0x2e2   : > { %v6924_v50 = vmul.f32 %v6864_v61, %v8359_v62  ;;  %v2287_v19 = vrot.slane %v6870_v56, 4  ;;  %v2789_v0 = vrot.slane %v2788_v14, 1  ;;  %5245 = vpow2.f32 %v2563_v25 }
 0x2e3   : > { %v2282_v21 = vmax.f32 %v6823_v1, %v2281_v43  ;;  %v2301_v18 = vrot.slane %v2300_v24, 2  ;;  %v6930_v27 = vpop.eup %5237  ;;  %v2262_v61 = vmax.f32 %v2260_v36, %v2261_v60  ;;  %v2267_v9 = vrot.slane %v2266_v37, 1  ;;  %v5142_v43 = vld [vmem:[#allocation10 + $0x20] sm:$0xff]   ;;  %4897 = vmatpush3.bf16.msra.mxu0 %v5141_v40 }
 0x2e4   : > { %8360 = vst [vmem:[#allocation116_spill] sm:$0xff] %v6924_v50  ;;  %8361 = vst [vmem:[#allocation117_spill] sm:$0xff] %v6930_v27  ;;  %v2269_v30 = vrot.slane %v6843_v46, 4  ;;  %v2288_v10 = vmax.f32 %v6870_v56, %v2287_v19  ;;  %v2777_v47 = vrot.slane %v2776_v59, 1  ;;  %5247 = vpow2.f32 %v2559_v12  ;;  %4898 = vmatprep.subr.bf16.mxu0 %v5142_v43 }
 0x2e5   : > { %v2302_v62 = vmax.f32 %v2300_v24, %v2301_v18  ;;  %v2305_v25 = vrot.slane %v6883_v4, 4  ;;  %v2792_v8 = vadd.f32 %v6915_v7, %v2791_v31  ;;  %5249 = vpow2.f32 %v2561_v23  ;;  %v6942_v18 = vpop.f32.mrf.mxu1 }
 0x2e6   : > { %v2278_v51 = vmax.f32 %v2276_v41, %v2277_v38  ;;  %v2289_v36 = vrot.slane %v2288_v10, 2  ;;  %5251 = vrcp.f32 %v2772_v2  ;;  %v2790_v60 = vadd.f32 %v2789_v0, %v2788_v14 }
 0x2e7   : > { %v2283_v22 = vrot.slane %v2282_v21, 2  ;;  %v2293_v19 = vrot.slane %v6905_v57, 4  ;;  %v2803_v5 = vrot.slane %v6930_v27, 4  ;;  %v2466_v39 = vsub.f32 %v6765_v33, %v2262_v61  ;;  %v6957_v31 = vpop.f32.mrf.mxu1  ;;  %4899 = vmatpush3.bf16.msra.mxu0 %v5142_v43 }
 0x2e8   : > { %v2268_v12 = vmax.f32 %v2266_v37, %v2267_v9  ;;  %v2270_v24 = vmax.f32 %v6843_v46, %v2269_v30  ;;  %v2778_v6 = vadd.f32 %v2777_v47, %v2776_v59  ;;  %v2303_v41 = vrot.slane %v2302_v62, 1 }
 0x2e9   : > { %v2306_v2 = vmax.f32 %v6883_v4, %v2305_v25  ;;  %v2793_v23 = vrot.slane %v2792_v8, 2  ;;  %v2279_v38 = vrot.slane %v2278_v51, 1  ;;  %v2290_v0 = vmax.f32 %v2288_v10, %v2289_v36 }
 0x2ea   : > { %v6946_v14 = vpop.eup %5239  ;;  %v2323_v33 = vrot.slane %v6919_v35, 4  ;;  %5253 = vrcp.f32 %v2790_v60  ;;  %v2284_v37 = vmax.f32 %v2282_v21, %v2283_v22  ;;  %v2294_v61 = vmax.f32 %v6905_v57, %v2293_v19 }
 0x2eb   : > { %8362 = vst [vmem:[#allocation118_spill] sm:$0xff] %v6946_v14  ;;  %v2311_v40 = vrot.slane %v6934_v32, 4  ;;  %v6951_v59 = vpop.eup %5241  ;;  %v6954_v9 = vadd.f32 %v6930_v27, %v2803_v5  ;;  %v2565_v30 = vmul.f32 1.442695, %v2466_v39  ;;  %v2467_v47 = vsub.f32 %v6804_v45, %v2268_v12 }
 0x2ec   : > { %8363 = vst [vmem:[#allocation119_spill] sm:$0xff] %v6951_v59  ;;  %v2271_v25 = vrot.slane %v2270_v24, 2  ;;  %v6959_v10 = vpop.eup %5243  ;;  %5255 = vrcp.f32 %v2778_v6  ;;  %v2809_v22 = vrot.slane %v6946_v14, 4  ;;  %v2304_v21 = vmax.f32 %v2302_v62, %v2303_v41  ;;  %v6970_v41 = vpop.f32.mrf.mxu1 }
 0x2ed   : > { %8364 = vst [vmem:[#allocation120_spill] sm:$0xff] %v6954_v9  ;;  %8365 = vst [vmem:[#allocation121_spill] sm:$0xff] %v6959_v10  ;;  %v2307_v36 = vrot.slane %v2306_v2, 2  ;;  %v6962_v60 = vadd.f32 %v2793_v23, %v2792_v8  ;;  %v2280_v19 = vmax.f32 %v2278_v51, %v2279_v38  ;;  %v2291_v44 = vrot.slane %v2290_v0, 1 }
 0x2ee   : > { %v2324_v5 = vmax.f32 %v6919_v35, %v2323_v33  ;;  %v2797_v39 = vrot.slane %v6951_v59, 4  ;;  %v2285_v45 = vrot.slane %v2284_v37, 1  ;;  %v2295_v12 = vrot.slane %v2294_v61, 2 }
 0x2ef   : > { %8366 = vst [vmem:[#allocation122_spill] sm:$0xff] %v6962_v60  ;;  %v2312_v50 = vmax.f32 %v6934_v32, %v2311_v40  ;;  %v6967_v43 = vpop.eup %5245  ;;  %5257 = vpow2.f32 %v2565_v30  ;;  %v2567_v10 = vmul.f32 1.442695, %v2467_v47  ;;  %v2272_v62 = vmax.f32 %v2270_v24, %v2271_v25  ;;  %v6990_v40 = vpop.f32.mrf.mxu1 }
 0x2f0   : > { %8367 = vst [vmem:[#allocation123_spill] sm:$0xff] %v6967_v43  ;;  %v6973_v51 = vadd.f32 %v6946_v14, %v2809_v22  ;;  %v2473_v8 = vsub.f32 %v6860_v49, %v2304_v21  ;;  %v2308_v23 = vmax.f32 %v2306_v2, %v2307_v36  ;;  %v2329_v38 = vrot.slane %v6942_v18, 4 }
 0x2f1   : > { %v6977_v33 = vpop.eup %5247  ;;  %v2469_v27 = vsub.f32 %v6790_v20, %v2280_v19  ;;  %v2292_v6 = vmax.f32 %v2290_v0, %v2291_v44  ;;  %v2325_v30 = vrot.slane %v2324_v5, 2  ;;  %v6984_v24 = vadd.f32 %v6951_v59, %v2797_v39 }
 0x2f2   : > { %8368 = vst [vmem:[#allocation124_spill] sm:$0xff] %v6973_v51  ;;  %8369 = vst [vmem:[#allocation125_spill] sm:$0xff] %v6977_v33  ;;  %v6981_v47 = vpop.eup %5249  ;;  %v2286_v25 = vmax.f32 %v2284_v37, %v2285_v45  ;;  %v2296_v22 = vmax.f32 %v2294_v61, %v2295_v12  ;;  %v2313_v14 = vrot.slane %v2312_v50, 2  ;;  %5259 = vpow2.f32 %v2567_v10  ;;  %v5143_v45 = vld [vmem:[#allocation10 + $0x18] sm:$0xff]  }
 0x2f3   : > { %8370 = vst [vmem:[#allocation126_spill] sm:$0xff] %v6981_v47  ;;  %v6986_v49 = vpop.eup %5251  ;;  %v2273_v2 = vrot.slane %v2272_v62, 1  ;;  %v2317_v21 = vrot.slane %v6957_v31, 4  ;;  %v2347_v36 = vrot.slane %v6970_v41, 4  ;;  %v2815_v20 = vrot.slane %v6977_v33, 4  ;;  %4900 = vmatprep.subr.bf16.mxu0 %v5143_v45 }
 0x2f4   : > { %8371 = vst [vmem:[#allocation127_spill] sm:$0xff] %v6986_v49  ;;  %v2579_v44 = vmul.f32 1.442695, %v2473_v8  ;;  %v2309_v0 = vrot.slane %v2308_v23, 1  ;;  %v2330_v19 = vmax.f32 %v6942_v18, %v2329_v38  ;;  %v2827_v37 = vrot.slane %v6967_v43, 4  ;;  %4901 = vmatpush3.bf16.msra.mxu0 %v5143_v45 }
 0x2f5   : > { %v2821_v61 = vrot.slane %v6981_v47, 4  ;;  %v2471_v39 = vsub.f32 %v6870_v56, %v2292_v6  ;;  %v2326_v10 = vmax.f32 %v2324_v5, %v2325_v30  ;;  %v2297_v12 = vrot.slane %v2296_v22, 1 }
 0x2f6   : > { %v2314_v49 = vmax.f32 %v2312_v50, %v2313_v14  ;;  %v2348_v16 = vmax.f32 %v6970_v41, %v2347_v36  ;;  %v2335_v59 = vrot.slane %v6990_v40, 4  ;;  %v2571_v8 = vmul.f32 1.442695, %v2469_v27  ;;  %v5144_v36 = vld [vmem:[#allocation10 + $0x10] sm:$0xff]  }
 0x2f7   : > { %v6999_v7 = vpop.eup %5253  ;;  %v2470_v28 = vsub.f32 %v6823_v1, %v2286_v25  ;;  %v2274_v38 = vmax.f32 %v2272_v62, %v2273_v2  ;;  %v2318_v42 = vmax.f32 %v6957_v31, %v2317_v21  ;;  %v2816_v60 = vadd.f32 %v6977_v33, %v2815_v20  ;;  %v5145_v1 = vld [vmem:[#allocation10 + $0x8] sm:$0xff]   ;;  %4902 = vmatprep.subr.bf16.mxu0 %v5144_v36 }
 0x2f8   : > { %8372 = vst [vmem:[#allocation128_spill] sm:$0xff] %v6999_v7  ;;  %5261 = vpow2.f32 %v2579_v44  ;;  %v2310_v56 = vmax.f32 %v2308_v23, %v2309_v0  ;;  %v2331_v5 = vrot.slane %v2330_v19, 2  ;;  %v2828_v14 = vadd.f32 %v6967_v43, %v2827_v37  ;;  %4903 = vmatpush3.bf16.msra.mxu0 %v5144_v36 }
 0x2f9   : > { %v7004_v50 = vpop.eup %5255  ;;  %v2822_v6 = vadd.f32 %v6981_v47, %v2821_v61  ;;  %v2575_v30 = vmul.f32 1.442695, %v2471_v39  ;;  %v2327_v27 = vrot.slane %v2326_v10, 1  ;;  %v2298_v62 = vmax.f32 %v2296_v22, %v2297_v12  ;;  %4904 = vmatprep.subr.bf16.mxu0 %v5145_v1 }
 0x2fa   : > { %8373 = vst [vmem:[#allocation129_spill] sm:$0xff] %v7004_v50  ;;  %v2315_v25 = vrot.slane %v2314_v49, 1  ;;  %v2349_v2 = vrot.slane %v2348_v16, 2  ;;  %v2336_v21 = vmax.f32 %v6990_v40, %v2335_v59  ;;  %v2799_v20 = vrot.slane %v6984_v24, 2  ;;  %v5146_v59 = vld [vmem:[#allocation10] sm:$0xff]  }
 0x2fb   : > { %5263 = vpow2.f32 %v2571_v8  ;;  %v2468_v23 = vsub.f32 %v6843_v46, %v2274_v38  ;;  %v2319_v44 = vrot.slane %v2318_v42, 2  ;;  %v2817_v37 = vrot.slane %v2816_v60, 2 }
 0x2fc   : > { %v7011_v0 = vpop.eup %5257  ;;  %v2573_v61 = vmul.f32 1.442695, %v2470_v28  ;;  %v2474_v39 = vsub.f32 %v6883_v4, %v2310_v56  ;;  %v2332_v45 = vmax.f32 %v2330_v19, %v2331_v5  ;;  %v2829_v22 = vrot.slane %v2828_v14, 2  ;;  %4905 = vmatpush3.bf16.msra.mxu0 %v5145_v1 }
 0x2fd   : > { %8374 = vst [vmem:[#allocation130_spill] sm:$0xff] %v7011_v0  ;;  %v2823_v12 = vrot.slane %v2822_v6, 2  ;;  %5265 = vpow2.f32 %v2575_v30  ;;  %v2328_v43 = vmax.f32 %v2326_v10, %v2327_v27  ;;  %v2472_v8 = vsub.f32 %v6905_v57, %v2298_v62  ;;  %4906 = vmatprep.subr.bf16.mxu0 %v5146_v59 }
 0x2fe   : > { %v2316_v47 = vmax.f32 %v2314_v49, %v2315_v25  ;;  %v2350_v46 = vmax.f32 %v2348_v16, %v2349_v2  ;;  %v2337_v38 = vrot.slane %v2336_v21, 2  ;;  %v7016_v33 = vadd.f32 %v2799_v20, %v6984_v24 }
 0x2ff   : > { %v2833_v28 = vrot.slane %v7011_v0, 4  ;;  %v2569_v7 = vmul.f32 1.442695, %v2468_v23  ;;  %v2320_v4 = vmax.f32 %v2318_v42, %v2319_v44  ;;  %v7019_v19 = vpop.eup %5259  ;;  %v7021_v56 = vadd.f32 %v2817_v37, %v2816_v60 }
 0x300   : > { %8375 = vst [vmem:[#allocation131_spill] sm:$0xff] %v7016_v33  ;;  %8376 = vst [vmem:[#allocation132_spill] sm:$0xff] %v7019_v19  ;;  %5267 = vpow2.f32 %v2573_v61  ;;  %v2581_v10 = vmul.f32 1.442695, %v2474_v39  ;;  %v2333_v5 = vrot.slane %v2332_v45, 1  ;;  %v7023_v30 = vadd.f32 %v2829_v22, %v2828_v14  ;;  %4907 = vmatpush3.bf16.msra.mxu0 %v5146_v59 }
 0x301   : > { %8377 = vst [vmem:[#allocation133_spill] sm:$0xff] %v7021_v56  ;;  %v7025_v57 = vadd.f32 %v2823_v12, %v2822_v6  ;;  %v2477_v16 = vsub.f32 %v6919_v35, %v2328_v43  ;;  %v8380_v24 = vrot.slane %v6654_v3, 4  ;;  %v2577_v42 = vmul.f32 1.442695, %v2472_v8  ;;  %v8406_v56 = vld [vmem:[#allocation95_spill] sm:$0xff] }
 0x302   : > { %8378 = vst [vmem:[#allocation134_spill] sm:$0xff] %v7023_v30  ;;  %v2475_v27 = vsub.f32 %v6934_v32, %v2316_v47  ;;  %v2351_v60 = vrot.slane %v2350_v46, 1  ;;  %v2338_v36 = vmax.f32 %v2336_v21, %v2337_v38  ;;  %v7033_v62 = vadd.f32 %v7011_v0, %v2833_v28  ;;  %v8403_v0 = vld [vmem:[#allocation28_spill] sm:$0xff]  ;;  %v8408_v30 = vld [vmem:[#allocation29_spill] sm:$0xff] }
 0x303   : > { %8379 = vst [vmem:[#allocation135_spill] sm:$0xff] %v7025_v57  ;;  %v2648_v49 = vadd.f32 %v6654_v3, %v8380_v24  ;;  %5269 = vpow2.f32 %v2569_v7  ;;  %v2321_v14 = vrot.slane %v2320_v4, 1  ;;  %v2653_v6 = vrot.slane %v6669_v58, 4 }
 0x304   : > { %8381 = vst [vmem:[#allocation136_spill] sm:$0xff] %v7033_v62  ;;  %5271 = vpow2.f32 %v2581_v10  ;;  %v2334_v43 = vmax.f32 %v2332_v45, %v2333_v5  ;;  %v2587_v47 = vmul.f32 1.442695, %v2477_v16  ;;  %v2643_v2 = vrot.slane %v6715_v11, 2 }
 0x305   : > { %v7038_v25 = vpop.eup %5261  ;;  %v2649_v21 = vrot.slane %v2648_v49, 2  ;;  %5273 = vpow2.f32 %v2577_v42  ;;  %v2583_v7 = vmul.f32 1.442695, %v2475_v27  ;;  %v2352_v20 = vmax.f32 %v2350_v46, %v2351_v60 }
 0x306   : > { %8382 = vst [vmem:[#allocation137_spill] sm:$0xff] %v7038_v25  ;;  %v2339_v23 = vrot.slane %v2338_v36, 1  ;;  %v2322_v44 = vmax.f32 %v2320_v4, %v2321_v14  ;;  %v8383_v37 = vrot.slane %v6671_v54, 1  ;;  %v2654_v39 = vadd.f32 %v6669_v58, %v2653_v6 }
 0x307   : > { %v2659_v45 = vrot.slane %v6651_v55, 4  ;;  %v2875_v12 = vrot.slane %v7038_v25, 4  ;;  %v2478_v59 = vsub.f32 %v6942_v18, %v2334_v43  ;;  %v2639_v8 = vrot.slane %v6661_v48, 1 }
 0x308   : > { %v7045_v61 = vadd.f32 %v8383_v37, %v6671_v54  ;;  %v7049_v22 = vpop.eup %5263  ;;  %v2665_v46 = vrot.slane %v6659_v29, 4  ;;  %5275 = vpow2.f32 %v2587_v47  ;;  %v2644_v38 = vadd.f32 %v2643_v2, %v6715_v11 }
 0x309   : > { %8384 = vst [vmem:[#allocation138_spill] sm:$0xff] %v7049_v22  ;;  %v2650_v28 = vadd.f32 %v2649_v21, %v2648_v49  ;;  %v2701_v54 = vrot.slane %v6855_v52, 4  ;;  %5277 = vpow2.f32 %v2583_v7  ;;  %v2481_v10 = vsub.f32 %v6970_v41, %v2352_v20 }
 0x30a   : > { %v7057_v4 = vpop.eup %5265  ;;  %v2340_v5 = vmax.f32 %v2338_v36, %v2339_v23  ;;  %v2707_v16 = vrot.slane %v6776_v53, 4  ;;  %v2476_v18 = vsub.f32 %v6957_v31, %v2322_v44  ;;  %v8386_v24 = vrot.slane %v6724_v17, 1 }
 0x30b   : > { %8385 = vst [vmem:[#allocation139_spill] sm:$0xff] %v7057_v4  ;;  %v2655_v27 = vrot.slane %v2654_v39, 2  ;;  %v2660_v11 = vadd.f32 %v6651_v55, %v2659_v45  ;;  %v7069_v49 = vadd.f32 %v7038_v25, %v2875_v12  ;;  %v2589_v60 = vmul.f32 1.442695, %v2478_v59  ;;  %v8398_v12 = vld [vmem:[#allocation94_spill] sm:$0xff]  ;;  %v8402_v25 = vld [vmem:[#allocation87_spill] sm:$0xff] }
 0x30c   : > { %v7065_v42 = vadd.f32 %v8386_v24, %v6724_v17  ;;  %v7072_v14 = vadd.f32 %v2639_v8, %v6661_v48  ;;  %v2666_v41 = vadd.f32 %v6659_v29, %v2665_v46  ;;  %v2645_v31 = vrot.slane %v2644_v38, 1  ;;  %v8392_v8 = vld [vmem:[#allocation97_spill] sm:$0xff]  ;;  %v8394_v24 = vld [vmem:[#allocation26_spill] sm:$0xff] }
 0x30d   : > { %8387 = vst [vmem:[#allocation140_spill] sm:$0xff] %v7069_v49  ;;  %v7075_v36 = vpop.eup %5267  ;;  %v2651_v6 = vrot.slane %v2650_v28, 1  ;;  %v8389_v43 = vrot.slane %v6783_v26, 4  ;;  %v2702_v47 = vadd.f32 %v6855_v52, %v2701_v54  ;;  %v2595_v21 = vmul.f32 1.442695, %v2481_v10 }
 0x30e   : > { %8388 = vst [vmem:[#allocation141_spill] sm:$0xff] %v7075_v36  ;;  %v2479_v7 = vsub.f32 %v6990_v40, %v2340_v5  ;;  %v2708_v48 = vadd.f32 %v6776_v53, %v2707_v16  ;;  %v7084_v20 = vmul.f32 1.442695, %v2476_v18  ;;  %v2656_v23 = vadd.f32 %v2655_v27, %v2654_v39 }
 0x30f   : > { %v2696_v17 = vadd.f32 %v6783_v26, %v8389_v43  ;;  %v2661_v44 = vrot.slane %v2660_v11, 2  ;;  %v2713_v37 = vrot.slane %v6839_v15, 4  ;;  %5279 = vpow2.f32 %v2589_v60  ;;  %v8396_v43 = vld [vmem:[#allocation85_spill] sm:$0xff] }
 0x310   : > { %8390 = vst [vmem:[#allocation142_spill] sm:$0xff] %v7084_v20  ;;  %v7087_v45 = vpop.eup %5269  ;;  %v2667_v59 = vrot.slane %v2666_v41, 2  ;;  %v2691_v46 = vrot.slane %v8392_v8, 2  ;;  %v7093_v10 = vadd.f32 %v2645_v31, %v2644_v38  ;;  %v7095_v40 = vadd.f32 %v2651_v6, %v2650_v28 }
 0x311   : > { %8391 = vst [vmem:[#allocation143_spill] sm:$0xff] %v7087_v45  ;;  %v7091_v54 = vpop.eup %5271  ;;  %v2697_v5 = vrot.slane %v2696_v17, 2  ;;  %v2703_v16 = vrot.slane %v2702_v47, 2  ;;  %5281 = vpow2.f32 %v2595_v21  ;;  %v2591_v39 = vmul.f32 1.442695, %v2479_v7  ;;  %v8400_v21 = vld [vmem:[#allocation27_spill] sm:$0xff] }
 0x312   : > { %8393 = vst [vmem:[#allocation97_spill] sm:$0xff] %v7091_v54  ;;  %v2709_v18 = vrot.slane %v2708_v48, 2  ;;  %v8395_v27 = vunpack.c.h.bf16 %v8394_v24  ;;  %v7100_v1 = vpop.eup %5273  ;;  %v2657_v60 = vrot.slane %v2656_v23, 1  ;;  %v2662_v35 = vadd.f32 %v2661_v44, %v2660_v11 }
 0x313   : > { %8397 = vst [vmem:[#allocation26_spill] sm:$0xff] %v7100_v1  ;;  %v8399_v2 = vrot.slane %v8398_v12, 1  ;;  %v2714_v28 = vadd.f32 %v6839_v15, %v2713_v37  ;;  %v2668_v31 = vadd.f32 %v2667_v59, %v2666_v41  ;;  %v2692_v6 = vadd.f32 %v2691_v46, %v8392_v8  ;;  %v8410_v41 = vld [vmem:[#allocation86_spill] sm:$0xff] }
 0x314   : > { %v3007_v32 = vmul.f32 %v8396_v43, %v8395_v27  ;;  %v8401_v7 = vunpack.c.h.bf16 %v8400_v21  ;;  %v8404_v27 = vunpack.c.h.bf16 %v8403_v0  ;;  %v8405_v43 = vld [vmem:[#allocation84_spill] sm:$0xff]  ;;  %v8407_v11 = vrot.slane %v8406_v56, 1 }
 0x315   : > { %v7105_v38 = vadd.f32 %v8399_v2, %v8398_v12  ;;  %v2698_v2 = vadd.f32 %v2697_v5, %v2696_v17  ;;  %v2704_v12 = vadd.f32 %v2703_v16, %v2702_v47  ;;  %v8409_v37 = vunpack.c.h.bf16 %v8408_v30  ;;  %v7123_v8 = vpop.eup %5275  ;;  %v8416_v47 = vld [vmem:[#allocation31_spill] sm:$0xff] }
 0x316   : > { %v3008_v24 = vmul.f32 %v8402_v25, %v8401_v7  ;;  %v3009_v57 = vmul.f32 %v8405_v43, %v8404_v27  ;;  %v7118_v44 = vadd.f32 %v8407_v11, %v8406_v56  ;;  %8411 = vst [vmem:[#allocation85_spill] sm:$0xff] %v7123_v8  ;;  %5283 = vpow2.f32 %v2591_v39  ;;  %v8412_v25 = vld [vmem:[#allocation30_spill] sm:$0xff]  ;;  %v7128_v27 = vpop.eup %5277  ;;  %v8415_v56 = vld [vmem:[#allocation93_spill] sm:$0xff] }
 0x317   : > { %v3010_v59 = vmul.f32 %v8410_v41, %v8409_v37  ;;  %v2710_v46 = vadd.f32 %v2709_v18, %v2708_v48  ;;  %v8413_v21 = vunpack.c.h.bf16 %v8412_v25  ;;  %v3071_v7 = vrot.slane %v3007_v32, 4  ;;  %8414 = vst [vmem:[#allocation94_spill] sm:$0xff] %v7128_v27  ;;  %v8418_v8 = vld [vmem:[#allocation34_spill] sm:$0xff] }
 0x318   : > { %v2663_v43 = vrot.slane %v2662_v35, 1  ;;  %v2687_v11 = vrot.slane %v8415_v56, 1  ;;  %v2715_v17 = vrot.slane %v2714_v28, 2  ;;  %v8417_v5 = vunpack.c.h.bf16 %v8416_v47 }
 0x319   : > { %v3011_v0 = vmul.f32 %v6654_v3, %v8413_v21  ;;  %v2669_v16 = vrot.slane %v2668_v31, 1  ;;  %v2693_v37 = vrot.slane %v2692_v6, 1  ;;  %v3077_v41 = vrot.slane %v3008_v24, 4 }
 0x31a   : > { %v3012_v30 = vmul.f32 %v6669_v58, %v8417_v5  ;;  %v3083_v39 = vrot.slane %v3009_v57, 4  ;;  %v7134_v48 = vadd.f32 %v2657_v60, %v2656_v23  ;;  %v2699_v18 = vrot.slane %v2698_v2, 1 }
 0x31b   : > { %v2705_v25 = vrot.slane %v2704_v12, 1  ;;  %v3089_v3 = vrot.slane %v3010_v59, 4  ;;  %v2711_v21 = vrot.slane %v2710_v46, 1  ;;  %v8419_v36 = vunpack.c.h.bf16 %v8418_v8 }
 0x31c   : > { %v3072_v62 = vadd.f32 %v3071_v7, %v3007_v32  ;;  %v3095_v19 = vrot.slane %v3011_v0, 4  ;;  %v7139_v45 = vadd.f32 %v2663_v43, %v2662_v35  ;;  %v7142_v58 = vadd.f32 %v2687_v11, %v8415_v56  ;;  %v7148_v63 = vpop.eup %5279  ;;  %v8421_v32 = vld [vmem:[#allocation32_spill] sm:$0xff] }
 0x31d   : > { %v3013_v22 = vmul.f32 %v6651_v55, %v8419_v36  ;;  %v2716_v47 = vadd.f32 %v2715_v17, %v2714_v28  ;;  %v3101_v5 = vrot.slane %v3012_v30, 4  ;;  %v7144_v50 = vadd.f32 %v2669_v16, %v2668_v31  ;;  %8420 = vst [vmem:[#allocation27_spill] sm:$0xff] %v7148_v63  ;;  %v8426_v17 = vld [vmem:[#allocation89_spill] sm:$0xff] }
 0x31e   : > { %v7146_v23 = vadd.f32 %v2693_v37, %v2692_v6  ;;  %v3078_v60 = vadd.f32 %v3077_v41, %v3008_v24  ;;  %v3084_v33 = vadd.f32 %v3083_v39, %v3009_v57  ;;  %v7150_v8 = vadd.f32 %v2699_v18, %v2698_v2  ;;  %v7159_v6 = vpop.eup %5281  ;;  %v8424_v57 = vld [vmem:[#allocation35_spill] sm:$0xff]  ;;  %v8427_v16 = vld [vmem:[#allocation33_spill] sm:$0xff]  ;;  %v8430_v18 = vld [vmem:[#allocation38_spill] sm:$0xff] }
 0x31f   : > { %v7152_v55 = vadd.f32 %v2705_v25, %v2704_v12  ;;  %v8422_v35 = vunpack.c.h.bf16 %v8421_v32  ;;  %v3090_v7 = vadd.f32 %v3089_v3, %v3010_v59  ;;  %v7157_v43 = vadd.f32 %v2711_v21, %v2710_v46  ;;  %8423 = vst [vmem:[#allocation87_spill] sm:$0xff] %v7159_v6  ;;  %v8429_v37 = vld [vmem:[#allocation91_spill] sm:$0xff]  ;;  %v8432_v59 = vld [vmem:[#allocation88_spill] sm:$0xff] }
 0x320   : > { %v3073_v28 = vrot.slane %v3072_v62, 2  ;;  %v3096_v31 = vadd.f32 %v3095_v19, %v3011_v0  ;;  %v3107_v56 = vrot.slane %v3013_v22, 4  ;;  %v2717_v24 = vrot.slane %v2716_v47, 1  ;;  %v8433_v25 = vld [vmem:[#allocation36_spill] sm:$0xff]  ;;  %v8435_v19 = vld [vmem:[#allocation90_spill] sm:$0xff] }
 0x321   : > { %v3014_v36 = vmul.f32 %v6659_v29, %v8422_v35  ;;  %v8425_v11 = vunpack.c.h.bf16 %v8424_v57  ;;  %v8428_v12 = vunpack.c.h.bf16 %v8427_v16  ;;  %v3102_v39 = vadd.f32 %v3101_v5, %v3012_v30  ;;  %v8436_v35 = vld [vmem:[#allocation39_spill] sm:$0xff] }
 0x322   : > { %v8431_v29 = vunpack.c.h.bf16 %v8430_v18  ;;  %v8434_v3 = vunpack.c.h.bf16 %v8433_v25  ;;  %v3079_v21 = vrot.slane %v3078_v60, 2  ;;  %v3085_v32 = vrot.slane %v3084_v33, 2 }
 0x323   : > { %v3015_v2 = vmul.f32 %v8426_v17, %v8425_v11  ;;  %v3016_v41 = vmul.f32 %v8429_v37, %v8428_v12  ;;  %v8437_v63 = vunpack.c.h.bf16 %v8436_v35  ;;  %v8438_v11 = vld [vmem:[#allocation37_spill] sm:$0xff]  ;;  %v3091_v37 = vrot.slane %v3090_v7, 2 }
 0x324   : > { %v3017_v46 = vmul.f32 %v8432_v59, %v8431_v29  ;;  %v3018_v0 = vmul.f32 %v8435_v19, %v8434_v3  ;;  %v8439_v17 = vunpack.c.h.bf16 %v8438_v11  ;;  %v8440_v12 = vld [vmem:[#allocation41_spill] sm:$0xff]  ;;  %v3074_v18 = vadd.f32 %v3073_v28, %v3072_v62  ;;  %v7182_v3 = vpop.eup %5283 }
 0x325   : > { %v3019_v57 = vmul.f32 %v6783_v26, %v8437_v63  ;;  %v8441_v30 = vunpack.c.h.bf16 %v8440_v12  ;;  %v3097_v29 = vrot.slane %v3096_v31, 2  ;;  %v3108_v59 = vadd.f32 %v3107_v56, %v3013_v22  ;;  %8442 = vst [vmem:[#allocation28_spill] sm:$0xff] %v7182_v3 }
 0x326   : > { %v3020_v16 = vmul.f32 %v6855_v52, %v8439_v17  ;;  %v3113_v25 = vrot.slane %v3014_v36, 4  ;;  %v7184_v19 = vadd.f32 %v2717_v24, %v2716_v47  ;;  %v3103_v35 = vrot.slane %v3102_v39, 2 }
 0x327   : > { %v3021_v5 = vmul.f32 %v6776_v53, %v8441_v30  ;;  %v3119_v34 = vrot.slane %v3015_v2, 4  ;;  %v3125_v26 = vrot.slane %v3016_v41, 4  ;;  %v3080_v63 = vadd.f32 %v3079_v21, %v3078_v60  ;;  %v7186_v30 = vpop.f32.mrf.mxu1 }
 0x328   : > { %v3086_v11 = vadd.f32 %v3085_v32, %v3084_v33  ;;  %v3131_v51 = vrot.slane %v3017_v46, 4  ;;  %v3137_v52 = vrot.slane %v3018_v0, 4  ;;  %v3092_v17 = vadd.f32 %v3091_v37, %v3090_v7 }
 0x329   : > { %v3143_v12 = vrot.slane %v3019_v57, 4  ;;  %v3149_v9 = vrot.slane %v3020_v16, 4  ;;  %v3155_v53 = vrot.slane %v3021_v5, 4  ;;  %v3075_v62 = vrot.slane %v3074_v18, 1  ;;  %v7191_v1 = vpop.f32.mrf.mxu1 }
 0x32a   : > { %v3098_v22 = vadd.f32 %v3097_v29, %v3096_v31  ;;  %v3109_v28 = vrot.slane %v3108_v59, 2  ;;  %v3114_v56 = vadd.f32 %v3113_v25, %v3014_v36  ;;  %v8444_v47 = vunpack.c.h.bf16 %v8443_v13 }
 0x32b   : > { %v3104_v27 = vadd.f32 %v3103_v35, %v3102_v39  ;;  %v3120_v49 = vadd.f32 %v3119_v34, %v3015_v2  ;;  %v3126_v60 = vadd.f32 %v3125_v26, %v3016_v41  ;;  %v3081_v33 = vrot.slane %v3080_v63, 1 }
 0x32c   : > { %v3022_v24 = vmul.f32 %v6839_v15, %v8444_v47  ;;  %v3087_v21 = vrot.slane %v3086_v11, 1  ;;  %v3132_v32 = vadd.f32 %v3131_v51, %v3017_v46  ;;  %v3138_v7 = vadd.f32 %v3137_v52, %v3018_v0 }
 0x32d   : > { %v3093_v37 = vrot.slane %v3092_v17, 1  ;;  %v3144_v20 = vadd.f32 %v3143_v12, %v3019_v57  ;;  %v3150_v6 = vadd.f32 %v3149_v9, %v3020_v16  ;;  %v3156_v3 = vadd.f32 %v3155_v53, %v3021_v5  ;;  %v7201_v5 = vpop.f32.mrf.mxu1 }
 0x32e   : > { %v7193_v31 = vadd.f32 %v3075_v62, %v3074_v18  ;;  %v3099_v36 = vrot.slane %v3098_v22, 1  ;;  %v3110_v29 = vadd.f32 %v3109_v28, %v3108_v59  ;;  %v3115_v13 = vrot.slane %v3114_v56, 2 }
 0x32f   : > { %v3105_v25 = vrot.slane %v3104_v27, 1  ;;  %v3121_v15 = vrot.slane %v3120_v49, 2  ;;  %v3127_v39 = vrot.slane %v3126_v60, 2  ;;  %v3161_v34 = vrot.slane %v3022_v24, 4 }
 0x330   : > { %v7195_v2 = vadd.f32 %v3081_v33, %v3080_v63  ;;  %v7197_v41 = vadd.f32 %v3087_v21, %v3086_v11  ;;  %v3133_v51 = vrot.slane %v3132_v32, 2  ;;  %v3139_v46 = vrot.slane %v3138_v7, 2 }
 0x331   : > { %v7199_v0 = vadd.f32 %v3093_v37, %v3092_v17  ;;  %v3145_v9 = vrot.slane %v3144_v20, 2  ;;  %v3151_v57 = vrot.slane %v3150_v6, 2  ;;  %v3157_v16 = vrot.slane %v3156_v3, 2 }
 0x332   : > { %v7203_v18 = vadd.f32 %v3099_v36, %v3098_v22  ;;  %v3111_v59 = vrot.slane %v3110_v29, 1  ;;  %v3116_v35 = vadd.f32 %v3115_v13, %v3114_v56  ;;  %5285 = vrcp.f32 %v7045_v61  ;;  %v7211_v22 = vpop.f32.mrf.mxu1 }
 0x333   : > { %v3122_v26 = vadd.f32 %v3121_v15, %v3120_v49  ;;  %v3128_v63 = vadd.f32 %v3127_v39, %v3126_v60  ;;  %v3162_v52 = vadd.f32 %v3161_v34, %v3022_v24  ;;  %5287 = vrcp.f32 %v7065_v42 }
 0x334   : > { %v7207_v11 = vadd.f32 %v3105_v25, %v3104_v27  ;;  %v3134_v17 = vadd.f32 %v3133_v51, %v3132_v32  ;;  %v3140_v12 = vadd.f32 %v3139_v46, %v3138_v7  ;;  %5289 = vrcp.f32 %v7072_v14 }
 0x335   : > { %v3146_v53 = vadd.f32 %v3145_v9, %v3144_v20  ;;  %v3152_v62 = vadd.f32 %v3151_v57, %v3150_v6  ;;  %v3158_v28 = vadd.f32 %v3157_v16, %v3156_v3  ;;  %5291 = vrcp.f32 %v7093_v10 }
 0x336   : > { %v3117_v56 = vrot.slane %v3116_v35, 1  ;;  %5293 = vrcp.f32 %v7095_v40  ;;  %v2353_v61 = vrot.slane %v7186_v30, 4  ;;  %v2341_v42 = vrot.slane %v7191_v1, 4  ;;  %v7220_v40 = vpop.f32.mrf.mxu1 }
 0x337   : > { %v3123_v49 = vrot.slane %v3122_v26, 1  ;;  %v3129_v27 = vrot.slane %v3128_v63, 1  ;;  %v3163_v47 = vrot.slane %v3162_v52, 2  ;;  %5295 = vrcp.f32 %v7134_v48 }
 0x338   : > { %v3135_v14 = vrot.slane %v3134_v17, 1  ;;  %v3141_v20 = vrot.slane %v3140_v12, 1  ;;  %5297 = vrcp.f32 %v7139_v45  ;;  %v2354_v10 = vmax.f32 %v7186_v30, %v2353_v61  ;;  %v7243_v13 = vpop.f32.mrf.mxu1 }
 0x339   : > { %v3147_v6 = vrot.slane %v3146_v53, 1  ;;  %v3153_v3 = vrot.slane %v3152_v62, 1  ;;  %v3159_v24 = vrot.slane %v3158_v28, 1  ;;  %5299 = vrcp.f32 %v7144_v50 }
 0x33a   : > { %v3112_v60 = vadd.f32 %v3111_v59, %v3110_v29  ;;  %v7222_v33 = vadd.f32 %v3117_v56, %v3116_v35  ;;  %5301 = vrcp.f32 %v7105_v38  ;;  %v2342_v48 = vmax.f32 %v7191_v1, %v2341_v42  ;;  %v7254_v46 = vpop.f32.mrf.mxu1 }
 0x33b   : > { %v7226_v21 = vadd.f32 %v3123_v49, %v3122_v26  ;;  %v7228_v32 = vadd.f32 %v3129_v27, %v3128_v63  ;;  %v3164_v45 = vadd.f32 %v3163_v47, %v3162_v52  ;;  %5303 = vrcp.f32 %v7118_v44 }
 0x33c   : > { %v7231_v7 = vadd.f32 %v3135_v14, %v3134_v17  ;;  %v7233_v37 = vadd.f32 %v3141_v20, %v3140_v12  ;;  %5305 = vrcp.f32 %v7142_v58  ;;  %v2355_v50 = vrot.slane %v2354_v10, 2  ;;  %v7267_v56 = vpop.f32.mrf.mxu1 }
 0x33d   : > { %v7236_v36 = vadd.f32 %v3147_v6, %v3146_v53  ;;  %v7238_v29 = vadd.f32 %v3153_v3, %v3152_v62  ;;  %v7240_v38 = vadd.f32 %v3159_v24, %v3158_v28  ;;  %5307 = vrcp.f32 %v7146_v23 }
 0x33e   : > { %5309 = vrcp.f32 %v7150_v8  ;;  %v2343_v44 = vrot.slane %v2342_v48, 2  ;;  %v3165_v15 = vrot.slane %v3164_v45, 1  ;;  %v7249_v34 = vmax.f32 %v2354_v10, %v2355_v50 }
 0x33f   : > { %v5286_v25 = vpop.eup %5285  ;;  %5311 = vrcp.f32 %v7152_v55  ;;  %v2371_v23 = vrot.slane %v7201_v5, 4 }
 0x340   : > { %v5288_v58 = vpop.eup %5287  ;;  %5313 = vrcp.f32 %v7157_v43  ;;  %v3519_v39 = vmul.f32 %v5286_v25, %v7193_v31  ;;  %v7257_v43 = vmax.f32 %v2342_v48, %v2343_v44  ;;  %v3166_v16 = vadd.f32 %v3165_v15, %v3164_v45  ;;  %v7276_v15 = vpop.f32.mrf.mxu1 }
 0x341   : > { %v5290_v51 = vpop.eup %5289  ;;  %5315 = vrcp.f32 %v7184_v19  ;;  %v3520_v8 = vmul.f32 %v5288_v58, %v7195_v2  ;;  %v2359_v19 = vrot.slane %v7211_v22, 4  ;;  %v2357_v52 = vrot.slane %v7249_v34, 1 }
 0x342   : > { %v5292_v55 = vpop.eup %5291  ;;  %v3521_v9 = vmul.f32 %v5290_v51, %v7197_v41  ;;  %v3583_v57 = vpack.c.bf16 %v3519_v39, %v3519_v39  ;;  %v7264_v17 = vmax.f32 %v7201_v5, %v2371_v23 }
 0x343   : > { %v5294_v31 = vpop.eup %5293  ;;  %v3522_v59 = vmul.f32 %v5292_v55, %v7199_v0  ;;  %v3584_v35 = vpack.c.bf16 %v3520_v8, %v3520_v8 }
 0x344   : > { %v5296_v26 = vpop.eup %5295  ;;  %v3523_v2 = vmul.f32 %v5294_v31, %v7203_v18  ;;  %v3585_v63 = vpack.c.bf16 %v3521_v9, %v3521_v9  ;;  %v3727_v62 = vunpack.c.l.b16 %v3583_v57  ;;  %v2345_v18 = vrot.slane %v7257_v43, 1 }
 0x345   : > { %v5298_v41 = vpop.eup %5297  ;;  %v3524_v12 = vmul.f32 %v5296_v26, %v7207_v11  ;;  %v3586_v53 = vpack.c.bf16 %v3522_v59, %v3522_v59  ;;  %v3728_v28 = vunpack.c.l.b16 %v3584_v35 }
 0x346   : > { %v5300_v0 = vpop.eup %5299  ;;  %v3525_v61 = vmul.f32 %v5298_v41, %v3112_v60  ;;  %v3587_v42 = vpack.c.bf16 %v3523_v2, %v3523_v2  ;;  %v3729_v49 = vunpack.c.l.b16 %v3585_v63 }
 0x347   : > { %v5302_v27 = vpop.eup %5301  ;;  %v3526_v47 = vmul.f32 %v5300_v0, %v7222_v33  ;;  %v3588_v14 = vpack.c.bf16 %v3524_v12, %v3524_v12  ;;  %v3730_v20 = vunpack.c.l.b16 %v3586_v53  ;;  %v3792_v10 = vsel %vm3791_vm0, %v3728_v28, %v3727_v62  ;;  %v7286_v53 = vpop.f32.mrf.mxu1 }
 0x348   : > { %v5304_v6 = vpop.eup %5303  ;;  %v3527_v11 = vmul.f32 %v5302_v27, %v7226_v21  ;;  %v3589_v3 = vpack.c.bf16 %v3525_v61, %v3525_v61  ;;  %v3731_v24 = vunpack.c.l.b16 %v3587_v42  ;;  %v3794_v48 = vsel %vm3793_vm1, %v3729_v49, %v3792_v10 }
 0x349   : > { %v5306_v45 = vpop.eup %5305  ;;  %v3528_v60 = vmul.f32 %v5304_v6, %v7228_v32  ;;  %v3590_v50 = vpack.c.bf16 %v3526_v47, %v3526_v47  ;;  %v3732_v44 = vunpack.c.l.b16 %v3588_v14  ;;  %v3796_v25 = vsel %vm3795_vm2, %v3730_v20, %v3794_v48 }
 0x34a   : > { %v5308_v33 = vpop.eup %5307  ;;  %v3529_v58 = vmul.f32 %v5306_v45, %v7231_v7  ;;  %v3591_v39 = vpack.c.bf16 %v3527_v11, %v3527_v11  ;;  %v3733_v23 = vunpack.c.l.b16 %v3589_v3  ;;  %v3798_v21 = vsel %vm3797_vm3, %v3731_v24, %v3796_v25 }
 0x34b   : > { %v5310_v51 = vpop.eup %5309  ;;  %v3530_v8 = vmul.f32 %v5308_v33, %v7233_v37  ;;  %v3592_v55 = vpack.c.bf16 %v3528_v60, %v3528_v60  ;;  %v3734_v9 = vunpack.c.l.b16 %v3590_v50  ;;  %v3800_v32 = vsel %vm3799_vm4, %v3732_v44, %v3798_v21  ;;  %v8446_v21 = vld [vmem:[#allocation26_spill] sm:$0xff] }
 0x34c   : > { %v5312_v57 = vpop.eup %5311  ;;  %v3531_v31 = vmul.f32 %v5310_v51, %v7236_v36  ;;  %v3593_v59 = vpack.c.bf16 %v3529_v58, %v3529_v58  ;;  %v3735_v35 = vunpack.c.l.b16 %v3591_v39  ;;  %v3802_v26 = vsel %vm3801_vm5, %v3733_v23, %v3800_v32 }
 0x34d   : > { %v5314_v2 = vpop.eup %5313  ;;  %v3532_v7 = vmul.f32 %v5312_v57, %v7238_v29  ;;  %v3594_v63 = vpack.c.bf16 %v3530_v8, %v3530_v8  ;;  %v3736_v41 = vunpack.c.l.b16 %v3592_v55  ;;  %v3804_v12 = vsel %vm3803_vm6, %v3734_v9, %v3802_v26 }
 0x34e   : > { %v5316_v37 = vpop.eup %5315  ;;  %v3533_v62 = vmul.f32 %v5314_v2, %v7240_v38  ;;  %v3595_v28 = vpack.c.bf16 %v3531_v31, %v3531_v31  ;;  %v3737_v0 = vunpack.c.l.b16 %v3593_v59  ;;  %v2346_v36 = vmax.f32 %v7257_v43, %v2345_v18 }
 0x34f   : > { %v3534_v61 = vmul.f32 %v5316_v37, %v3166_v16  ;;  %v3596_v42 = vpack.c.bf16 %v3532_v7, %v3532_v7  ;;  %v3738_v49 = vunpack.c.l.b16 %v3594_v63  ;;  %v3805_v27 = vsel %vm3791_vm0, %v3736_v41, %v3735_v35  ;;  %v7299_v16 = vpop.f32.mrf.mxu1 }
 0x350   : > { %v3597_v47 = vpack.c.bf16 %v3533_v62, %v3533_v62  ;;  %v3739_v29 = vunpack.c.l.b16 %v3595_v28  ;;  %v3806_v14 = vsel %vm3793_vm1, %v3737_v0, %v3805_v27  ;;  %v2360_v20 = vmax.f32 %v7211_v22, %v2359_v19  ;;  %v8447_v0 = vld [vmem:[#allocation28_spill] sm:$0xff] }
 0x351   : > { %v3598_v10 = vpack.c.bf16 %v3534_v61, %v3534_v61  ;;  %v3740_v6 = vunpack.c.l.b16 %v3596_v42  ;;  %v3807_v38 = vsel %vm3795_vm2, %v3738_v49, %v3806_v14  ;;  %v2358_v43 = vmax.f32 %v7249_v34, %v2357_v52  ;;  %v7318_v23 = vpop.f32.mrf.mxu1  ;;  %v8448_v14 = vld [vmem:[#allocation87_spill] sm:$0xff] }
 0x352   : > { %v8445_v18 = vrot.slane %v7057_v4, 4  ;;  %v3741_v3 = vunpack.c.l.b16 %v3597_v47  ;;  %v3808_v24 = vsel %vm3797_vm3, %v3739_v29, %v3807_v38  ;;  %v2480_v19 = vsub.f32 %v7191_v1, %v2346_v36 }
 0x353   : > { %v2881_v48 = vrot.slane %v7091_v54, 4  ;;  %v3742_v45 = vunpack.c.l.b16 %v3598_v10  ;;  %v3809_v60 = vsel %vm3799_vm4, %v3740_v6, %v3808_v24  ;;  %v2377_v50 = vrot.slane %v7220_v40, 4 }
 0x354   : > { %v7304_v11 = vadd.f32 %v7057_v4, %v8445_v18  ;;  %v3810_v34 = vsel %vm3801_vm5, %v3741_v3, %v3809_v60  ;;  %v2373_v52 = vrot.slane %v7264_v17, 2  ;;  %v2361_v44 = vrot.slane %v2360_v20, 2 }
 0x355   : > { %v2395_v25 = vrot.slane %v7254_v46, 4  ;;  %v3811_v33 = vsel %vm3803_vm6, %v3742_v45, %v3810_v34  ;;  %v2482_v58 = vsub.f32 %v7186_v30, %v2358_v43  ;;  %v2383_v1 = vrot.slane %v7267_v56, 4  ;;  %v8449_v43 = vld [vmem:[#allocation142_spill] sm:$0xff] }
 0x356   : > { %v2401_v39 = vrot.slane %v7276_v15, 4  ;;  %v2869_v51 = vrot.slane %v8446_v21, 4  ;;  %v3854_v8 = vpack.c.b16 %v3811_v33, %v3804_v12  ;;  %v2593_v55 = vmul.f32 1.442695, %v2480_v19 }
 0x357   : > { %v2396_v9 = vmax.f32 %v7254_v46, %v2395_v25  ;;  %v2378_v32 = vmax.f32 %v7220_v40, %v2377_v50  ;;  %v2384_v57 = vmax.f32 %v7267_v56, %v2383_v1  ;;  %v2389_v30 = vrot.slane %v7286_v53, 4  ;;  %v8450_v50 = vld [vmem:[#allocation140_spill] sm:$0xff] }
 0x358   : > { %v2402_v31 = vmax.f32 %v7276_v15, %v2401_v39  ;;  %4908 = vmatprep.mubr.bf16.mxu0 %v3854_v8  ;;  %v2374_v59 = vmax.f32 %v7264_v17, %v2373_v52  ;;  %v2362_v35 = vmax.f32 %v2360_v20, %v2361_v44  ;;  %v2407_v2 = vrot.slane %v7318_v23, 4  ;;  %v7346_v8 = vpop.f32.mrf.mxu1 }
 0x359   : > { %v2397_v26 = vrot.slane %v2396_v9, 2  ;;  %v2597_v7 = vmul.f32 1.442695, %v2482_v58  ;;  %v2385_v63 = vrot.slane %v2384_v57, 2  ;;  %v2390_v12 = vmax.f32 %v7286_v53, %v2389_v30 }
 0x35a   : > { %v2403_v41 = vrot.slane %v2402_v31, 2  ;;  %5317 = vpow2.f32 %v2593_v55  ;;  %v2365_v37 = vrot.slane %v7243_v13, 4  ;;  %v2408_v28 = vmax.f32 %v7318_v23, %v2407_v2 }
 0x35b   : > { %v2398_v62 = vmax.f32 %v2396_v9, %v2397_v26  ;;  %v2911_v36 = vrot.slane %v8447_v0, 4  ;;  %v2386_v61 = vmax.f32 %v2384_v57, %v2385_v63  ;;  %v2391_v42 = vrot.slane %v2390_v12, 2 }
 0x35c   : > { %v2419_v17 = vrot.slane %v7299_v16, 4  ;;  %v2870_v49 = vadd.f32 %v8446_v21, %v2869_v51  ;;  %v2375_v27 = vrot.slane %v2374_v59, 1  ;;  %v2404_v47 = vmax.f32 %v2402_v31, %v2403_v41  ;;  %v8512_v21 = vld [vmem:[#allocation117_spill] sm:$0xff] }
 0x35d   : > { %v2409_v29 = vrot.slane %v2408_v28, 2  ;;  %v2923_v20 = vrot.slane %v8448_v14, 4  ;;  %5319 = vpow2.f32 %v2597_v7  ;;  %v2363_v10 = vrot.slane %v2362_v35, 1 }
 0x35e   : > { %v2379_v6 = vrot.slane %v2378_v32, 2  ;;  %v2865_v38 = vrot.slane %v7304_v11, 2  ;;  %5321 = vpow2.f32 %v8449_v43  ;;  %v2366_v18 = vmax.f32 %v7243_v13, %v2365_v37 }
 0x35f   : > { %v2399_v3 = vrot.slane %v2398_v62, 1  ;;  %v2912_v24 = vadd.f32 %v8447_v0, %v2911_v36  ;;  %v2387_v19 = vrot.slane %v2386_v61, 1  ;;  %v2392_v45 = vmax.f32 %v2390_v12, %v2391_v42 }
 0x360   : > { %v2420_v60 = vmax.f32 %v7299_v16, %v2419_v17  ;;  %v8451_v34 = vrot.slane %v8450_v50, 2  ;;  %v2376_v44 = vmax.f32 %v2374_v59, %v2375_v27  ;;  %v2405_v25 = vrot.slane %v2404_v47, 1 }
 0x361   : > { %v2410_v33 = vmax.f32 %v2408_v28, %v2409_v29  ;;  %v2871_v58 = vrot.slane %v2870_v49, 2  ;;  %v2924_v1 = vadd.f32 %v8448_v14, %v2923_v20  ;;  %v2364_v39 = vmax.f32 %v2362_v35, %v2363_v10  ;;  %v8499_v14 = vld [vmem:[#allocation49_spill] sm:$0xff] }
 0x362   : > { %v7343_v52 = vadd.f32 %v8451_v34, %v8450_v50  ;;  %v2380_v51 = vmax.f32 %v2378_v32, %v2379_v6  ;;  %v7349_v55 = vadd.f32 %v2865_v38, %v7304_v11  ;;  %v7354_v9 = vadd.f32 %v7091_v54, %v2881_v48  ;;  %v8487_v6 = vld [vmem:[#allocation104_spill] sm:$0xff]  ;;  %v8488_v48 = vld [vmem:[#allocation46_spill] sm:$0xff] }
 0x363   : > { %v2367_v57 = vrot.slane %v2366_v18, 2  ;;  %v2400_v31 = vmax.f32 %v2398_v62, %v2399_v3  ;;  %v2913_v30 = vrot.slane %v2912_v24, 2  ;;  %v2388_v59 = vmax.f32 %v2386_v61, %v2387_v19  ;;  %v8508_v54 = vld [vmem:[#allocation110_spill] sm:$0xff] }
 0x364   : > { %8452 = vst [vmem:[#allocation84_spill] sm:$0xff] %v7343_v52  ;;  %8453 = vst [vmem:[#allocation95_spill] sm:$0xff] %v7349_v55  ;;  %v2393_v26 = vrot.slane %v2392_v45, 1  ;;  %v2421_v2 = vrot.slane %v2420_v60, 2  ;;  %v2485_v7 = vsub.f32 %v7201_v5, %v2376_v44  ;;  %v2406_v35 = vmax.f32 %v2404_v47, %v2405_v25  ;;  %v7369_v47 = vpop.f32.mrf.mxu1 }
 0x365   : > { %8454 = vst [vmem:[#allocation29_spill] sm:$0xff] %v7354_v9  ;;  %v2411_v32 = vrot.slane %v2410_v33, 1  ;;  %v2425_v63 = vrot.slane %v7346_v8, 4  ;;  %v7358_v41 = vadd.f32 %v2871_v58, %v2870_v49  ;;  %v2925_v11 = vrot.slane %v2924_v1, 2 }
 0x366   : > { %v2483_v12 = vsub.f32 %v7211_v22, %v2364_v39  ;;  %v2381_v37 = vrot.slane %v2380_v51, 1  ;;  %v2368_v36 = vmax.f32 %v2366_v18, %v2367_v57  ;;  %v2489_v61 = vsub.f32 %v7254_v46, %v2400_v31  ;;  %v8462_v39 = vld [vmem:[#allocation107_spill] sm:$0xff] }
 0x367   : > { %8455 = vst [vmem:[#allocation86_spill] sm:$0xff] %v7358_v41  ;;  %v7364_v42 = vpop.eup %5317  ;;  %v7366_v5 = vadd.f32 %v2913_v30, %v2912_v24  ;;  %v2487_v17 = vsub.f32 %v7267_v56, %v2388_v59  ;;  %v2394_v27 = vmax.f32 %v2392_v45, %v2393_v26  ;;  %v2422_v49 = vmax.f32 %v2420_v60, %v2421_v2  ;;  %v8463_v59 = vld [vmem:[#allocation102_spill] sm:$0xff] }
 0x368   : > { %8457 = vst [vmem:[#allocation30_spill] sm:$0xff] %v7364_v42  ;;  %v2603_v29 = vmul.f32 1.442695, %v2485_v7  ;;  %v2490_v22 = vsub.f32 %v7276_v15, %v2406_v35  ;;  %v2412_v20 = vmax.f32 %v2410_v33, %v2411_v32  ;;  %v2426_v10 = vmax.f32 %v7346_v8, %v2425_v63  ;;  %v8465_v32 = vld [vmem:[#allocation42_spill] sm:$0xff] }
 0x369   : > { %8458 = vst [vmem:[#allocation93_spill] sm:$0xff] %v7366_v5  ;;  %v7374_v38 = vadd.f32 %v2925_v11, %v2924_v1  ;;  %v2599_v46 = vmul.f32 1.442695, %v2483_v12  ;;  %v7376_v43 = vmax.f32 %v2380_v51, %v2381_v37  ;;  %v2917_v56 = vrot.slane %v7364_v42, 4  ;;  %v8467_v11 = vld [vmem:[#allocation92_spill] sm:$0xff]  ;;  %v8493_v1 = vld [vmem:[#allocation103_spill] sm:$0xff] }
 0x36a   : > { %v7378_v18 = vpop.eup %5319  ;;  %v2369_v3 = vrot.slane %v2368_v36, 1  ;;  %v2611_v24 = vmul.f32 1.442695, %v2489_v61  ;;  %v2413_v19 = vrot.slane %v7369_v47, 4  ;;  %v2607_v60 = vmul.f32 1.442695, %v2487_v17 }
 0x36b   : > { %8459 = vst [vmem:[#allocation31_spill] sm:$0xff] %v7374_v38  ;;  %8460 = vst [vmem:[#allocation34_spill] sm:$0xff] %v7378_v18  ;;  %v7382_v45 = vpop.eup %5321  ;;  %v2488_v50 = vsub.f32 %v7286_v53, %v2394_v27  ;;  %v2423_v34 = vrot.slane %v2422_v49, 1  ;;  %5323 = vpow2.f32 %v2603_v29  ;;  %v2613_v44 = vmul.f32 1.442695, %v2490_v22  ;;  %v8470_v27 = vld [vmem:[#allocation124_spill] sm:$0xff] }
 0x36c   : > { %8461 = vst [vmem:[#allocation32_spill] sm:$0xff] %v7382_v45  ;;  %v2491_v25 = vsub.f32 %v7318_v23, %v2412_v20  ;;  %v2427_v33 = vrot.slane %v2426_v10, 2  ;;  %5325 = vpow2.f32 %v2599_v46  ;;  %v2763_v51 = vrot.slane %v8462_v39, 2  ;;  %v8471_v29 = vld [vmem:[#allocation44_spill] sm:$0xff]  ;;  %v8473_v20 = vld [vmem:[#allocation98_spill] sm:$0xff] }
 0x36d   : > { %v7392_v57 = vadd.f32 %v7364_v42, %v2917_v56  ;;  %v7394_v31 = vmax.f32 %v2368_v36, %v2369_v3  ;;  %5327 = vpow2.f32 %v2611_v24  ;;  %v2414_v53 = vmax.f32 %v7369_v47, %v2413_v19  ;;  %v8468_v36 = vld [vmem:[#allocation120_spill] sm:$0xff]  ;;  %v8474_v3 = vld [vmem:[#allocation106_spill] sm:$0xff]  ;;  %v8501_v42 = vld [vmem:[#allocation115_spill] sm:$0xff] }
 0x36e   : > { %5329 = vpow2.f32 %v2607_v60  ;;  %v2609_v30 = vmul.f32 1.442695, %v2488_v50  ;;  %v7397_v23 = vmax.f32 %v2422_v49, %v2423_v34  ;;  %v8464_v26 = vrot.slane %v8463_v59, 2  ;;  %v8476_v19 = vld [vmem:[#allocation114_spill] sm:$0xff]  ;;  %v8477_v50 = vld [vmem:[#allocation99_spill] sm:$0xff] }
 0x36f   : > { %5331 = vpow2.f32 %v2613_v44  ;;  %v7402_v7 = vmul.f32 1.442695, %v2491_v25  ;;  %v7404_v35 = vmax.f32 %v2426_v10, %v2427_v33  ;;  %v8466_v63 = vunpack.c.h.bf16 %v8465_v32  ;;  %v8478_v25 = vld [vmem:[#allocation100_spill] sm:$0xff] }
 0x370   : > { %v2758_v2 = vadd.f32 %v8464_v26, %v8463_v59  ;;  %v2764_v37 = vadd.f32 %v2763_v51, %v8462_v39  ;;  %v8469_v61 = vrot.slane %v8468_v36, 2  ;;  %v2811_v49 = vrot.slane %v8470_v27, 2  ;;  %v8480_v51 = vld [vmem:[#allocation101_spill] sm:$0xff] }
 0x371   : > { %v3026_v12 = vmul.f32 %v8467_v11, %v8466_v63  ;;  %v8472_v22 = vunpack.c.h.bf16 %v8471_v29  ;;  %v2415_v56 = vrot.slane %v2414_v53, 2  ;;  %v8475_v10 = vrot.slane %v8474_v3, 1  ;;  %v8482_v63 = vld [vmem:[#allocation131_spill] sm:$0xff] }
 0x372   : > { %v2806_v17 = vadd.f32 %v8469_v61, %v8468_v36  ;;  %v2753_v60 = vrot.slane %v8476_v19, 1  ;;  %v3179_v34 = vrot.slane %v8477_v50, 4  ;;  %5333 = vpow2.f32 %v2609_v30 }
 0x373   : > { %v3027_v46 = vmul.f32 %v8473_v20, %v8472_v22  ;;  %v7420_v24 = vadd.f32 %v8475_v10, %v8474_v3  ;;  %v2759_v44 = vrot.slane %v2758_v2, 1  ;;  %v8479_v33 = vrot.slane %v8478_v25, 4 }
 0x374   : > { %v8481_v59 = vrot.slane %v8480_v51, 4  ;;  %v2801_v11 = vrot.slane %v8482_v63, 1  ;;  %v3180_v36 = vadd.f32 %v3179_v34, %v8477_v50  ;;  %v3185_v61 = vrot.slane %v3026_v12, 4 }
 0x375   : > { %v3168_v39 = vadd.f32 %v8479_v33, %v8478_v25  ;;  %v2765_v29 = vrot.slane %v2764_v37, 1  ;;  %v2807_v22 = vrot.slane %v2806_v17, 1  ;;  %v2812_v30 = vadd.f32 %v2811_v49, %v8470_v27  ;;  %v8483_v25 = vld [vmem:[#allocation122_spill] sm:$0xff]  ;;  %v8490_v27 = vld [vmem:[#allocation96_spill] sm:$0xff] }
 0x376   : > { %v3174_v26 = vadd.f32 %v8481_v59, %v8480_v51  ;;  %v3191_v20 = vrot.slane %v3027_v46, 4  ;;  %v7434_v3 = vmax.f32 %v2414_v53, %v2415_v56  ;;  %v7437_v10 = vadd.f32 %v2753_v60, %v8476_v19  ;;  %v8485_v59 = vld [vmem:[#allocation43_spill] sm:$0xff]  ;;  %v8491_v60 = vld [vmem:[#allocation45_spill] sm:$0xff] }
 0x377   : > { %v8484_v33 = vrot.slane %v8483_v25, 1  ;;  %v8486_v15 = vunpack.c.h.bf16 %v8485_v59  ;;  %v7447_v34 = vadd.f32 %v2759_v44, %v2758_v2  ;;  %v8489_v62 = vunpack.c.h.bf16 %v8488_v48  ;;  %v8496_v44 = vld [vmem:[#allocation47_spill] sm:$0xff] }
 0x378   : > { %v3169_v53 = vrot.slane %v3168_v39, 2  ;;  %v3175_v56 = vrot.slane %v3174_v26, 2  ;;  %v7453_v19 = vadd.f32 %v2801_v11, %v8482_v63  ;;  %v8492_v58 = vunpack.c.h.bf16 %v8491_v60  ;;  %v7458_v59 = vpop.eup %5323  ;;  %v8498_v63 = vld [vmem:[#allocation105_spill] sm:$0xff] }
 0x379   : > { %v7442_v51 = vadd.f32 %v8484_v33, %v8483_v25  ;;  %v3028_v50 = vmul.f32 %v8487_v6, %v8486_v15  ;;  %v3029_v49 = vmul.f32 %v8490_v27, %v8489_v62  ;;  %v3181_v33 = vrot.slane %v3180_v36, 2  ;;  %8494 = vst [vmem:[#allocation35_spill] sm:$0xff] %v7458_v59  ;;  %v7464_v62 = vpop.eup %5325 }
 0x37a   : > { %v3030_v25 = vmul.f32 %v8493_v1, %v8492_v58  ;;  %v3186_v32 = vadd.f32 %v3185_v61, %v3026_v12  ;;  %v7460_v6 = vadd.f32 %v2765_v29, %v2764_v37  ;;  %v7462_v15 = vadd.f32 %v2807_v22, %v2806_v17  ;;  %8495 = vst [vmem:[#allocation89_spill] sm:$0xff] %v7464_v62  ;;  %v7472_v61 = vpop.eup %5327 }
 0x37b   : > { %v2813_v48 = vrot.slane %v2812_v30, 1  ;;  %v3192_v2 = vadd.f32 %v3191_v20, %v3027_v46  ;;  %v8497_v27 = vunpack.c.h.bf16 %v8496_v44  ;;  %v8500_v60 = vunpack.c.h.bf16 %v8499_v14  ;;  %8502 = vst [vmem:[#allocation33_spill] sm:$0xff] %v7472_v61  ;;  %v7474_v0 = vpop.eup %5329 }
 0x37c   : > { %v3187_v1 = vrot.slane %v3186_v32, 2  ;;  %v3197_v12 = vrot.slane %v3028_v50, 4  ;;  %v3170_v37 = vadd.f32 %v3169_v53, %v3168_v39  ;;  %v3176_v29 = vadd.f32 %v3175_v56, %v3174_v26  ;;  %8503 = vst [vmem:[#allocation91_spill] sm:$0xff] %v7474_v0  ;;  %v7476_v38 = vpop.eup %5331  ;;  %v8510_v53 = vld [vmem:[#allocation53_spill] sm:$0xff] }
 0x37d   : > { %v3034_v11 = vmul.f32 %v8498_v63, %v8497_v27  ;;  %v3035_v58 = vmul.f32 %v8501_v42, %v8500_v60  ;;  %v3193_v17 = vrot.slane %v3192_v2, 2  ;;  %v3203_v22 = vrot.slane %v3029_v49, 4  ;;  %8504 = vst [vmem:[#allocation38_spill] sm:$0xff] %v7476_v38  ;;  %v8505_v27 = vld [vmem:[#allocation48_spill] sm:$0xff]  ;;  %v8507_v63 = vld [vmem:[#allocation119_spill] sm:$0xff] }
 0x37e   : > { %v3182_v46 = vadd.f32 %v3181_v33, %v3180_v36  ;;  %v3188_v20 = vadd.f32 %v3187_v1, %v3186_v32  ;;  %v3198_v5 = vadd.f32 %v3197_v12, %v3028_v50  ;;  %v3209_v44 = vrot.slane %v3030_v25, 4  ;;  %v8513_v50 = vld [vmem:[#allocation116_spill] sm:$0xff] }
 0x37f   : > { %v8506_v14 = vunpack.c.h.bf16 %v8505_v27  ;;  %v3194_v60 = vadd.f32 %v3193_v17, %v3192_v2  ;;  %v3204_v59 = vadd.f32 %v3203_v22, %v3029_v49  ;;  %v8509_v39 = vrot.slane %v8508_v54, 4  ;;  %v8515_v2 = vld [vmem:[#allocation112_spill] sm:$0xff]  ;;  %v7493_v17 = vpop.eup %5333 }
 0x380   : > { %v8511_v56 = vunpack.c.h.bf16 %v8510_v53  ;;  %v3199_v36 = vrot.slane %v3198_v5, 2  ;;  %v3210_v32 = vadd.f32 %v3209_v44, %v3030_v25  ;;  %v8514_v33 = vrot.slane %v8513_v50, 4  ;;  %8516 = vst [vmem:[#allocation88_spill] sm:$0xff] %v7493_v17  ;;  %v8517_v44 = vld [vmem:[#allocation52_spill] sm:$0xff] }
 0x381   : > { %v3036_v42 = vmul.f32 %v8507_v63, %v8506_v14  ;;  %v3216_v26 = vadd.f32 %v8509_v39, %v8508_v54  ;;  %v7490_v12 = vadd.f32 %v2813_v48, %v2812_v30  ;;  %v3171_v27 = vrot.slane %v3170_v37, 1 }
 0x382   : > { %v3037_v4 = vmul.f32 %v8512_v21, %v8511_v56  ;;  %v3222_v1 = vadd.f32 %v8514_v33, %v8513_v50  ;;  %v3227_v49 = vrot.slane %v8515_v2, 4  ;;  %v3177_v22 = vrot.slane %v3176_v29, 1  ;;  %v8519_v50 = vld [vmem:[#allocation118_spill] sm:$0xff] }
 0x383   : > { %v3217_v14 = vrot.slane %v3216_v26, 2  ;;  %v3183_v54 = vrot.slane %v3182_v46, 1  ;;  %v3189_v63 = vrot.slane %v3188_v20, 1  ;;  %v3195_v53 = vrot.slane %v3194_v60, 1 }
 0x384   : > { %v3223_v39 = vrot.slane %v3222_v1, 2  ;;  %v3200_v21 = vadd.f32 %v3199_v36, %v3198_v5  ;;  %v3205_v56 = vrot.slane %v3204_v59, 2  ;;  %v3228_v25 = vadd.f32 %v3227_v49, %v8515_v2 }
 0x385   : > { %v8518_v52 = vunpack.c.h.bf16 %v8517_v44  ;;  %v3211_v48 = vrot.slane %v3210_v32, 2  ;;  %v3218_v33 = vadd.f32 %v3217_v14, %v3216_v26  ;;  %v3233_v41 = vrot.slane %v3034_v11, 4 }
 0x386   : > { %v3172_v55 = vadd.f32 %v3171_v27, %v3170_v37  ;;  %v3224_v9 = vadd.f32 %v3223_v39, %v3222_v1  ;;  %v3229_v28 = vrot.slane %v3228_v25, 2  ;;  %v3239_v45 = vrot.slane %v3035_v58, 4 }
 0x387   : > { %v3038_v30 = vmul.f32 %v8519_v50, %v8518_v52  ;;  %v3178_v62 = vadd.f32 %v3177_v22, %v3176_v29  ;;  %v3184_v38 = vadd.f32 %v3183_v54, %v3182_v46  ;;  %v3190_v18 = vadd.f32 %v3189_v63, %v3188_v20 }
 0x388   : > { %v3234_v61 = vadd.f32 %v3233_v41, %v3034_v11  ;;  %v7499_v17 = vadd.f32 %v3195_v53, %v3194_v60  ;;  %v3201_v5 = vrot.slane %v3200_v21, 1  ;;  %v3206_v36 = vadd.f32 %v3205_v56, %v3204_v59 }
 0x389   : > { %v3230_v2 = vadd.f32 %v3229_v28, %v3228_v25  ;;  %v7501_v49 = vadd.f32 %v3211_v48, %v3210_v32  ;;  %v3219_v44 = vrot.slane %v3218_v33, 1  ;;  %v3245_v50 = vrot.slane %v3036_v42, 4 }
 0x38a   : > { %v3235_v52 = vrot.slane %v3234_v61, 2  ;;  %v3225_v26 = vrot.slane %v3224_v9, 1  ;;  %v3240_v14 = vadd.f32 %v3239_v45, %v3035_v58  ;;  %v3251_v37 = vrot.slane %v3037_v4, 4  ;;  %v8520_v58 = vld [vmem:[#allocation109_spill] sm:$0xff] }
 0x38b   : > { %v3257_v1 = vrot.slane %v3038_v30, 4  ;;  %v3231_v27 = vrot.slane %v3230_v2, 1  ;;  %v3246_v29 = vadd.f32 %v3245_v50, %v3036_v42  ;;  %5335 = vrcp.f32 %v7420_v24  ;;  %v8521_v24 = vld [vmem:[#allocation113_spill] sm:$0xff] }
 0x38c   : > { %v3236_v39 = vadd.f32 %v3235_v52, %v3234_v61  ;;  %v7504_v41 = vadd.f32 %v3201_v5, %v3200_v21  ;;  %v3207_v11 = vrot.slane %v3206_v36, 1  ;;  %v3252_v46 = vadd.f32 %v3251_v37, %v3037_v4  ;;  %v8523_v21 = vld [vmem:[#allocation111_spill] sm:$0xff] }
 0x38d   : > { %v3258_v59 = vadd.f32 %v3257_v1, %v3038_v30  ;;  %v3213_v28 = vrot.slane %v7501_v49, 1  ;;  %v3220_v20 = vadd.f32 %v3219_v44, %v3218_v33  ;;  %5337 = vrcp.f32 %v7437_v10  ;;  %v8522_v10 = vld [vmem:[#allocation108_spill] sm:$0xff]  ;;  %v8526_v33 = vld [vmem:[#allocation121_spill] sm:$0xff] }
 0x38e   : > { %v3237_v60 = vrot.slane %v3236_v39, 1  ;;  %v3226_v32 = vadd.f32 %v3225_v26, %v3224_v9  ;;  %v3241_v45 = vrot.slane %v3240_v14, 2  ;;  %5339 = vrcp.f32 %v7447_v34  ;;  %v8524_v34 = vld [vmem:[#allocation127_spill] sm:$0xff] }
 0x38f   : > { %v3535_v61 = vmul.f32 %v8520_v58, %v3172_v55  ;;  %v3232_v42 = vadd.f32 %v3231_v27, %v3230_v2  ;;  %v3247_v22 = vrot.slane %v3246_v29, 2  ;;  %5341 = vrcp.f32 %v7460_v6  ;;  %v8525_v6 = vld [vmem:[#allocation129_spill] sm:$0xff] }
 0x390   : > { %v3536_v54 = vmul.f32 %v8521_v24, %v3178_v62  ;;  %v3238_v4 = vadd.f32 %v3237_v60, %v3236_v39  ;;  %v3253_v63 = vrot.slane %v3252_v46, 2  ;;  %v3259_v53 = vrot.slane %v3258_v59, 2 }
 0x391   : > { %5343 = vrcp.f32 %v7442_v51  ;;  %v3537_v9 = vmul.f32 %v8522_v10, %v3184_v38  ;;  %v3538_v56 = vmul.f32 %v8523_v21, %v3190_v18  ;;  %v3543_v25 = vmul.f32 %v8524_v34, %v3220_v20  ;;  %v8527_v51 = vld [vmem:[#allocation128_spill] sm:$0xff] }
 0x392   : > { %5345 = vrcp.f32 %v7453_v19  ;;  %v3208_v55 = vadd.f32 %v3207_v11, %v3206_v36  ;;  %v3242_v30 = vadd.f32 %v3241_v45, %v3240_v14  ;;  %v3544_v48 = vmul.f32 %v8525_v6, %v3226_v32 }
 0x393   : > { %5347 = vrcp.f32 %v7462_v15  ;;  %v3248_v62 = vadd.f32 %v3247_v22, %v3246_v29  ;;  %v3545_v5 = vmul.f32 %v8526_v33, %v3232_v42  ;;  %v3546_v2 = vmul.f32 %v8527_v51, %v3238_v4 }
 0x394   : > { %5349 = vrcp.f32 %v7490_v12  ;;  %v3254_v19 = vadd.f32 %v3253_v63, %v3252_v46  ;;  %v3260_v44 = vadd.f32 %v3259_v53, %v3258_v59  ;;  %v3599_v38 = vpack.c.bf16 %v3535_v61, %v3535_v61 }
 0x395   : > { %v3600_v52 = vpack.c.bf16 %v3536_v54, %v3536_v54  ;;  %v3601_v18 = vpack.c.bf16 %v3537_v9, %v3537_v9  ;;  %v3602_v50 = vpack.c.bf16 %v3538_v56, %v3538_v56  ;;  %v3607_v26 = vpack.c.bf16 %v3543_v25, %v3543_v25 }
 0x396   : > { %v3608_v36 = vpack.c.bf16 %v3544_v48, %v3544_v48  ;;  %v3609_v14 = vpack.c.bf16 %v3545_v5, %v3545_v5  ;;  %v3610_v37 = vpack.c.bf16 %v3546_v2, %v3546_v2  ;;  %v3743_v15 = vunpack.c.l.b16 %v3599_v38 }
 0x397   : > { %v3744_v1 = vunpack.c.l.b16 %v3600_v52  ;;  %v3243_v27 = vrot.slane %v3242_v30, 1  ;;  %v3745_v39 = vunpack.c.l.b16 %v3601_v18  ;;  %v3751_v29 = vunpack.c.l.b16 %v3607_v26 }
 0x398   : > { %v3752_v12 = vunpack.c.l.b16 %v3608_v36  ;;  %v5336_v11 = vpop.eup %5335  ;;  %v3249_v20 = vrot.slane %v3248_v62, 1  ;;  %v3746_v60 = vunpack.c.l.b16 %v3602_v50  ;;  %v3753_v32 = vunpack.c.l.b16 %v3609_v14 }
 0x399   : > { %v3812_v46 = vsel %vm3791_vm0, %v3744_v1, %v3743_v15  ;;  %v3539_v59 = vmul.f32 %v5336_v11, %v7499_v17  ;;  %v3754_v45 = vunpack.c.l.b16 %v3610_v37  ;;  %v3255_v22 = vrot.slane %v3254_v19, 1 }
 0x39a   : > { %v3813_v58 = vsel %vm3793_vm1, %v3745_v39, %v3812_v46  ;;  %v3819_v61 = vsel %vm3791_vm0, %v3752_v12, %v3751_v29  ;;  %v5338_v42 = vpop.eup %5337  ;;  %v3261_v24 = vrot.slane %v3260_v44, 1  ;;  %v3214_v53 = vadd.f32 %v3213_v28, %v7501_v49 }
 0x39b   : > { %v3814_v54 = vsel %vm3795_vm2, %v3746_v60, %v3813_v58  ;;  %v3820_v4 = vsel %vm3793_vm1, %v3753_v32, %v3819_v61  ;;  %v5340_v63 = vpop.eup %5339  ;;  %v3540_v10 = vmul.f32 %v5338_v42, %v7504_v41  ;;  %v3603_v9 = vpack.c.bf16 %v3539_v59, %v3539_v59 }
 0x39c   : > { %v3821_v17 = vsel %vm3795_vm2, %v3754_v45, %v3820_v4  ;;  %v5342_v21 = vpop.eup %5341  ;;  %5351 = vpow2.f32 %v7402_v7  ;;  %v2417_v56 = vrot.slane %v7434_v3, 1  ;;  %v3244_v34 = vadd.f32 %v3243_v27, %v3242_v30  ;;  %v8529_v45 = vld [vmem:[#allocation143_spill] sm:$0xff] }
 0x39d   : > { %v3541_v25 = vmul.f32 %v5340_v63, %v3208_v55  ;;  %v3250_v48 = vadd.f32 %v3249_v20, %v3248_v62  ;;  %v3542_v33 = vmul.f32 %v5342_v21, %v3214_v53  ;;  %v3604_v5 = vpack.c.bf16 %v3540_v10, %v3540_v10  ;;  %v8534_v10 = vld [vmem:[#allocation33_spill] sm:$0xff] }
 0x39e   : > { %v5344_v6 = vpop.eup %5343  ;;  %v3747_v51 = vunpack.c.l.b16 %v3603_v9  ;;  %v3256_v38 = vadd.f32 %v3255_v22, %v3254_v19  ;;  %v3262_v49 = vadd.f32 %v3261_v24, %v3260_v44  ;;  %v8528_v30 = vrot.slane %v7404_v35, 1 }
 0x39f   : > { %v5346_v2 = vpop.eup %5345  ;;  %v3547_v28 = vmul.f32 %v5344_v6, %v3244_v34  ;;  %v3605_v41 = vpack.c.bf16 %v3541_v25, %v3541_v25  ;;  %v3606_v50 = vpack.c.bf16 %v3542_v33, %v3542_v33  ;;  %v3748_v26 = vunpack.c.l.b16 %v3604_v5  ;;  %v8536_v34 = vld [vmem:[#allocation34_spill] sm:$0xff]  ;;  %v8538_v33 = vld [vmem:[#allocation136_spill] sm:$0xff] }
 0x3a0   : > { %v5348_v52 = vpop.eup %5347  ;;  %v3548_v18 = vmul.f32 %v5346_v2, %v3250_v48  ;;  %v3815_v7 = vsel %vm3797_vm3, %v3747_v51, %v3814_v54  ;;  %v2430_v55 = vmax.f32 %v7404_v35, %v8528_v30  ;;  %v2418_v27 = vmax.f32 %v7434_v3, %v2417_v56  ;;  %v8544_v30 = vld [vmem:[#allocation89_spill] sm:$0xff] }
 0x3a1   : > { %v5350_v36 = vpop.eup %5349  ;;  %v3549_v62 = vmul.f32 %v5348_v52, %v3256_v38  ;;  %v3611_v14 = vpack.c.bf16 %v3547_v28, %v3547_v28  ;;  %v3749_v37 = vunpack.c.l.b16 %v3605_v41  ;;  %v3750_v19 = vunpack.c.l.b16 %v3606_v50 }
 0x3a2   : > { %v3550_v15 = vmul.f32 %v5350_v36, %v3262_v49  ;;  %v3612_v1 = vpack.c.bf16 %v3548_v18, %v3548_v18  ;;  %v3816_v44 = vsel %vm3799_vm4, %v3748_v26, %v3815_v7  ;;  %v2484_v11 = vsub.f32 %v7243_v13, %v7394_v31  ;;  %v8540_v49 = vld [vmem:[#allocation138_spill] sm:$0xff]  ;;  %v8541_v18 = vld [vmem:[#allocation141_spill] sm:$0xff] }
 0x3a3   : > { %v3613_v39 = vpack.c.bf16 %v3549_v62, %v3549_v62  ;;  %v3755_v29 = vunpack.c.l.b16 %v3611_v14  ;;  %v3817_v12 = vsel %vm3801_vm5, %v3749_v37, %v3816_v44  ;;  %v2493_v32 = vsub.f32 %v7299_v16, %v7397_v23  ;;  %v8531_v23 = vld [vmem:[#allocation132_spill] sm:$0xff]  ;;  %v8543_v7 = vld [vmem:[#allocation38_spill] sm:$0xff] }
 0x3a4   : > { %v3614_v20 = vpack.c.bf16 %v3550_v15, %v3550_v15  ;;  %v3756_v60 = vunpack.c.l.b16 %v3612_v1  ;;  %v3818_v35 = vsel %vm3803_vm6, %v3750_v19, %v3817_v12  ;;  %v2845_v58 = vrot.slane %v8529_v45, 4  ;;  %v8545_v14 = vld [vmem:[#allocation32_spill] sm:$0xff]  ;;  %v8576_v15 = vld [vmem:[#allocation55_spill] sm:$0xff] }
 0x3a5   : > { %v3757_v46 = vunpack.c.l.b16 %v3613_v39  ;;  %v3822_v59 = vsel %vm3797_vm3, %v3755_v29, %v3821_v17  ;;  %v8530_v3 = vsub.f32 %v7220_v40, %v7376_v43  ;;  %v2494_v42 = vsub.f32 %v7346_v8, %v2430_v55  ;;  %v8533_v40 = vld [vmem:[#allocation88_spill] sm:$0xff]  ;;  %v8546_v29 = vld [vmem:[#allocation85_spill] sm:$0xff] }
 0x3a6   : > { %v3758_v22 = vunpack.c.l.b16 %v3614_v20  ;;  %v3823_v13 = vsel %vm3799_vm4, %v3756_v60, %v3822_v59  ;;  %v2919_v31 = vrot.slane %v7392_v57, 2  ;;  %v2492_v24 = vsub.f32 %v7369_v47, %v2418_v27  ;;  %v8550_v59 = vld [vmem:[#allocation134_spill] sm:$0xff] }
 0x3a7   : > { %v2605_v61 = vmul.f32 1.442695, %v8530_v3  ;;  %v3824_v16 = vsel %vm3801_vm5, %v3757_v46, %v3823_v13  ;;  %v8532_v54 = vrot.slane %v8531_v23, 4  ;;  %v2601_v63 = vmul.f32 1.442695, %v2484_v11  ;;  %v8578_v11 = vld [vmem:[#allocation130_spill] sm:$0xff] }
 0x3a8   : > { %v2959_v53 = vrot.slane %v7474_v0, 4  ;;  %v2965_v43 = vrot.slane %v8533_v40, 4  ;;  %v3825_v8 = vsel %vm3803_vm6, %v3758_v22, %v3824_v16  ;;  %v2971_v9 = vrot.slane %v8534_v10, 4  ;;  %v8552_v16 = vld [vmem:[#allocation29_spill] sm:$0xff] }
 0x3a9   : > { %v2840_v4 = vadd.f32 %v8531_v23, %v8532_v54  ;;  %v2619_v17 = vmul.f32 1.442695, %v2493_v32  ;;  %v3855_v21 = vpack.c.b16 %v3825_v8, %v3818_v35  ;;  %v2846_v56 = vadd.f32 %v8529_v45, %v2845_v58  ;;  %v7563_v47 = vpop.eup %5351  ;;  %v8548_v35 = vld [vmem:[#allocation94_spill] sm:$0xff] }
 0x3aa   : > { %8535 = vst [vmem:[#allocation36_spill] sm:$0xff] %v7563_v47  ;;  %v8537_v25 = vrot.slane %v8536_v34, 4  ;;  %5353 = vpow2.f32 %v2605_v61  ;;  %v2621_v48 = vmul.f32 1.442695, %v2494_v42  ;;  %v2835_v5 = vrot.slane %v8538_v33, 2  ;;  %v8551_v42 = vld [vmem:[#allocation27_spill] sm:$0xff] }
 0x3ab   : > { %v7572_v51 = vadd.f32 %v2919_v31, %v7392_v57  ;;  %v2617_v2 = vmul.f32 1.442695, %v2492_v24  ;;  %4909 = vmatmul.mubr.bf16.vlgmr.msra.gmra.mxu0 %v3855_v21  ;;  %v2841_v38 = vrot.slane %v2840_v4, 2  ;;  %v2851_v28 = vrot.slane %v8540_v49, 4  ;;  %v8595_v47 = vld [vmem:[#allocation62_spill] sm:$0xff] }
 0x3ac   : > { %v7568_v6 = vadd.f32 %v8536_v34, %v8537_v25  ;;  %5355 = vpow2.f32 %v2601_v63  ;;  %v2960_v41 = vadd.f32 %v7474_v0, %v2959_v53  ;;  %v2966_v52 = vadd.f32 %v8533_v40, %v2965_v43  ;;  %v5148_v63 = vld [vmem:[#allocation11 + $0x30] sm:$0xff]   ;;  %v8557_v25 = vld [vmem:[#allocation135_spill] sm:$0xff] }
 0x3ad   : > { %8539 = vst [vmem:[#allocation90_spill] sm:$0xff] %v7572_v51  ;;  %v2857_v50 = vrot.slane %v8541_v18, 4  ;;  %v7579_v26 = vadd.f32 %v8534_v10, %v2971_v9  ;;  %v2977_v36 = vrot.slane %v8543_v7, 4  ;;  %5357 = vpow2.f32 %v2619_v17  ;;  %v8555_v17 = vld [vmem:[#allocation133_spill] sm:$0xff] }
 0x3ae   : > { %v2847_v57 = vrot.slane %v2846_v56, 2  ;;  %5359 = vpow2.f32 %v2621_v48  ;;  %v2836_v62 = vadd.f32 %v2835_v5, %v8538_v33  ;;  %v2893_v37 = vrot.slane %v8545_v14, 4 }
 0x3af   : > { %8542 = vst [vmem:[#allocation39_spill] sm:$0xff] %v7579_v26  ;;  %5361 = vpow2.f32 %v2617_v2  ;;  %v2842_v1 = vadd.f32 %v2841_v38, %v2840_v4  ;;  %v2852_v19 = vadd.f32 %v8540_v49, %v2851_v28  ;;  %v2961_v44 = vrot.slane %v2960_v41, 2  ;;  %v5147_v4 = vld [vmem:[#allocation11 + $0x38] sm:$0xff]  }
 0x3b0   : > { %v2967_v27 = vrot.slane %v2966_v52, 2  ;;  %v2858_v39 = vadd.f32 %v8541_v18, %v2857_v50  ;;  %v2899_v12 = vrot.slane %v8546_v29, 4  ;;  %v7591_v20 = vadd.f32 %v8543_v7, %v2977_v36  ;;  %4916 = vmatprep.subr.bf16.mxu0 %v5147_v4 }
 0x3b1   : > { %v2848_v60 = vadd.f32 %v2847_v57, %v2846_v56  ;;  %v8549_v32 = vrot.slane %v8548_v35, 4  ;;  %v2831_v58 = vrot.slane %v8550_v59, 1  ;;  %v2837_v3 = vrot.slane %v2836_v62, 1  ;;  %4917 = vmatpush3.bf16.msra.mxu0 %v5147_v4 }
 0x3b2   : > { %8547 = vst [vmem:[#allocation37_spill] sm:$0xff] %v7591_v20  ;;  %v2894_v61 = vadd.f32 %v8545_v14, %v2893_v37  ;;  %v2905_v22 = vrot.slane %v8551_v42, 4  ;;  %v2843_v31 = vrot.slane %v2842_v1, 1  ;;  %v2853_v24 = vrot.slane %v2852_v19, 2  ;;  %4918 = vmatprep.subr.bf16.mxu0 %v5148_v63 }
 0x3b3   : > { %v2888_v46 = vadd.f32 %v8548_v35, %v8549_v32  ;;  %v2883_v54 = vrot.slane %v8552_v16, 2  ;;  %v7601_v53 = vadd.f32 %v2961_v44, %v2960_v41  ;;  %v7603_v43 = vadd.f32 %v2967_v27, %v2966_v52  ;;  %v8560_v44 = vld [vmem:[#allocation50_spill] sm:$0xff] }
 0x3b4   : > { %v2859_v8 = vrot.slane %v2858_v39, 2  ;;  %v2900_v9 = vadd.f32 %v8546_v29, %v2899_v12  ;;  %v8556_v21 = vrot.slane %v8555_v17, 1  ;;  %v8558_v48 = vrot.slane %v8557_v25, 1  ;;  %v8562_v12 = vld [vmem:[#allocation125_spill] sm:$0xff] }
 0x3b5   : > { %8553 = vst [vmem:[#allocation41_spill] sm:$0xff] %v7601_v53  ;;  %8554 = vst [vmem:[#allocation40_spill] sm:$0xff] %v7603_v43  ;;  %v2849_v5 = vrot.slane %v2848_v60, 1  ;;  %v2889_v2 = vrot.slane %v2888_v46, 2  ;;  %v7617_v38 = vadd.f32 %v2831_v58, %v8550_v59  ;;  %v7619_v28 = vadd.f32 %v2837_v3, %v2836_v62  ;;  %v5149_v59 = vld [vmem:[#allocation11 + $0x28] sm:$0xff]   ;;  %4919 = vmatpush3.bf16.msra.mxu0 %v5148_v63 }
 0x3b6   : > { %v7609_v56 = vadd.f32 %v8556_v21, %v8555_v17  ;;  %v7614_v33 = vadd.f32 %v8558_v48, %v8557_v25  ;;  %v2895_v41 = vrot.slane %v2894_v61, 2  ;;  %v2906_v52 = vadd.f32 %v8551_v42, %v2905_v22  ;;  %v8563_v62 = vld [vmem:[#allocation95_spill] sm:$0xff]  ;;  %v8565_v22 = vld [vmem:[#allocation86_spill] sm:$0xff]  ;;  %4920 = vmatprep.subr.bf16.mxu0 %v5149_v59 }
 0x3b7   : > { %v7622_v50 = vpop.eup %5353  ;;  %v7624_v36 = vadd.f32 %v2843_v31, %v2842_v1  ;;  %v2854_v57 = vadd.f32 %v2853_v24, %v2852_v19  ;;  %v2884_v37 = vadd.f32 %v2883_v54, %v8552_v16  ;;  %v8561_v27 = vunpack.c.h.bf16 %v8560_v44  ;;  %v8568_v16 = vld [vmem:[#allocation84_spill] sm:$0xff]  ;;  %v8569_v25 = vld [vmem:[#allocation51_spill] sm:$0xff] }
 0x3b8   : > { %8559 = vst [vmem:[#allocation142_spill] sm:$0xff] %v7622_v50  ;;  %v2860_v58 = vadd.f32 %v2859_v8, %v2858_v39  ;;  %v8564_v3 = vrot.slane %v8563_v62, 1  ;;  %v8566_v4 = vrot.slane %v8565_v22, 1  ;;  %v2901_v19 = vrot.slane %v2900_v9, 2  ;;  %v8571_v8 = vld [vmem:[#allocation126_spill] sm:$0xff] }
 0x3b9   : > { %v3039_v32 = vmul.f32 %v8562_v12, %v8561_v27  ;;  %v7640_v31 = vpop.eup %5355  ;;  %v7642_v24 = vadd.f32 %v2849_v5, %v2848_v60  ;;  %v2879_v54 = vrot.slane %v8568_v16, 1  ;;  %v2890_v21 = vadd.f32 %v2889_v2, %v2888_v46  ;;  %4921 = vmatpush3.bf16.msra.mxu0 %v5149_v59 }
 0x3ba   : > { %v7633_v17 = vadd.f32 %v8564_v3, %v8563_v62  ;;  %v7638_v1 = vadd.f32 %v8566_v4, %v8565_v22  ;;  %8567 = vst [vmem:[#allocation140_spill] sm:$0xff] %v7640_v31  ;;  %v8570_v39 = vunpack.c.h.bf16 %v8569_v25  ;;  %v7648_v44 = vpop.eup %5357  ;;  %v2896_v27 = vadd.f32 %v2895_v41, %v2894_v61  ;;  %v8573_v62 = vld [vmem:[#allocation54_spill] sm:$0xff]  ;;  %v8575_v22 = vld [vmem:[#allocation123_spill] sm:$0xff]  ;;  %v8580_v25 = vld [vmem:[#allocation56_spill] sm:$0xff] }
 0x3bb   : > { %8572 = vst [vmem:[#allocation107_spill] sm:$0xff] %v7648_v44  ;;  %v2907_v12 = vrot.slane %v2906_v52, 2  ;;  %v8574_v3 = vunpack.c.h.bf16 %v8573_v62  ;;  %v8577_v13 = vunpack.c.h.bf16 %v8576_v15  ;;  %v7656_v5 = vpop.eup %5359  ;;  %v2855_v46 = vrot.slane %v2854_v57, 1  ;;  %v5150_v61 = vld [vmem:[#allocation11 + $0x20] sm:$0xff]  }
 0x3bc   : > { %v3040_v48 = vmul.f32 %v8571_v8, %v8570_v39  ;;  %8579 = vst [vmem:[#allocation102_spill] sm:$0xff] %v7656_v5  ;;  %v2885_v2 = vrot.slane %v2884_v37, 1  ;;  %v8581_v55 = vunpack.c.h.bf16 %v8580_v25  ;;  %v3263_v8 = vrot.slane %v3039_v32, 4  ;;  %v7661_v41 = vpop.eup %5361  ;;  %4922 = vmatprep.subr.bf16.mxu0 %v5150_v61 }
 0x3bd   : > { %v3041_v4 = vmul.f32 %v8575_v22, %v8574_v3  ;;  %v3042_v60 = vmul.f32 %v8578_v11, %v8577_v13  ;;  %8582 = vst [vmem:[#allocation42_spill] sm:$0xff] %v7661_v41  ;;  %v2861_v62 = vrot.slane %v2860_v58, 1  ;;  %v2902_v3 = vadd.f32 %v2901_v19, %v2900_v9  ;;  %v8583_v22 = vld [vmem:[#allocation57_spill] sm:$0xff]  ;;  %v8585_v13 = vld [vmem:[#allocation58_spill] sm:$0xff]  ;;  %4923 = vmatpush3.bf16.msra.mxu0 %v5150_v61  ;;  %v8601_v61 = vld [vmem:[#allocation64_spill] sm:$0xff] }
 0x3be   : > { %v3043_v39 = vmul.f32 %v8531_v23, %v8581_v55  ;;  %v8584_v15 = vunpack.c.h.bf16 %v8583_v22  ;;  %v8586_v63 = vunpack.c.h.bf16 %v8585_v13  ;;  %v7670_v10 = vadd.f32 %v2879_v54, %v8568_v16  ;;  %v8587_v23 = vld [vmem:[#allocation59_spill] sm:$0xff]  ;;  %v5151_v16 = vld [vmem:[#allocation11 + $0x18] sm:$0xff]  }
 0x3bf   : > { %v2891_v25 = vrot.slane %v2890_v21, 1  ;;  %v8588_v55 = vunpack.c.h.bf16 %v8587_v23  ;;  %v3269_v0 = vrot.slane %v3040_v48, 4  ;;  %v2897_v34 = vrot.slane %v2896_v27, 1  ;;  %4924 = vmatprep.subr.bf16.mxu0 %v5151_v16 }
 0x3c0   : > { %v3044_v11 = vmul.f32 %v8529_v45, %v8584_v15  ;;  %v3045_v7 = vmul.f32 %v8540_v49, %v8586_v63  ;;  %v2908_v5 = vadd.f32 %v2907_v12, %v2906_v52  ;;  %v3275_v9 = vrot.slane %v3041_v4, 4  ;;  %v8591_v12 = vld [vmem:[#allocation139_spill] sm:$0xff] }
 0x3c1   : > { %v3046_v40 = vmul.f32 %v8541_v18, %v8588_v55  ;;  %v3281_v19 = vrot.slane %v3042_v60, 4  ;;  %v7675_v22 = vadd.f32 %v2855_v46, %v2854_v57  ;;  %v7677_v45 = vadd.f32 %v2885_v2, %v2884_v37  ;;  %v8589_v55 = vld [vmem:[#allocation60_spill] sm:$0xff]  ;;  %4925 = vmatpush3.bf16.msra.mxu0 %v5151_v16 }
 0x3c2   : > { %v3264_v15 = vadd.f32 %v3263_v8, %v3039_v32  ;;  %v3287_v49 = vrot.slane %v3043_v39, 4  ;;  %v7679_v54 = vadd.f32 %v2861_v62, %v2860_v58  ;;  %v2903_v13 = vrot.slane %v2902_v3, 1  ;;  %v8592_v8 = vld [vmem:[#allocation61_spill] sm:$0xff]  ;;  %v8594_v62 = vld [vmem:[#allocation26_spill] sm:$0xff] }
 0x3c3   : > { %v3293_v63 = vrot.slane %v3044_v11, 4  ;;  %v3299_v23 = vrot.slane %v3045_v7, 4  ;;  %v7681_v18 = vadd.f32 %v2891_v25, %v2890_v21  ;;  %v8590_v52 = vunpack.c.h.bf16 %v8589_v55  ;;  %v8597_v21 = vld [vmem:[#allocation137_spill] sm:$0xff] }
 0x3c4   : > { %v3270_v59 = vadd.f32 %v3269_v0, %v3040_v48  ;;  %v3305_v57 = vrot.slane %v3046_v40, 4  ;;  %v7686_v46 = vadd.f32 %v2897_v34, %v2896_v27  ;;  %v2909_v37 = vrot.slane %v2908_v5, 1  ;;  %v8598_v0 = vld [vmem:[#allocation63_spill] sm:$0xff]  ;;  %v8600_v48 = vld [vmem:[#allocation97_spill] sm:$0xff] }
 0x3c5   : > { %v3047_v20 = vmul.f32 %v8591_v12, %v8590_v52  ;;  %v3276_v32 = vadd.f32 %v3275_v9, %v3041_v4  ;;  %v3282_v2 = vadd.f32 %v3281_v19, %v3042_v60  ;;  %v8593_v58 = vunpack.c.h.bf16 %v8592_v8  ;;  %v8603_v12 = vld [vmem:[#allocation65_spill] sm:$0xff] }
 0x3c6   : > { %v8596_v43 = vunpack.c.h.bf16 %v8595_v47  ;;  %v3265_v26 = vrot.slane %v3264_v15, 2  ;;  %v3288_v55 = vadd.f32 %v3287_v49, %v3043_v39  ;;  %v7694_v52 = vadd.f32 %v2903_v13, %v2902_v3  ;;  %v8605_v3 = vld [vmem:[#allocation66_spill] sm:$0xff] }
 0x3c7   : > { %v3048_v51 = vmul.f32 %v8594_v62, %v8593_v58  ;;  %v8599_v34 = vunpack.c.h.bf16 %v8598_v0  ;;  %v3294_v4 = vadd.f32 %v3293_v63, %v3044_v11  ;;  %v3300_v60 = vadd.f32 %v3299_v23, %v3045_v7  ;;  %v8607_v7 = vld [vmem:[#allocation67_spill] sm:$0xff] }
 0x3c8   : > { %v3049_v25 = vmul.f32 %v8597_v21, %v8596_v43  ;;  %v8602_v9 = vunpack.c.h.bf16 %v8601_v61  ;;  %v8604_v8 = vunpack.c.h.bf16 %v8603_v12  ;;  %v3271_v43 = vrot.slane %v3270_v59, 2 }
 0x3c9   : > { %v3050_v27 = vmul.f32 %v8600_v48, %v8599_v34  ;;  %v3306_v58 = vadd.f32 %v3305_v57, %v3046_v40  ;;  %v7705_v39 = vadd.f32 %v2909_v37, %v2908_v5  ;;  %v8606_v49 = vunpack.c.h.bf16 %v8605_v3 }
 0x3ca   : > { %v3051_v19 = vmul.f32 %v8548_v35, %v8602_v9  ;;  %v3052_v47 = vmul.f32 %v8545_v14, %v8604_v8  ;;  %v3277_v62 = vrot.slane %v3276_v32, 2  ;;  %v3283_v21 = vrot.slane %v3282_v2, 2 }
 0x3cb   : > { %v3053_v13 = vmul.f32 %v8546_v29, %v8606_v49  ;;  %v8608_v11 = vunpack.c.h.bf16 %v8607_v7  ;;  %v3266_v35 = vadd.f32 %v3265_v26, %v3264_v15  ;;  %v3289_v23 = vrot.slane %v3288_v55, 2 }
 0x3cc   : > { %v3311_v0 = vrot.slane %v3047_v20, 4  ;;  %v3295_v34 = vrot.slane %v3294_v4, 2  ;;  %v3301_v14 = vrot.slane %v3300_v60, 2  ;;  %v3317_v48 = vrot.slane %v3048_v51, 4 }
 0x3cd   : > { %v3054_v63 = vmul.f32 %v8551_v42, %v8608_v11  ;;  %v3323_v40 = vrot.slane %v3049_v25, 4  ;;  %v3272_v5 = vadd.f32 %v3271_v43, %v3270_v59  ;;  %v3307_v57 = vrot.slane %v3306_v58, 2 }
 0x3ce   : > { %v3329_v37 = vrot.slane %v3050_v27, 4  ;;  %v3335_v61 = vrot.slane %v3051_v19, 4  ;;  %v3278_v9 = vadd.f32 %v3277_v62, %v3276_v32  ;;  %v3284_v29 = vadd.f32 %v3283_v21, %v3282_v2 }
 0x3cf   : > { %v3341_v12 = vrot.slane %v3052_v47, 4  ;;  %v3347_v8 = vrot.slane %v3053_v13, 4  ;;  %v3267_v16 = vrot.slane %v3266_v35, 1  ;;  %v3290_v3 = vadd.f32 %v3289_v23, %v3288_v55 }
 0x3d0   : > { %v3312_v49 = vadd.f32 %v3311_v0, %v3047_v20  ;;  %v3353_v7 = vrot.slane %v3054_v63, 4  ;;  %v3296_v42 = vadd.f32 %v3295_v34, %v3294_v4  ;;  %v3302_v26 = vadd.f32 %v3301_v14, %v3300_v60 }
 0x3d1   : > { %v3318_v15 = vadd.f32 %v3317_v48, %v3048_v51  ;;  %v3324_v11 = vadd.f32 %v3323_v40, %v3049_v25  ;;  %v3273_v53 = vrot.slane %v3272_v5, 1  ;;  %v3308_v44 = vadd.f32 %v3307_v57, %v3306_v58 }
 0x3d2   : > { %v3330_v41 = vadd.f32 %v3329_v37, %v3050_v27  ;;  %v3336_v50 = vadd.f32 %v3335_v61, %v3051_v19  ;;  %v3279_v59 = vrot.slane %v3278_v9, 1  ;;  %v3342_v43 = vadd.f32 %v3341_v12, %v3052_v47 }
 0x3d3   : > { %v3348_v31 = vadd.f32 %v3347_v8, %v3053_v13  ;;  %5363 = vrcp.f32 %v7609_v56  ;;  %v3285_v32 = vrot.slane %v3284_v29, 1  ;;  %v3313_v2 = vrot.slane %v3312_v49, 2 }
 0x3d4   : > { %v3354_v62 = vadd.f32 %v3353_v7, %v3054_v63  ;;  %5365 = vrcp.f32 %v7614_v33  ;;  %v3291_v20 = vrot.slane %v3290_v3, 1  ;;  %v3319_v55 = vrot.slane %v3318_v15, 2 }
 0x3d5   : > { %v3325_v4 = vrot.slane %v3324_v11, 2  ;;  %5367 = vrcp.f32 %v7617_v38  ;;  %v3268_v51 = vadd.f32 %v3267_v16, %v3266_v35  ;;  %v3331_v25 = vrot.slane %v3330_v41, 2 }
 0x3d6   : > { %v3337_v60 = vrot.slane %v3336_v50, 2  ;;  %5369 = vrcp.f32 %v7619_v28  ;;  %v3297_v27 = vrot.slane %v3296_v42, 1  ;;  %v3343_v19 = vrot.slane %v3342_v43, 2 }
 0x3d7   : > { %v3349_v47 = vrot.slane %v3348_v31, 2  ;;  %5371 = vrcp.f32 %v7624_v36  ;;  %v3303_v56 = vrot.slane %v3302_v26, 1  ;;  %v3314_v58 = vadd.f32 %v3313_v2, %v3312_v49 }
 0x3d8   : > { %v3355_v13 = vrot.slane %v3354_v62, 2  ;;  %5373 = vrcp.f32 %v7642_v24  ;;  %v3309_v33 = vrot.slane %v3308_v44, 1  ;;  %v3320_v21 = vadd.f32 %v3319_v55, %v3318_v15 }
 0x3d9   : > { %v3326_v63 = vadd.f32 %v3325_v4, %v3324_v11  ;;  %5375 = vrcp.f32 %v7675_v22  ;;  %v3274_v38 = vadd.f32 %v3273_v53, %v3272_v5  ;;  %v3332_v35 = vadd.f32 %v3331_v25, %v3330_v41 }
 0x3da   : > { %v3338_v23 = vadd.f32 %v3337_v60, %v3336_v50  ;;  %5377 = vrcp.f32 %v7679_v54  ;;  %v3280_v28 = vadd.f32 %v3279_v59, %v3278_v9  ;;  %v3344_v0 = vadd.f32 %v3343_v19, %v3342_v43 }
 0x3db   : > { %v3350_v34 = vadd.f32 %v3349_v47, %v3348_v31  ;;  %5379 = vrcp.f32 %v7633_v17  ;;  %v3286_v36 = vadd.f32 %v3285_v32, %v3284_v29  ;;  %v3315_v14 = vrot.slane %v3314_v58, 1 }
 0x3dc   : > { %v3356_v48 = vadd.f32 %v3355_v13, %v3354_v62  ;;  %5381 = vrcp.f32 %v7638_v1  ;;  %v3292_v24 = vadd.f32 %v3291_v20, %v3290_v3  ;;  %v3321_v40 = vrot.slane %v3320_v21, 1 }
 0x3dd   : > { %v3327_v57 = vrot.slane %v3326_v63, 1  ;;  %5383 = vrcp.f32 %v7670_v10  ;;  %v3298_v53 = vadd.f32 %v3297_v27, %v3296_v42  ;;  %v3333_v41 = vrot.slane %v3332_v35, 1 }
 0x3de   : > { %v3339_v50 = vrot.slane %v3338_v23, 1  ;;  %5385 = vrcp.f32 %v7677_v45  ;;  %v3304_v22 = vadd.f32 %v3303_v56, %v3302_v26  ;;  %v3345_v54 = vrot.slane %v3344_v0, 1  ;;  %v8611_v56 = vld [vmem:[#allocation35_spill] sm:$0xff] }
 0x3df   : > { %v3351_v31 = vrot.slane %v3350_v34, 1  ;;  %5387 = vrcp.f32 %v7681_v18  ;;  %v3310_v5 = vadd.f32 %v3309_v33, %v3308_v44  ;;  %v3316_v37 = vadd.f32 %v3315_v14, %v3314_v58 }
 0x3e0   : > { %v5364_v17 = vpop.eup %5363  ;;  %v3357_v61 = vrot.slane %v3356_v48, 1  ;;  %5389 = vrcp.f32 %v7686_v46  ;;  %v3322_v9 = vadd.f32 %v3321_v40, %v3320_v21  ;;  %v3328_v29 = vadd.f32 %v3327_v57, %v3326_v63 }
 0x3e1   : > { %v5366_v1 = vpop.eup %5365  ;;  %5391 = vrcp.f32 %v7694_v52  ;;  %v3551_v10 = vmul.f32 %v5364_v17, %v3268_v51  ;;  %v3334_v8 = vadd.f32 %v3333_v41, %v3332_v35  ;;  %v3340_v45 = vadd.f32 %v3339_v50, %v3338_v23 }
 0x3e2   : > { %v5368_v12 = vpop.eup %5367  ;;  %5393 = vrcp.f32 %v7705_v39  ;;  %v3552_v16 = vmul.f32 %v5366_v1, %v3274_v38  ;;  %v3346_v18 = vadd.f32 %v3345_v54, %v3344_v0  ;;  %v3352_v49 = vadd.f32 %v3351_v31, %v3350_v34  ;;  %v8610_v39 = vld [vmem:[#allocation140_spill] sm:$0xff] }
 0x3e3   : > { %v5370_v3 = vpop.eup %5369  ;;  %v3553_v44 = vmul.f32 %v5368_v12, %v3280_v28  ;;  %v3615_v7 = vpack.c.bf16 %v3551_v10, %v3551_v10  ;;  %v3358_v26 = vadd.f32 %v3357_v61, %v3356_v48  ;;  %v2931_v11 = vrot.slane %v7568_v6, 2 }
 0x3e4   : > { %v5372_v42 = vpop.eup %5371  ;;  %v3554_v46 = vmul.f32 %v5370_v3, %v3286_v36  ;;  %v3616_v15 = vpack.c.bf16 %v3552_v16, %v3552_v16  ;;  %v8609_v32 = vrot.slane %v8544_v30, 4  ;;  %v2941_v62 = vrot.slane %v8610_v39, 4 }
 0x3e5   : > { %v5374_v59 = vpop.eup %5373  ;;  %v3555_v52 = vmul.f32 %v5372_v42, %v3292_v24  ;;  %v3617_v43 = vpack.c.bf16 %v3553_v44, %v3553_v44  ;;  %v3759_v51 = vunpack.c.l.b16 %v3615_v7  ;;  %v2947_v58 = vrot.slane %v8611_v56, 4 }
 0x3e6   : > { %v7733_v2 = vadd.f32 %v8544_v30, %v8609_v32  ;;  %v5376_v20 = vpop.eup %5375  ;;  %v3556_v55 = vmul.f32 %v5374_v59, %v3298_v53  ;;  %v3618_v4 = vpack.c.bf16 %v3554_v46, %v3554_v46  ;;  %v3760_v25 = vunpack.c.l.b16 %v3616_v15  ;;  %v8612_v59 = vld [vmem:[#allocation142_spill] sm:$0xff] }
 0x3e7   : > { %v5378_v60 = vpop.eup %5377  ;;  %v3557_v27 = vmul.f32 %v5376_v20, %v3304_v22  ;;  %v3619_v19 = vpack.c.bf16 %v3555_v52, %v3555_v52  ;;  %v3761_v47 = vunpack.c.l.b16 %v3617_v43  ;;  %v2953_v52 = vrot.slane %v8612_v59, 4 }
 0x3e8   : > { %v5380_v13 = vpop.eup %5379  ;;  %v3558_v33 = vmul.f32 %v5378_v60, %v3310_v5  ;;  %v3620_v21 = vpack.c.bf16 %v3556_v55, %v3556_v55  ;;  %v3762_v63 = vunpack.c.l.b16 %v3618_v4  ;;  %v3826_v38 = vsel %vm3791_vm0, %v3760_v25, %v3759_v51  ;;  %v5152_v25 = vld [vmem:[#allocation11 + $0x10] sm:$0xff]  }
 0x3e9   : > { %v5382_v35 = vpop.eup %5381  ;;  %v3559_v23 = vmul.f32 %v5380_v13, %v3316_v37  ;;  %v3621_v28 = vpack.c.bf16 %v3557_v27, %v3557_v27  ;;  %v3763_v0 = vunpack.c.l.b16 %v3619_v19  ;;  %v3827_v34 = vsel %vm3793_vm1, %v3761_v47, %v3826_v38  ;;  %4926 = vmatprep.subr.bf16.mxu0 %v5152_v25  ;;  %v8614_v38 = vld [vmem:[#allocation107_spill] sm:$0xff] }
 0x3ea   : > { %v5384_v36 = vpop.eup %5383  ;;  %v3560_v14 = vmul.f32 %v5382_v35, %v3322_v9  ;;  %v3622_v48 = vpack.c.bf16 %v3558_v33, %v3558_v33  ;;  %v3764_v24 = vunpack.c.l.b16 %v3620_v21  ;;  %v3828_v40 = vsel %vm3795_vm2, %v3762_v63, %v3827_v34  ;;  %v8613_v33 = vld [vmem:[#allocation42_spill] sm:$0xff]  ;;  %4927 = vmatpush3.bf16.msra.mxu0 %v5152_v25  ;;  %v8616_v34 = vld [vmem:[#allocation31_spill] sm:$0xff] }
 0x3eb   : > { %v5386_v57 = vpop.eup %5385  ;;  %v3561_v53 = vmul.f32 %v5384_v36, %v3328_v29  ;;  %v3623_v41 = vpack.c.bf16 %v3559_v23, %v3559_v23  ;;  %v3765_v50 = vunpack.c.l.b16 %v3621_v28  ;;  %v3829_v22 = vsel %vm3797_vm3, %v3763_v0, %v3828_v40  ;;  %v8615_v23 = vld [vmem:[#allocation41_spill] sm:$0xff]  ;;  %v8619_v40 = vld [vmem:[#allocation40_spill] sm:$0xff] }
 0x3ec   : > { %v5388_v54 = vpop.eup %5387  ;;  %v3562_v31 = vmul.f32 %v5386_v57, %v3334_v8  ;;  %v3624_v17 = vpack.c.bf16 %v3560_v14, %v3560_v14  ;;  %v3766_v5 = vunpack.c.l.b16 %v3622_v48  ;;  %v3830_v37 = vsel %vm3799_vm4, %v3764_v24, %v3829_v22 }
 0x3ed   : > { %v5390_v61 = vpop.eup %5389  ;;  %v3563_v1 = vmul.f32 %v5388_v54, %v3340_v45  ;;  %v3625_v10 = vpack.c.bf16 %v3561_v53, %v3561_v53  ;;  %v3767_v9 = vunpack.c.l.b16 %v3623_v41  ;;  %v3831_v12 = vsel %vm3801_vm5, %v3765_v50, %v3830_v37  ;;  %v8620_v50 = vld [vmem:[#allocation93_spill] sm:$0xff] }
 0x3ee   : > { %v5392_v16 = vpop.eup %5391  ;;  %v3564_v3 = vmul.f32 %v5390_v61, %v3346_v18  ;;  %v3626_v44 = vpack.c.bf16 %v3562_v31, %v3562_v31  ;;  %v3768_v29 = vunpack.c.l.b16 %v3624_v17  ;;  %v3832_v7 = vsel %vm3803_vm6, %v3766_v5, %v3831_v12  ;;  %v8622_v31 = vld [vmem:[#allocation36_spill] sm:$0xff]  ;;  %v5153_v61 = vld [vmem:[#allocation11 + $0x8] sm:$0xff]  }
 0x3ef   : > { %v5394_v42 = vpop.eup %5393  ;;  %v3565_v46 = vmul.f32 %v5392_v16, %v3352_v49  ;;  %v3627_v15 = vpack.c.bf16 %v3563_v1, %v3563_v1  ;;  %v3769_v8 = vunpack.c.l.b16 %v3625_v10  ;;  %v2932_v18 = vadd.f32 %v2931_v11, %v7568_v6  ;;  %4928 = vmatprep.subr.bf16.mxu0 %v5153_v61 }
 0x3f0   : > { %v3566_v43 = vmul.f32 %v5394_v42, %v3358_v26  ;;  %v3628_v32 = vpack.c.bf16 %v3564_v3, %v3564_v3  ;;  %v3770_v20 = vunpack.c.l.b16 %v3626_v44  ;;  %v3833_v45 = vsel %vm3791_vm0, %v3768_v29, %v3767_v9  ;;  %v5154_v42 = vld [vmem:[#allocation11] sm:$0xff]   ;;  %4929 = vmatpush3.bf16.msra.mxu0 %v5153_v61 }
 0x3f1   : > { %v3629_v55 = vpack.c.bf16 %v3565_v46, %v3565_v46  ;;  %v3771_v4 = vunpack.c.l.b16 %v3627_v15  ;;  %v3834_v51 = vsel %vm3793_vm1, %v3769_v8, %v3833_v45  ;;  %v2937_v19 = vrot.slane %v7733_v2, 2  ;;  %v8626_v8 = vld [vmem:[#allocation37_spill] sm:$0xff]  ;;  %4930 = vmatprep.subr.bf16.mxu0 %v5154_v42 }
 0x3f2   : > { %v3630_v60 = vpack.c.bf16 %v3566_v43, %v3566_v43  ;;  %v3772_v49 = vunpack.c.l.b16 %v3628_v32  ;;  %v3835_v27 = vsel %vm3795_vm2, %v3770_v20, %v3834_v51  ;;  %v2942_v13 = vadd.f32 %v8610_v39, %v2941_v62  ;;  %v8617_v62 = vld [vmem:[#allocation39_spill] sm:$0xff]  ;;  %v8627_v43 = vld [vmem:[#allocation102_spill] sm:$0xff]  ;;  %v8630_v51 = vld [vmem:[#allocation28_spill] sm:$0xff] }
 0x3f3   : > { %v3773_v26 = vunpack.c.l.b16 %v3629_v55  ;;  %v3836_v47 = vsel %vm3797_vm3, %v3771_v4, %v3835_v27  ;;  %v2989_v21 = vrot.slane %v8613_v33, 4  ;;  %v2948_v11 = vadd.f32 %v8611_v56, %v2947_v58  ;;  %v8628_v55 = vld [vmem:[#allocation68_spill] sm:$0xff]  ;;  %v8633_v27 = vld [vmem:[#allocation30_spill] sm:$0xff] }
 0x3f4   : > { %v3774_v63 = vunpack.c.l.b16 %v3630_v60  ;;  %v3837_v6 = vsel %vm3799_vm4, %v3772_v49, %v3836_v47  ;;  %v2995_v35 = vrot.slane %v8614_v38, 4  ;;  %v2963_v28 = vrot.slane %v8615_v23, 1  ;;  %v8631_v60 = vld [vmem:[#allocation69_spill] sm:$0xff]  ;;  %4931 = vmatpush3.bf16.msra.mxu0 %v5154_v42 }
 0x3f5   : > { %v3838_v0 = vsel %vm3801_vm5, %v3773_v26, %v3837_v6  ;;  %v2927_v36 = vrot.slane %v8616_v34, 1  ;;  %v2954_v14 = vadd.f32 %v8612_v59, %v2953_v52  ;;  %v8618_v48 = vrot.slane %v8617_v62, 2 }
 0x3f6   : > { %v2969_v57 = vrot.slane %v8619_v40, 1  ;;  %v3839_v53 = vsel %vm3803_vm6, %v3774_v63, %v3838_v0  ;;  %v2938_v58 = vadd.f32 %v2937_v19, %v7733_v2  ;;  %v8621_v22 = vrot.slane %v8620_v50, 1  ;;  %v8624_v2 = vld [vmem:[#allocation90_spill] sm:$0xff]  ;;  %v8636_v0 = vld [vmem:[#allocation87_spill] sm:$0xff] }
 0x3f7   : > { %v2974_v24 = vadd.f32 %v8618_v48, %v8617_v62  ;;  %v3856_v41 = vpack.c.b16 %v3839_v53, %v3832_v7  ;;  %v8623_v17 = vrot.slane %v8622_v31, 4  ;;  %v2990_v37 = vadd.f32 %v8613_v33, %v2989_v21  ;;  %v8639_v48 = vld [vmem:[#allocation34_spill] sm:$0xff] }
 0x3f8   : > { %v7773_v54 = vadd.f32 %v8621_v22, %v8620_v50  ;;  %v2933_v1 = vrot.slane %v2932_v18, 1  ;;  %v2943_v10 = vrot.slane %v2942_v13, 2  ;;  %v2949_v9 = vrot.slane %v2948_v11, 2 }
 0x3f9   : > { %v2984_v5 = vadd.f32 %v8622_v31, %v8623_v17  ;;  %v2996_v12 = vadd.f32 %v8614_v38, %v2995_v35  ;;  %4912 = vmatprep.mubr.bf16.mxu0 %v3856_v41  ;;  %v8625_v16 = vrot.slane %v8624_v2, 1  ;;  %v7786_v44 = vadd.f32 %v2927_v36, %v8616_v34  ;;  %v8637_v36 = vld [vmem:[#allocation71_spill] sm:$0xff] }
 0x3fa   : > { %v2955_v29 = vrot.slane %v2954_v14, 2  ;;  %v7789_v7 = vadd.f32 %v2963_v28, %v8615_v23  ;;  %v2939_v46 = vrot.slane %v2938_v58, 1  ;;  %v7792_v15 = vadd.f32 %v2969_v57, %v8619_v40  ;;  %v8634_v23 = vld [vmem:[#allocation70_spill] sm:$0xff] }
 0x3fb   : > { %v7783_v3 = vadd.f32 %v8625_v16, %v8624_v2  ;;  %v2979_v52 = vrot.slane %v8626_v8, 2  ;;  %v3001_v32 = vrot.slane %v8627_v43, 4  ;;  %v2985_v20 = vrot.slane %v2984_v5, 2  ;;  %v8644_v2 = vld [vmem:[#allocation74_spill] sm:$0xff] }
 0x3fc   : > { %v2991_v45 = vrot.slane %v2990_v37, 2  ;;  %v8629_v4 = vunpack.c.h.bf16 %v8628_v55  ;;  %v8632_v49 = vunpack.c.h.bf16 %v8631_v60  ;;  %v7802_v26 = vadd.f32 %v2933_v1, %v2932_v18 }
 0x3fd   : > { %v2944_v47 = vadd.f32 %v2943_v10, %v2942_v13  ;;  %v2950_v21 = vadd.f32 %v2949_v9, %v2948_v11  ;;  %v2997_v63 = vrot.slane %v2996_v12, 2  ;;  %v2956_v6 = vadd.f32 %v2955_v29, %v2954_v14  ;;  %v8640_v13 = vld [vmem:[#allocation72_spill] sm:$0xff]  ;;  %v8642_v10 = vld [vmem:[#allocation73_spill] sm:$0xff] }
 0x3fe   : > { %v3055_v25 = vmul.f32 %v8630_v51, %v8629_v4  ;;  %v3056_v19 = vmul.f32 %v8633_v27, %v8632_v49  ;;  %v2975_v35 = vrot.slane %v2974_v24, 1  ;;  %v8635_v28 = vunpack.c.h.bf16 %v8634_v23  ;;  %v8646_v23 = vld [vmem:[#allocation77_spill] sm:$0xff] }
 0x3ff   : > { %v8638_v62 = vunpack.c.h.bf16 %v8637_v36  ;;  %v7810_v57 = vadd.f32 %v2939_v46, %v2938_v58  ;;  %v2980_v53 = vadd.f32 %v2979_v52, %v8626_v8  ;;  %v3002_v18 = vadd.f32 %v8627_v43, %v3001_v32 }
 0x400   : > { %v3057_v34 = vmul.f32 %v8636_v0, %v8635_v28  ;;  %v8641_v11 = vunpack.c.h.bf16 %v8640_v13  ;;  %v2986_v14 = vadd.f32 %v2985_v20, %v2984_v5  ;;  %v2992_v50 = vadd.f32 %v2991_v45, %v2990_v37 }
 0x401   : > { %v3058_v40 = vmul.f32 %v8639_v48, %v8638_v62  ;;  %v3359_v22 = vrot.slane %v3055_v25, 4  ;;  %v3365_v17 = vrot.slane %v3056_v19, 4  ;;  %v2945_v61 = vrot.slane %v2944_v47, 1 }
 0x402   : > { %v3059_v41 = vmul.f32 %v8544_v30, %v8641_v11  ;;  %v2998_v1 = vadd.f32 %v2997_v63, %v2996_v12  ;;  %v8643_v9 = vunpack.c.h.bf16 %v8642_v10  ;;  %v8645_v16 = vunpack.c.h.bf16 %v8644_v2  ;;  %v8657_v2 = vld [vmem:[#allocation79_spill] sm:$0xff] }
 0x403   : > { %v2951_v46 = vrot.slane %v2950_v21, 1  ;;  %v2957_v8 = vrot.slane %v2956_v6, 1  ;;  %v3371_v52 = vrot.slane %v3057_v34, 4  ;;  %v3377_v32 = vrot.slane %v3058_v40, 4 }
 0x404   : > { %v3060_v58 = vmul.f32 %v8610_v39, %v8643_v9  ;;  %v3061_v29 = vmul.f32 %v8611_v56, %v8645_v16  ;;  %v7823_v30 = vadd.f32 %v2975_v35, %v2974_v24  ;;  %v2981_v5 = vrot.slane %v2980_v53, 1  ;;  %v8659_v16 = vld [vmem:[#allocation38_spill] sm:$0xff] }
 0x405   : > { %v3003_v37 = vrot.slane %v3002_v18, 2  ;;  %v3383_v20 = vrot.slane %v3059_v41, 4  ;;  %v2987_v42 = vrot.slane %v2986_v14, 1  ;;  %v2993_v45 = vrot.slane %v2992_v50, 1 }
 0x406   : > { %v3360_v12 = vadd.f32 %v3359_v22, %v3055_v25  ;;  %v3366_v55 = vadd.f32 %v3365_v17, %v3056_v19  ;;  %v7825_v4 = vadd.f32 %v2945_v61, %v2944_v47  ;;  %v2999_v39 = vrot.slane %v2998_v1, 1  ;;  %v8653_v22 = vld [vmem:[#allocation88_spill] sm:$0xff] }
 0x407   : > { %v3389_v51 = vrot.slane %v3060_v58, 4  ;;  %v3395_v60 = vrot.slane %v3061_v29, 4  ;;  %v7827_v49 = vadd.f32 %v2951_v46, %v2950_v21  ;;  %v7829_v56 = vadd.f32 %v2957_v8, %v2956_v6  ;;  %v8648_v6 = vld [vmem:[#allocation75_spill] sm:$0xff] }
 0x408   : > { %v3372_v27 = vadd.f32 %v3371_v52, %v3057_v34  ;;  %v3378_v63 = vadd.f32 %v3377_v32, %v3058_v40  ;;  %v7831_v24 = vadd.f32 %v2981_v5, %v2980_v53  ;;  %v3004_v35 = vadd.f32 %v3003_v37, %v3002_v18  ;;  %v8650_v34 = vld [vmem:[#allocation91_spill] sm:$0xff]  ;;  %v8651_v18 = vld [vmem:[#allocation76_spill] sm:$0xff]  ;;  %v8662_v5 = vld [vmem:[#allocation81_spill] sm:$0xff] }
 0x409   : > { %v8647_v28 = vunpack.c.h.bf16 %v8646_v23  ;;  %v3384_v25 = vadd.f32 %v3383_v20, %v3059_v41  ;;  %v7836_v19 = vadd.f32 %v2987_v42, %v2986_v14  ;;  %v7838_v47 = vadd.f32 %v2993_v45, %v2992_v50  ;;  %v8656_v14 = vld [vmem:[#allocation33_spill] sm:$0xff]  ;;  %v8660_v32 = vld [vmem:[#allocation80_spill] sm:$0xff]  ;;  %v8666_v23 = vld [vmem:[#allocation83_spill] sm:$0xff] }
 0x40a   : > { %v3361_v36 = vrot.slane %v3360_v12, 2  ;;  %v3367_v62 = vrot.slane %v3366_v55, 2  ;;  %v7840_v21 = vadd.f32 %v2999_v39, %v2998_v1  ;;  %v8649_v48 = vunpack.c.h.bf16 %v8648_v6  ;;  %v8664_v39 = vld [vmem:[#allocation82_spill] sm:$0xff] }
 0x40b   : > { %v3062_v0 = vmul.f32 %v8612_v59, %v8647_v28  ;;  %v3390_v53 = vadd.f32 %v3389_v51, %v3060_v58  ;;  %v3396_v13 = vadd.f32 %v3395_v60, %v3061_v29  ;;  %v8652_v11 = vunpack.c.h.bf16 %v8651_v18  ;;  %v8654_v59 = vld [vmem:[#allocation78_spill] sm:$0xff] }
 0x40c   : > { %v3063_v40 = vmul.f32 %v8650_v34, %v8649_v48  ;;  %v8655_v41 = vunpack.c.h.bf16 %v8654_v59  ;;  %v3373_v50 = vrot.slane %v3372_v27, 2  ;;  %v3379_v10 = vrot.slane %v3378_v63, 2 }
 0x40d   : > { %v3064_v17 = vmul.f32 %v8653_v22, %v8652_v11  ;;  %v3005_v9 = vrot.slane %v3004_v35, 1  ;;  %v8658_v1 = vunpack.c.h.bf16 %v8657_v2  ;;  %v3385_v8 = vrot.slane %v3384_v25, 2 }
 0x40e   : > { %v3065_v61 = vmul.f32 %v8656_v14, %v8655_v41  ;;  %v3401_v52 = vrot.slane %v3062_v0, 4  ;;  %v8661_v58 = vunpack.c.h.bf16 %v8660_v32  ;;  %v8663_v37 = vunpack.c.h.bf16 %v8662_v5 }
 0x40f   : > { %v3066_v46 = vmul.f32 %v8659_v16, %v8658_v1  ;;  %v3362_v42 = vadd.f32 %v3361_v36, %v3360_v12  ;;  %v3368_v45 = vadd.f32 %v3367_v62, %v3366_v55  ;;  %v8665_v51 = vunpack.c.h.bf16 %v8664_v39 }
 0x410   : > { %v3067_v29 = vmul.f32 %v8622_v31, %v8661_v58  ;;  %v3068_v20 = vmul.f32 %v8613_v33, %v8663_v37  ;;  %v8667_v28 = vunpack.c.h.bf16 %v8666_v23  ;;  %v3391_v48 = vrot.slane %v3390_v53, 2 }
 0x411   : > { %v3069_v60 = vmul.f32 %v8614_v38, %v8665_v51  ;;  %v3397_v34 = vrot.slane %v3396_v13, 2  ;;  %v3374_v18 = vadd.f32 %v3373_v50, %v3372_v27  ;;  %v3380_v11 = vadd.f32 %v3379_v10, %v3378_v63 }
 0x412   : > { %v3070_v6 = vmul.f32 %v8627_v43, %v8667_v28  ;;  %v3407_v22 = vrot.slane %v3063_v40, 4  ;;  %v3413_v31 = vrot.slane %v3064_v17, 4  ;;  %v7866_v59 = vadd.f32 %v3005_v9, %v3004_v35 }
 0x413   : > { %v3386_v41 = vadd.f32 %v3385_v8, %v3384_v25  ;;  %v3402_v33 = vadd.f32 %v3401_v52, %v3062_v0  ;;  %v3419_v12 = vrot.slane %v3065_v61, 4  ;;  %v3363_v55 = vrot.slane %v3362_v42, 1 }
 0x414   : > { %v3369_v36 = vrot.slane %v3368_v45, 1  ;;  %v3425_v62 = vrot.slane %v3066_v46, 4  ;;  %v3431_v14 = vrot.slane %v3067_v29, 4  ;;  %v3392_v38 = vadd.f32 %v3391_v48, %v3390_v53 }
 0x415   : > { %v3398_v2 = vadd.f32 %v3397_v34, %v3396_v13  ;;  %v3437_v1 = vrot.slane %v3068_v20, 4  ;;  %v3443_v16 = vrot.slane %v3069_v60, 4  ;;  %v3375_v43 = vrot.slane %v3374_v18, 1 }
 0x416   : > { %v3381_v32 = vrot.slane %v3380_v11, 1  ;;  %v3408_v58 = vadd.f32 %v3407_v22, %v3063_v40  ;;  %v3414_v27 = vadd.f32 %v3413_v31, %v3064_v17  ;;  %v3387_v63 = vrot.slane %v3386_v41, 1 }
 0x417   : > { %v3420_v50 = vadd.f32 %v3419_v12, %v3065_v61  ;;  %v3449_v10 = vrot.slane %v3070_v6, 4  ;;  %5395 = vrcp.f32 %v7773_v54  ;;  %v3403_v35 = vrot.slane %v3402_v33, 2 }
 0x418   : > { %v3426_v0 = vadd.f32 %v3425_v62, %v3066_v46  ;;  %v3432_v25 = vadd.f32 %v3431_v14, %v3067_v29  ;;  %5397 = vrcp.f32 %v7783_v3  ;;  %v3364_v9 = vadd.f32 %v3363_v55, %v3362_v42 }
 0x419   : > { %v3438_v8 = vadd.f32 %v3437_v1, %v3068_v20  ;;  %v3444_v53 = vadd.f32 %v3443_v16, %v3069_v60  ;;  %5399 = vrcp.f32 %v7786_v44  ;;  %v3370_v13 = vadd.f32 %v3369_v36, %v3368_v45 }
 0x41a   : > { %v3409_v52 = vrot.slane %v3408_v58, 2  ;;  %v3415_v5 = vrot.slane %v3414_v27, 2  ;;  %5401 = vrcp.f32 %v7802_v26  ;;  %v3393_v40 = vrot.slane %v3392_v38, 1 }
 0x41b   : > { %v3421_v17 = vrot.slane %v3420_v50, 2  ;;  %v3450_v61 = vadd.f32 %v3449_v10, %v3070_v6  ;;  %5403 = vrcp.f32 %v7810_v57  ;;  %v3404_v54 = vadd.f32 %v3403_v35, %v3402_v33 }
 0x41c   : > { %v3427_v46 = vrot.slane %v3426_v0, 2  ;;  %v3433_v29 = vrot.slane %v3432_v25, 2  ;;  %5405 = vrcp.f32 %v7825_v4  ;;  %v3399_v3 = vrot.slane %v3398_v2, 1 }
 0x41d   : > { %v3439_v37 = vrot.slane %v3438_v8, 2  ;;  %v3445_v20 = vrot.slane %v3444_v53, 2  ;;  %5407 = vrcp.f32 %v7827_v49  ;;  %v3376_v44 = vadd.f32 %v3375_v43, %v3374_v18 }
 0x41e   : > { %v3410_v42 = vadd.f32 %v3409_v52, %v3408_v58  ;;  %v3416_v45 = vadd.f32 %v3415_v5, %v3414_v27  ;;  %5409 = vrcp.f32 %v7829_v56  ;;  %v3382_v26 = vadd.f32 %v3381_v32, %v3380_v11 }
 0x41f   : > { %v3422_v39 = vadd.f32 %v3421_v17, %v3420_v50  ;;  %v3451_v51 = vrot.slane %v3450_v61, 2  ;;  %5411 = vrcp.f32 %v7789_v7  ;;  %v3405_v57 = vrot.slane %v3404_v54, 1 }
 0x420   : > { %v3428_v60 = vadd.f32 %v3427_v46, %v3426_v0  ;;  %v3434_v23 = vadd.f32 %v3433_v29, %v3432_v25  ;;  %5413 = vrcp.f32 %v7792_v15  ;;  %v3388_v4 = vadd.f32 %v3387_v63, %v3386_v41 }
 0x421   : > { %v3440_v28 = vadd.f32 %v3439_v37, %v3438_v8  ;;  %v3446_v6 = vadd.f32 %v3445_v20, %v3444_v53  ;;  %5415 = vrcp.f32 %v7823_v30  ;;  %v3394_v49 = vadd.f32 %v3393_v40, %v3392_v38 }
 0x422   : > { %v3411_v48 = vrot.slane %v3410_v42, 1  ;;  %v3417_v34 = vrot.slane %v3416_v45, 1  ;;  %5417 = vrcp.f32 %v7831_v24  ;;  %v3400_v56 = vadd.f32 %v3399_v3, %v3398_v2 }
 0x423   : > { %v3423_v18 = vrot.slane %v3422_v39, 1  ;;  %v3452_v11 = vadd.f32 %v3451_v51, %v3450_v61  ;;  %5419 = vrcp.f32 %v7836_v19  ;;  %v3406_v22 = vadd.f32 %v3405_v57, %v3404_v54 }
 0x424   : > { %v5396_v7 = vpop.eup %5395  ;;  %v3429_v31 = vrot.slane %v3428_v60, 1  ;;  %v3435_v33 = vrot.slane %v3434_v23, 1  ;;  %5421 = vrcp.f32 %v7838_v47  ;;  %v3441_v41 = vrot.slane %v3440_v28, 1 }
 0x425   : > { %v5398_v15 = vpop.eup %5397  ;;  %v3447_v12 = vrot.slane %v3446_v6, 1  ;;  %5423 = vrcp.f32 %v7840_v21  ;;  %v3567_v30 = vmul.f32 %v5396_v7, %v3364_v9  ;;  %v3412_v36 = vadd.f32 %v3411_v48, %v3410_v42 }
 0x426   : > { %v5400_v55 = vpop.eup %5399  ;;  %v3418_v24 = vadd.f32 %v3417_v34, %v3416_v45  ;;  %5425 = vrcp.f32 %v7866_v59  ;;  %v3568_v62 = vmul.f32 %v5398_v15, %v3370_v13  ;;  %v3424_v19 = vadd.f32 %v3423_v18, %v3422_v39 }
 0x427   : > { %v5402_v14 = vpop.eup %5401  ;;  %v3453_v38 = vrot.slane %v3452_v11, 1  ;;  %v3569_v2 = vmul.f32 %v5400_v55, %v3376_v44  ;;  %v3631_v1 = vpack.c.bf16 %v3567_v30, %v3567_v30  ;;  %v3430_v43 = vadd.f32 %v3429_v31, %v3428_v60 }
 0x428   : > { %v5404_v16 = vpop.eup %5403  ;;  %v3436_v47 = vadd.f32 %v3435_v33, %v3434_v23  ;;  %v3570_v32 = vmul.f32 %v5402_v14, %v3382_v26  ;;  %v3632_v58 = vpack.c.bf16 %v3568_v62, %v3568_v62  ;;  %v3442_v63 = vadd.f32 %v3441_v41, %v3440_v28 }
 0x429   : > { %v5406_v27 = vpop.eup %5405  ;;  %v3448_v21 = vadd.f32 %v3447_v12, %v3446_v6  ;;  %v3571_v50 = vmul.f32 %v5404_v16, %v3388_v4  ;;  %v3633_v10 = vpack.c.bf16 %v3569_v2, %v3569_v2  ;;  %v3775_v59 = vunpack.c.l.b16 %v3631_v1 }
 0x42a   : > { %v5408_v35 = vpop.eup %5407  ;;  %v3572_v0 = vmul.f32 %v5406_v27, %v3394_v49  ;;  %v3634_v25 = vpack.c.bf16 %v3570_v32, %v3570_v32  ;;  %v3776_v9 = vunpack.c.l.b16 %v3632_v58  ;;  %v3454_v53 = vadd.f32 %v3453_v38, %v3452_v11 }
 0x42b   : > { %v5410_v8 = vpop.eup %5409  ;;  %v3573_v13 = vmul.f32 %v5408_v35, %v3400_v56  ;;  %v3635_v52 = vpack.c.bf16 %v3571_v50, %v3571_v50  ;;  %v3777_v5 = vunpack.c.l.b16 %v3633_v10 }
 0x42c   : > { %v5412_v40 = vpop.eup %5411  ;;  %v3574_v17 = vmul.f32 %v5410_v8, %v3406_v22  ;;  %v3636_v61 = vpack.c.bf16 %v3572_v0, %v3572_v0  ;;  %v3778_v54 = vunpack.c.l.b16 %v3634_v25  ;;  %v3840_v46 = vsel %vm3791_vm0, %v3776_v9, %v3775_v59  ;;  %v5427_v8 = vld [vmem:[%s6056_s3 + $0x18] sm:$0xff] }
 0x42d   : > { %v5414_v29 = vpop.eup %5413  ;;  %v3575_v3 = vmul.f32 %v5412_v40, %v3412_v36  ;;  %v3637_v37 = vpack.c.bf16 %v3573_v13, %v3573_v13  ;;  %v3779_v20 = vunpack.c.l.b16 %v3635_v52  ;;  %v3841_v44 = vsel %vm3793_vm1, %v3777_v5, %v3840_v46  ;;  %v5428_v52 = vld [vmem:[%s6056_s3] sm:$0xff]  ;;  %v5429_v40 = vld [vmem:[%s6056_s3 + $0x8] sm:$0xff] }
 0x42e   : > { %v5416_v42 = vpop.eup %5415  ;;  %v3576_v45 = vmul.f32 %v5414_v29, %v3418_v24  ;;  %v3638_v26 = vpack.c.bf16 %v3574_v17, %v3574_v17  ;;  %v3780_v39 = vunpack.c.l.b16 %v3636_v61  ;;  %v3842_v51 = vsel %vm3795_vm2, %v3778_v54, %v3841_v44  ;;  %v5430_v61 = vld [vmem:[%s6056_s3 + $0x10] sm:$0xff]  ;;  %v5158_v44 = vld [vmem:[#allocation13 + $0x20] sm:$0xff]  }
 0x42f   : > { %v5418_v57 = vpop.eup %5417  ;;  %v3577_v60 = vmul.f32 %v5416_v42, %v3424_v19  ;;  %v3639_v23 = vpack.c.bf16 %v3575_v3, %v3575_v3  ;;  %v3781_v4 = vunpack.c.l.b16 %v3637_v37  ;;  %v3843_v28 = vsel %vm3797_vm3, %v3779_v20, %v3842_v51  ;;  %v5155_v3 = vld [vmem:[#allocation13 + $0x38] sm:$0xff]   ;;  %v5156_v37 = vld [vmem:[#allocation13 + $0x30] sm:$0xff]   ;;  %v5157_v20 = vld [vmem:[#allocation13 + $0x28] sm:$0xff]  }
 0x430   : > { %v5420_v6 = vpop.eup %5419  ;;  %v3578_v49 = vmul.f32 %v5418_v57, %v3430_v43  ;;  %v3640_v48 = vpack.c.bf16 %v3576_v45, %v3576_v45  ;;  %v3782_v34 = vunpack.c.l.b16 %v3638_v26  ;;  %v3844_v56 = vsel %vm3799_vm4, %v3780_v39, %v3843_v28  ;;  %4940 = vmatprep.subr.bf16.mxu0 %v5155_v3  ;;  %v5159_v42 = vld [vmem:[#allocation13 + $0x18] sm:$0xff]   ;;  %v5160_v45 = vld [vmem:[#allocation13 + $0x10] sm:$0xff]   ;;  %v5161_v26 = vld [vmem:[#allocation13 + $0x8] sm:$0xff]  }
 0x431   : > { %v5422_v18 = vpop.eup %5421  ;;  %v3579_v11 = vmul.f32 %v5420_v6, %v3436_v47  ;;  %v3641_v7 = vpack.c.bf16 %v3577_v60, %v3577_v60  ;;  %v3783_v22 = vunpack.c.l.b16 %v3639_v23  ;;  %v3845_v31 = vsel %vm3801_vm5, %v3781_v4, %v3844_v56  ;;  %v5162_v39 = vld [vmem:[#allocation13] sm:$0xff]   ;;  %v5431_v23 = vld [vmem:[%s6056_s3 + $0x38] sm:$0xff]  ;;  %v5434_v56 = vld [vmem:[%s6056_s3 + $0x30] sm:$0xff] }
 0x432   : > { %v5424_v33 = vpop.eup %5423  ;;  %v3580_v15 = vmul.f32 %v5422_v18, %v3442_v63  ;;  %v3642_v41 = vpack.c.bf16 %v3578_v49, %v3578_v49  ;;  %v3784_v12 = vunpack.c.l.b16 %v3640_v48  ;;  %v3846_v30 = vsel %vm3803_vm6, %v3782_v34, %v3845_v31  ;;  %v5432_v6 = vld [vmem:[%s6056_s3 + $0x20] sm:$0xff]  ;;  %v5433_v48 = vld [vmem:[%s6056_s3 + $0x28] sm:$0xff]  ;;  %s5746_s3 = smov [#allocation16]  }
 0x433   : > { %v5426_v55 = vpop.eup %5425  ;;  %v3581_v36 = vmul.f32 %v5424_v33, %v3448_v21  ;;  %v3643_v24 = vpack.c.bf16 %v3579_v11, %v3579_v11  ;;  %v3785_v62 = vunpack.c.l.b16 %v3641_v7  ;;  %v4652_v33 = vld [vmem:[%s8003_s6] ss:$0 sm:$0xff]  ;;  %s5651_s0 = sshll.u32 %s5746_s3, 4  ;;  %s5652_s0 = int_to_ptr.vmem [resolvable:$false] %s5651_s0 }
 0x434   : > { %v3582_v14 = vmul.f32 %v5426_v55, %v3454_v53  ;;  %v3644_v19 = vpack.c.bf16 %v3580_v15, %v3580_v15  ;;  %v3786_v38 = vunpack.c.l.b16 %v3642_v41  ;;  %v3847_v2 = vsel %vm3791_vm0, %v3784_v12, %v3783_v22  ;;  %s5653_s24 = scalar_lea.vmem %s5652_s0, 2048  ;;  %p5654_p7 = scmp.lt.s32.totalorder %s7948_s9, %s5652_s0 }
 0x435   : > { %v3645_v1 = vpack.c.bf16 %v3581_v36, %v3581_v36  ;;  %v3787_v16 = vunpack.c.l.b16 %v3643_v24  ;;  %v3848_v43 = vsel %vm3793_vm1, %v3785_v62, %v3847_v2  ;;  %p5655_p9 = scmp.lt.s32.totalorder %s5653_s24, %s5647_s2 }
 0x436   : > { %v3646_v47 = vpack.c.bf16 %v3582_v14, %v3582_v14  ;;  %v3788_v32 = vunpack.c.l.b16 %v3644_v19  ;;  %v3849_v58 = vsel %vm3795_vm2, %v3786_v38, %v3848_v43  ;;  %v5165_v43 = vld [vmem:[#allocation14 + $0x28] sm:$0xff]  }
 0x437   : > { %v3789_v27 = vunpack.c.l.b16 %v3645_v1  ;;  %v3850_v63 = vsel %vm3797_vm3, %v3787_v16, %v3849_v58  ;;  %v5163_v1 = vld [vmem:[#allocation14 + $0x38] sm:$0xff]   ;;  %v5164_v16 = vld [vmem:[#allocation14 + $0x30] sm:$0xff]   ;;  %p5656_p3 = por %p5655_p9, %p5654_p7 }
 0x438   : > { %v3790_v21 = vunpack.c.l.b16 %v3646_v47  ;;  %v3851_v50 = vsel %vm3799_vm4, %v3788_v32, %v3850_v63  ;;  %4988 = vmatprep.subr.bf16.mxu1 %v5163_v1  ;;  %v5166_v47 = vld [vmem:[#allocation14 + $0x20] sm:$0xff]   ;;  %v5167_v32 = vld [vmem:[#allocation14 + $0x18] sm:$0xff]   ;;  %v5168_v58 = vld [vmem:[#allocation14 + $0x10] sm:$0xff]  }
 0x439   : > { %v3852_v10 = vsel %vm3801_vm5, %v3789_v27, %v3851_v50  ;;  %4996 = vmatpush3.bf16.msra.mxu1 %v5163_v1  ;;  %v5169_v27 = vld [vmem:[#allocation14 + $0x8] sm:$0xff]   ;;  %v5170_v63 = vld [vmem:[#allocation14] sm:$0xff]   ;;  %p5657_p8 = pnand %p5656_p3, %p5650_p5 }
 0x43a   : > { %v3853_v35 = vsel %vm3803_vm6, %v3790_v21, %v3852_v10  ;;  %4989 = vmatprep.subr.bf16.mxu1 %v5164_v16 }
 0x43b   : > { %v3857_v0 = vpack.c.b16 %v3853_v35, %v3846_v30 }
 0x43d   : > { %4913 = vmatmul.mubr.bf16.gmra.mxu0 %v3857_v0  ;;  %4997 = vmatpush3.bf16.msra.mxu1 %v5164_v16 }
 0x43e   : > { %4990 = vmatprep.subr.bf16.mxu1 %v5165_v43 }
 0x441   : > { %4998 = vmatpush3.bf16.msra.mxu1 %v5165_v43 }
 0x442   : > { %4991 = vmatprep.subr.bf16.mxu1 %v5166_v47 }
 0x445   : > { %4999 = vmatpush3.bf16.msra.mxu1 %v5166_v47 }
 0x446   : > { %4992 = vmatprep.subr.bf16.mxu1 %v5167_v32 }
 0x449   : > { %5000 = vmatpush3.bf16.msra.mxu1 %v5167_v32 }
 0x44a   : > { %4993 = vmatprep.subr.bf16.mxu1 %v5168_v58 }
 0x44d   : > { %5001 = vmatpush3.bf16.msra.mxu1 %v5168_v58 }
 0x44e   : > { %4994 = vmatprep.subr.bf16.mxu1 %v5169_v27 }
 0x451   : > { %5002 = vmatpush3.bf16.msra.mxu1 %v5169_v27 }
 0x452   : > { %4995 = vmatprep.subr.bf16.mxu1 %v5170_v63 }
 0x455   : > { %5003 = vmatpush3.bf16.msra.mxu1 %v5170_v63 }
 0x46b   : > { %v4910_v25 = vpop.f32.mrf.mxu0 }
 0x46c   : > { %v7908_v54 = vadd.f32 %v5430_v61, %v4910_v25 }
 0x46d   : > { %v3944_v59 = vpop.f32.mrf.mxu0 }
 0x46e   : > { %v7902_v5 = vadd.f32 %v5428_v52, %v3944_v59 }
 0x46f   : > { %v4911_v9 = vpop.f32.mrf.mxu0 }
 0x470   : > { %v7899_v53 = vadd.f32 %v5427_v8, %v4911_v9 }
 0x471   : > { %v3947_v13 = vpop.f32.mrf.mxu0 }
 0x472   : > { %v7905_v17 = vadd.f32 %v5429_v40, %v3947_v13  ;;  %v3984_v29 = vpack.c.bf16 %v7899_v53, %v7908_v54 }
 0x474   : > { %v3983_v46 = vpack.c.bf16 %v7905_v17, %v7902_v5 }
 0x476   : > { %4932 = vmatprep.mubr.bf16.mxu0 %v3983_v46 }
 0x477   : > { %4933 = vmatmul.mubr.bf16.vlgmr.msra.gmra.mxu0 %v3984_v29 }
 0x478   : > { %4941 = vmatpush3.bf16.msra.mxu0 %v5155_v3 }
 0x479   : > { %4942 = vmatprep.subr.bf16.mxu0 %v5156_v37 }
 0x47c   : > { %4943 = vmatpush3.bf16.msra.mxu0 %v5156_v37  ;;  %v4661_v37 = vld [vmem:[%s8005_s8] ss:$0 sm:$0xff] }
 0x47d   : > { %4944 = vmatprep.subr.bf16.mxu0 %v5157_v20 }
 0x480   : > { %4945 = vmatpush3.bf16.msra.mxu0 %v5157_v20 }
 0x481   : > { %4946 = vmatprep.subr.bf16.mxu0 %v5158_v44 }
 0x484   : > { %4947 = vmatpush3.bf16.msra.mxu0 %v5158_v44 }
 0x485   : > { %4948 = vmatprep.subr.bf16.mxu0 %v5159_v42 }
 0x488   : > { %4949 = vmatpush3.bf16.msra.mxu0 %v5159_v42 }
 0x489   : > { %4950 = vmatprep.subr.bf16.mxu0 %v5160_v45 }
 0x48c   : > { %4951 = vmatpush3.bf16.msra.mxu0 %v5160_v45 }
 0x48d   : > { %4952 = vmatprep.subr.bf16.mxu0 %v5161_v26 }
 0x490   : > { %4953 = vmatpush3.bf16.msra.mxu0 %v5161_v26 }
 0x491   : > { %4954 = vmatprep.subr.bf16.mxu0 %v5162_v39 }
 0x494   : > { %4955 = vmatpush3.bf16.msra.mxu0 %v5162_v39 }
 0x495   : > { %4964 = vmatprep.subr.bf16.mxu0 %v5163_v1 }
 0x4fd   : > { %v4914_v51 = vpop.f32.mrf.mxu0 }
 0x4fe   : > { %v7924_v18 = vadd.f32 %v5434_v56, %v4914_v51 }
 0x4ff   : > { %v3960_v57 = vpop.f32.mrf.mxu0 }
 0x500   : > { %v7918_v49 = vadd.f32 %v5432_v6, %v3960_v57 }
 0x501   : > { %v4915_v60 = vpop.f32.mrf.mxu0 }
 0x502   : > { %v7915_v4 = vadd.f32 %v5431_v23, %v4915_v60 }
 0x503   : > { %v3963_v28 = vpop.f32.mrf.mxu0 }
 0x504   : > { %v7921_v34 = vadd.f32 %v5433_v48, %v3963_v28  ;;  %v3986_v7 = vpack.c.bf16 %v7915_v4, %v7924_v18 }
 0x506   : > { %v3985_v11 = vpack.c.bf16 %v7921_v34, %v7918_v49 }
 0x508   : > { %4936 = vmatprep.mubr.bf16.mxu0 %v3985_v11 }
 0x509   : > { %4937 = vmatmul.mubr.bf16.gmra.mxu0 %v3986_v7 }
 0x537   : > { %v4934_v22 = vpop.f32.mrf.mxu0 }
 0x538   : > { %v4101_v30 = vadd.f32 %v4934_v22, %v4652_v33 }
 0x539   : > { %v4092_v31 = vpop.f32.mrf.mxu0 }
 0x53a   : > { %v4093_v41 = vadd.f32 %v4652_v33, %v4092_v31  ;;  %v4125_v19 = vmax.f32 %v4101_v30, 0.0 }
 0x53b   : > { %v4935_v15 = vpop.f32.mrf.mxu0 }
 0x53c   : > { %v4104_v12 = vadd.f32 %v4935_v15, %v4652_v33  ;;  %v4123_v62 = vmax.f32 %v4093_v41, 0.0 }
 0x53d   : > { %v4095_v55 = vpop.f32.mrf.mxu0 }
 0x53e   : > { %v4096_v36 = vadd.f32 %v4652_v33, %v4095_v55  ;;  %v4126_v24 = vmax.f32 %v4104_v12, 0.0 }
 0x540   : > { %v4124_v14 = vmax.f32 %v4096_v36, 0.0  ;;  %v4132_v2 = vpack.c.bf16 %v4126_v24, %v4125_v19 }
 0x542   : > { %v4131_v38 = vpack.c.bf16 %v4124_v14, %v4123_v62  ;;  %v4670_v62 = vld [vmem:[%s8007_s10] ss:$0 sm:$0xff] }
 0x544   : > { %4956 = vmatprep.mubr.bf16.mxu0 %v4131_v38 }
 0x545   : > { %4957 = vmatmul.mubr.bf16.vlgmr.msra.gmra.mxu0 %v4132_v2 }
 0x546   : > { %4965 = vmatpush3.bf16.msra.mxu0 %v5163_v1 }
 0x547   : > { %4966 = vmatprep.subr.bf16.mxu0 %v5164_v16 }
 0x54a   : > { %4967 = vmatpush3.bf16.msra.mxu0 %v5164_v16 }
 0x54b   : > { %4968 = vmatprep.subr.bf16.mxu0 %v5165_v43 }
 0x54e   : > { %4969 = vmatpush3.bf16.msra.mxu0 %v5165_v43 }
 0x54f   : > { %4970 = vmatprep.subr.bf16.mxu0 %v5166_v47 }
 0x552   : > { %4971 = vmatpush3.bf16.msra.mxu0 %v5166_v47 }
 0x553   : > { %4972 = vmatprep.subr.bf16.mxu0 %v5167_v32 }
 0x556   : > { %4973 = vmatpush3.bf16.msra.mxu0 %v5167_v32 }
 0x557   : > { %4974 = vmatprep.subr.bf16.mxu0 %v5168_v58 }
 0x55a   : > { %4975 = vmatpush3.bf16.msra.mxu0 %v5168_v58 }
 0x55b   : > { %4976 = vmatprep.subr.bf16.mxu0 %v5169_v27 }
 0x55e   : > { %4977 = vmatpush3.bf16.msra.mxu0 %v5169_v27 }
 0x55f   : > { %4978 = vmatprep.subr.bf16.mxu0 %v5170_v63 }
 0x562   : > { %4979 = vmatpush3.bf16.msra.mxu0 %v5170_v63 }
 0x5c9   : > { %v4938_v21 = vpop.f32.mrf.mxu0 }
 0x5ca   : > { %v4117_v25 = vadd.f32 %v4938_v21, %v4652_v33 }
 0x5cb   : > { %v4108_v50 = vpop.f32.mrf.mxu0 }
 0x5cc   : > { %v4109_v35 = vadd.f32 %v4652_v33, %v4108_v50  ;;  %v4129_v40 = vmax.f32 %v4117_v25, 0.0 }
 0x5cd   : > { %v4939_v10 = vpop.f32.mrf.mxu0 }
 0x5ce   : > { %v4120_v0 = vadd.f32 %v4939_v10, %v4652_v33  ;;  %v4127_v13 = vmax.f32 %v4109_v35, 0.0 }
 0x5cf   : > { %v4111_v59 = vpop.f32.mrf.mxu0 }
 0x5d0   : > { %v4112_v9 = vadd.f32 %v4652_v33, %v4111_v59  ;;  %v4130_v8 = vmax.f32 %v4120_v0, 0.0 }
 0x5d2   : > { %v4128_v52 = vmax.f32 %v4112_v9, 0.0  ;;  %v4134_v46 = vpack.c.bf16 %v4130_v8, %v4129_v40 }
 0x5d4   : > { %v4133_v61 = vpack.c.bf16 %v4128_v52, %v4127_v13 }
 0x5d6   : > { %4960 = vmatprep.mubr.bf16.mxu0 %v4133_v61 }
 0x5d7   : > { %4961 = vmatmul.mubr.bf16.gmra.mxu0 %v4134_v46 }
 0x605   : > { %v4958_v29 = vpop.f32.mrf.mxu0 }
 0x606   : > { %v4249_v45 = vadd.f32 %v4958_v29, %v4661_v37 }
 0x607   : > { %v4240_v3 = vpop.f32.mrf.mxu0 }
 0x608   : > { %v4241_v44 = vadd.f32 %v4661_v37, %v4240_v3  ;;  %v4273_v23 = vmax.f32 %v4249_v45, 0.0 }
 0x609   : > { %v4959_v20 = vpop.f32.mrf.mxu0 }
 0x60a   : > { %v4252_v42 = vadd.f32 %v4959_v20, %v4661_v37  ;;  %v4271_v57 = vmax.f32 %v4241_v44, 0.0 }
 0x60b   : > { %v4243_v26 = vpop.f32.mrf.mxu0 }
 0x60c   : > { %v4244_v39 = vadd.f32 %v4661_v37, %v4243_v26  ;;  %v4274_v51 = vmax.f32 %v4252_v42, 0.0 }
 0x60e   : > { %v4272_v60 = vmax.f32 %v4244_v39, 0.0  ;;  %v4280_v6 = vpack.c.bf16 %v4274_v51, %v4273_v23 }
 0x610   : > { %v4279_v28 = vpack.c.bf16 %v4272_v60, %v4271_v57 }
 0x612   : > { %4980 = vmatprep.mubr.bf16.mxu0 %v4279_v28 }
 0x613   : > { %4981 = vmatmul.mubr.bf16.vlgmr.msra.gmra.mxu0 %v4280_v6 }
 0x697   : > { %v4962_v48 = vpop.f32.mrf.mxu0 }
 0x698   : > { %v4265_v31 = vadd.f32 %v4962_v48, %v4661_v37 }
 0x699   : > { %v4256_v56 = vpop.f32.mrf.mxu0 }
 0x69a   : > { %v4257_v7 = vadd.f32 %v4661_v37, %v4256_v56  ;;  %v4277_v55 = vmax.f32 %v4265_v31, 0.0 }
 0x69b   : > { %v4963_v11 = vpop.f32.mrf.mxu0 }
 0x69c   : > { %v4268_v22 = vadd.f32 %v4963_v11, %v4661_v37  ;;  %v4275_v12 = vmax.f32 %v4257_v7, 0.0 }
 0x69d   : > { %v4259_v33 = vpop.f32.mrf.mxu0 }
 0x69e   : > { %v4260_v15 = vadd.f32 %v4661_v37, %v4259_v33  ;;  %v4278_v41 = vmax.f32 %v4268_v22, 0.0 }
 0x6a0   : > { %v4276_v30 = vmax.f32 %v4260_v15, 0.0  ;;  %v4282_v24 = vpack.c.bf16 %v4278_v41, %v4277_v55 }
 0x6a2   : > { %v4281_v36 = vpack.c.bf16 %v4276_v30, %v4275_v12 }
 0x6a4   : > { %4984 = vmatprep.mubr.bf16.mxu1 %v4281_v36 }
 0x6a5   : > { %4985 = vmatmul.mubr.bf16.vlgmr.msra.gmra.mxu1 %v4282_v24 }
 0x6d3   : > { %v4982_v14 = vpop.f32.mrf.mxu0 }
 0x6d4   : > { %v4397_v19 = vadd.f32 %v4982_v14, %v4670_v62 }
 0x6d5   : > { %v4388_v38 = vpop.f32.mrf.mxu0 }
 0x6d6   : > { %v4421_v2 = vadd.f32 %v4397_v19, %v7908_v54  ;;  %v4389_v1 = vadd.f32 %v4670_v62, %v4388_v38 }
 0x6d7   : > { %v4983_v16 = vpop.f32.mrf.mxu0 }
 0x6d8   : > { %4429 = vst [vmem:[%s532_s25 + $0x10] sm:$0xff] %v4421_v2  ;;  %v4419_v43 = vadd.f32 %v4389_v1, %v7902_v5  ;;  %v4400_v47 = vadd.f32 %v4983_v16, %v4670_v62 }
 0x6d9   : > { %v4391_v32 = vpop.f32.mrf.mxu0 }
 0x6da   : > { %4427 = vst [vmem:[%s532_s25] sm:$0xff] %v4419_v43  ;;  %v4422_v58 = vadd.f32 %v4400_v47, %v7899_v53  ;;  %v4392_v27 = vadd.f32 %v4670_v62, %v4391_v32 }
 0x6dc   : > { %4430 = vst [vmem:[%s532_s25 + $0x18] sm:$0xff] %v4422_v58  ;;  %v4420_v63 = vadd.f32 %v4392_v27, %v7905_v17 }
 0x6de   : > { %4428 = vst [vmem:[%s532_s25 + $0x8] sm:$0xff] %v4420_v63 }
 0x765   : > { %v4986_v21 = vpop.f32.mrf.mxu1 }
 0x766   : > { %v4413_v54 = vadd.f32 %v4986_v21, %v4670_v62 }
 0x767   : > { %v4404_v50 = vpop.f32.mrf.mxu1 }
 0x768   : > { %v4425_v10 = vadd.f32 %v4413_v54, %v7924_v18  ;;  %v4405_v35 = vadd.f32 %v4670_v62, %v4404_v50 }
 0x769   : > { %v4987_v5 = vpop.f32.mrf.mxu1 }
 0x76a   : > { %4433 = vst [vmem:[%s532_s25 + $0x30] sm:$0xff] %v4425_v10  ;;  %v4423_v0 = vadd.f32 %v4405_v35, %v7918_v49  ;;  %v4416_v25 = vadd.f32 %v4987_v5, %v4670_v62 }
 0x76b   : > { %v4407_v53 = vpop.f32.mrf.mxu1 }
 0x76c   : > { %4431 = vst [vmem:[%s532_s25 + $0x20] sm:$0xff] %v4423_v0  ;;  %v4426_v17 = vadd.f32 %v4416_v25, %v7915_v4  ;;  %v4408_v18 = vadd.f32 %v4670_v62, %v4407_v53 }
 0x76e   : > { %4434 = vst [vmem:[%s532_s25 + $0x38] sm:$0xff] %v4426_v17  ;;  %v4424_v49 = vadd.f32 %v4408_v18, %v7921_v34 }
 0x770   : > { %4432 = vst [vmem:[%s532_s25 + $0x28] sm:$0xff] %v4424_v49 }
 0x771   : > { %5660 = shalt.err (!%p5657_p8)
}
 0x772   : > { %s5661_s15 = scalar_lea.hbm %s7954_s29, 1024  ;;  %s5665_s26 = scalar_lea.hbm %s8008_s11, 4096 }
 0x773   : > { %p5662_p4 = scmp.ne.s32.totalorder %s7954_s29, %s5661_s15  ;;  %p5666_p0 = scmp.lt.s32.totalorder %s7954_s29, %s8008_s11 }
 0x774   : > { %p5667_p2 = scmp.lt.s32.totalorder %s5665_s26, %s5661_s15 }
 0x775   : > { %p5663_p11 = pnand %p5662_p4, %p8668_p12 }
 0x776   : > { %p5668_p6 = por %p5667_p2, %p5666_p0 }
 0x777   : > { %p5664_p13 = pneg %p5663_p11 }
 0x779   : > { %p5669_p10 = pnand %p5668_p6, %p5664_p13 }
 0x77b   : > { %5672 = shalt.err (!%p5669_p10)
}
 0x77c   : > { %s5747_s14 = smov 128   ;;  %s5748_s12 = smov 8  }
 0x77d   : > { %5032 = dma.vmem_to_hbm [thread:$0]  (%p8668_p12), %s7948_s9, 1024, %s7954_s29, %s4436_s23, %s5747_s14, %s5747_s14, %s5748_s12  }
 0x77e PF: > { %p5077_p1 = scmp.ge.s32.totalorder %s5731_s20, 2  ;;  %s4464_s25 = sand.u32 1, %s5719_s17  }
 0x77f   : > { %p8669_p5 = scmp.ne.s32.totalorder %s8227_s21, 0  ;;  %s4465_s4 = scalar_lea.sflag [#allocation4], %s4464_s25 }
 0x781   : > { %p5061_p7 = pnand %p5077_p1, %p8669_p5 }
 0x783   : > { %p5062_p9 = pneg %p5061_p7 }
 0x785   : > { %5714 = dma.done.wait (%p5062_p9), %s4465_s4, 1024  }
 0x786   : > { %5716 = vsyncadd (%p5062_p9), %s4465_s4, 4294966272  ;;  %s8670_s22 = sld [smem:[#allocation24_spill]]  ;;  %p30_p3 = scmp.ge.s32.totalorder %s5929_s30, 6  }
 0x787   : > { %s8671_s19 = sld [smem:[#allocation25_spill]]  ;;  %s8672_s17 = smov %s5723_s18 }
 0x788   : > { %s8674_s20 = smov %s5929_s30  ;;  %32 = sbr.rel (!%p30_p3) target bundleno = 18 (0x12), region = 146 }
 0x78c   : > { %s8673_s18 = smov %s8670_s22 }
 0x78d   :  { %4470 = vsyncpa [#allocation3], 1 }
 0x78e   :  { %4472 = vsyncpa [#allocation3 + $0x1], 1 }
 0x78f   :  { %4473 = vsyncpa [#allocation6], 1 }
 0x790   :  { %4475 = vsyncpa [#allocation6 + $0x1], 1 }
 0x791   :  { %4476 = vsyncpa [#allocation9], 1 }
 0x792   :  { %4477 = vsyncpa [#allocation12], 1 }
 0x793   :  { %4478 = vsyncpa [#allocation15], 1 }
 0x794   :  { %4479 = vsyncpa [#allocation4], 1 }
 0x795   :  { %4481 = vsyncpa [#allocation4 + $0x1], 1 }

</bundles_post_ra>
